<compile_context>
chip_gen: v7x
topology: tpu7x:2x2x1
jax: 0.10.0
libtpu: 0.0.40
codegen_flags: <defaults>
</compile_context>

<pallas_src>
import functools

import jax
import jax.numpy as jnp
import numpy as np
from jax.experimental import pallas as pl
from jax.experimental.pallas import tpu as pltpu

SELU_ALPHA = 1.6732632423543772
SELU_SCALE = 1.0507009873554805


def _round_up(x, m):
    return (x + m - 1) // m * m


def _selu(x):
    return SELU_SCALE * jnp.where(x > 0, x, SELU_ALPHA * (jnp.exp(x) - 1.0))


def _sigmoid(x):
    return 1.0 / (1.0 + jnp.exp(-x))


# ---------------------------------------------------------------------------
# Generic fused linear (+ optional SELU) kernel:  Y = act(X @ W + b)
# ---------------------------------------------------------------------------
def _linear_kernel(x_ref, w_ref, b_ref, o_ref, *, activation):
    acc = jnp.dot(x_ref[...], w_ref[...], preferred_element_type=jnp.float32)
    acc = acc + b_ref[...]
    if activation == "selu":
        acc = _selu(acc)
    o_ref[...] = acc.astype(o_ref.dtype)


def linear_pallas(x, w, b, activation=None, tm_max=512):
    """x: (M, K) f32, w: (K, N) f32, b: (N,) f32  ->  (M, N) f32."""
    M, K = x.shape
    N = w.shape[1]
    m_pad = _round_up(M, 8)
    tm = min(tm_max, m_pad)
    m_pad = _round_up(m_pad, tm)
    if m_pad != M:
        x = jnp.pad(x, ((0, m_pad - M), (0, 0)))
    b2 = b.reshape(1, N)

    out = pl.pallas_call(
        functools.partial(_linear_kernel, activation=activation),
        out_shape=jax.ShapeDtypeStruct((m_pad, N), x.dtype),
        grid_spec=pltpu.PrefetchScalarGridSpec(
            num_scalar_prefetch=0,
            grid=(m_pad // tm,),
            in_specs=[
                pl.BlockSpec((tm, K), lambda i: (i, 0)),   # streamed activations
                pl.BlockSpec((K, N), lambda i: (0, 0)),    # weight resident in VMEM
                pl.BlockSpec((1, N), lambda i: (0, 0)),    # bias resident in VMEM
            ],
            out_specs=pl.BlockSpec((tm, N), lambda i: (i, 0)),
        ),
        compiler_params=pltpu.CompilerParams(
            dimension_semantics=("parallel",)),
    )(x, w, b2)
    return out[:M]


# ---------------------------------------------------------------------------
# GRU recurrence kernel (single direction).  Sequential grid over time; the
# hidden state is a VMEM scratch persisting across grid steps.
#   gates_x : (T, B, 3, H)  precomputed  x_t @ W_ih^T + b_ih  (order r, z, n)
#   whh     : (3, H, H)     stacked W_hh^T per gate
#   bhh     : (3, 1, H)     stacked b_hh per gate
#   out     : (T, B, H)
# ---------------------------------------------------------------------------
def _gru_scan_kernel(gx_ref, whh_ref, bhh_ref, o_ref, h_ref):
    @pl.when(pl.program_id(0) == 0)
    def _():
        h_ref[...] = jnp.zeros_like(h_ref)

    h_prev = h_ref[...]                                   # (B, H) f32

    gx_r = gx_ref[0, :, 0, :]
    gx_z = gx_ref[0, :, 1, :]
    gx_n = gx_ref[0, :, 2, :]

    gh_r = jnp.dot(h_prev, whh_ref[0], preferred_element_type=jnp.float32) + bhh_ref[0]
    gh_z = jnp.dot(h_prev, whh_ref[1], preferred_element_type=jnp.float32) + bhh_ref[1]
    gh_n = jnp.dot(h_prev, whh_ref[2], preferred_element_type=jnp.float32) + bhh_ref[2]

    r = _sigmoid(gx_r + gh_r)
    z = _sigmoid(gx_z + gh_z)
    n = jnp.tanh(gx_n + r * gh_n)
    h_new = (1.0 - z) * n + z * h_prev

    h_ref[...] = h_new
    o_ref[0] = h_new.astype(o_ref.dtype)


def gru_scan_pallas(gates_x, whh_stacked, bhh_stacked):
    T, B, _, H = gates_x.shape
    return pl.pallas_call(
        _gru_scan_kernel,
        out_shape=jax.ShapeDtypeStruct((T, B, H), gates_x.dtype),
        grid_spec=pltpu.PrefetchScalarGridSpec(
            num_scalar_prefetch=0,
            grid=(T,),
            in_specs=[
                pl.BlockSpec((1, B, 3, H), lambda t: (t, 0, 0, 0)),
                pl.BlockSpec((3, H, H), lambda t: (0, 0, 0)),   # resident weights
                pl.BlockSpec((3, 1, H), lambda t: (0, 0, 0)),   # resident biases
            ],
            out_specs=pl.BlockSpec((1, B, H), lambda t: (t, 0, 0)),
            scratch_shapes=[pltpu.VMEM((B, H), jnp.float32)],    # carried hidden state
        ),
        compiler_params=pltpu.CompilerParams(
            dimension_semantics=("arbitrary",)),                 # sequential recurrence
    )(gates_x, whh_stacked, bhh_stacked)


# ---------------------------------------------------------------------------
# Bidirectional GRU layer built from the two kernels above.
# ---------------------------------------------------------------------------
def bigru_layer_pallas(x, p_fwd, p_bwd):
    """x: (B, T, D); params = (w_ih (3H,D), b_ih (3H,), w_hh (3H,H), b_hh (3H,))."""
    B, T, D = x.shape

    def run_dir(x_dir, p):
        w_ih, b_ih, w_hh, b_hh = p
        H = w_hh.shape[1]
        # Parallel (non-recurrent) part: precompute all input gates with the MXU.
        gx = linear_pallas(x_dir.reshape(B * T, D), w_ih.T, b_ih)     # (B*T, 3H)
        gx = gx.reshape(B, T, 3, H).transpose(1, 0, 2, 3)             # (T, B, 3, H)
        whh_stacked = w_hh.reshape(3, H, H).transpose(0, 2, 1)        # (3, H, H) = W_hh^T per gate
        bhh_stacked = b_hh.reshape(3, 1, H)
        out = gru_scan_pallas(gx, whh_stacked, bhh_stacked)           # (T, B, H)
        return out.transpose(1, 0, 2)                                 # (B, T, H)

    out_f = run_dir(x, p_fwd)
    out_b = jnp.flip(run_dir(jnp.flip(x, axis=1), p_bwd), axis=1)
    return jnp.concatenate([out_f, out_b], axis=-1)                   # (B, T, 2H)


# ---------------------------------------------------------------------------
# Full BiGRU_NACGT forward (eval mode: dropout = identity; apply_softmax=False).
# TODO(synk): the PyTorch default model_type='acgt' path falls through and
# returns None; we implement the meaningful 'nacgt' branch (4 output heads).
# ---------------------------------------------------------------------------
def bigru_nacgt_forward(x, params):
    out = bigru_layer_pallas(x, params["gru1_fwd"], params["gru1_bwd"])   # (B, T, 256)
    out = bigru_layer_pallas(out, params["gru2_fwd"], params["gru2_bwd"]) # (B, T, 384)
    B = out.shape[0]
    flat = out.reshape(B, -1)                                             # (B, T*384)
    h = linear_pallas(flat, params["fc1_w"].T, params["fc1_b"], activation="selu")
    heads = []
    for k in ("na", "nc", "ng", "nt"):
        h2 = linear_pallas(h, params[f"{k}_fc2_w"].T, params[f"{k}_fc2_b"],
                           activation="selu")
        h3 = linear_pallas(h2, params[f"{k}_fc3_w"].T, params[f"{k}_fc3_b"],
                           activation="selu")
        heads.append(h3)
    return tuple(heads)


# ---------------------------------------------------------------------------
# Pure-JAX reference (mirrors torch.nn.GRU + Linear + SELU, eval mode).
# ---------------------------------------------------------------------------
def _gru_dir_ref(x, w_ih, b_ih, w_hh, b_hh):
    B, T, D = x.shape
    H = w_hh.shape[1]

    def step(h, x_t):
        gx = x_t @ w_ih.T + b_ih
        gh = h @ w_hh.T + b_hh
        r = jax.nn.sigmoid(gx[:, :H] + gh[:, :H])
        z = jax.nn.sigmoid(gx[:, H:2 * H] + gh[:, H:2 * H])
        n = jnp.tanh(gx[:, 2 * H:] + r * gh[:, 2 * H:])
        h_new = (1.0 - z) * n + z * h
        return h_new, h_new

    _, ys = jax.lax.scan(step, jnp.zeros((B, H), x.dtype),
                         jnp.transpose(x, (1, 0, 2)))
    return jnp.transpose(ys, (1, 0, 2))


def _bigru_ref(x, p_fwd, p_bwd):
    out_f = _gru_dir_ref(x, *p_fwd)
    out_b = jnp.flip(_gru_dir_ref(jnp.flip(x, 1), *p_bwd), 1)
    return jnp.concatenate([out_f, out_b], -1)


def forward_ref(x, params):
    out = _bigru_ref(x, params["gru1_fwd"], params["gru1_bwd"])
    out = _bigru_ref(out, params["gru2_fwd"], params["gru2_bwd"])
    flat = out.reshape(out.shape[0], -1)
    h = jax.nn.selu(flat @ params["fc1_w"].T + params["fc1_b"])
    outs = []
    for k in ("na", "nc", "ng", "nt"):
        h2 = jax.nn.selu(h @ params[f"{k}_fc2_w"].T + params[f"{k}_fc2_b"])
        h3 = jax.nn.selu(h2 @ params[f"{k}_fc3_w"].T + params[f"{k}_fc3_b"])
        outs.append(h3)
    return tuple(outs)


# ---------------------------------------------------------------------------
# Deterministic parameter construction.
# ---------------------------------------------------------------------------
def make_params(key, C, T, H1=128, H2=192, FC=128, NC=2):
    keys = iter(jax.random.split(key, 64))

    def u(shape, scale=0.1):
        return jax.random.uniform(next(keys), shape, jnp.float32, -scale, scale)

    def gru_dir(D, H):
        return (u((3 * H, D)), u((3 * H,)), u((3 * H, H)), u((3 * H,)))

    p = {
        "gru1_fwd": gru_dir(C, H1), "gru1_bwd": gru_dir(C, H1),
        "gru2_fwd": gru_dir(2 * H1, H2), "gru2_bwd": gru_dir(2 * H1, H2),
        "fc1_w": u((FC, T * 2 * H2)), "fc1_b": u((FC,)),
    }
    for k in ("na", "nc", "ng", "nt"):
        p[f"{k}_fc2_w"] = u((FC, FC))
        p[f"{k}_fc2_b"] = u((FC,))
        p[f"{k}_fc3_w"] = u((NC, FC))
        p[f"{k}_fc3_b"] = u((NC,))
    return p


if __name__ == "__main__":
    # Small shapes consistent with the module: (batch, no_of_positions, channel_size).
    B, T, C = 2, 8, 18
    key = jax.random.PRNGKey(0)
    kx, kp = jax.random.split(key)
    x = jax.random.uniform(kx, (B, T, C), jnp.float32, -1.0, 1.0)
    params = make_params(kp, C, T)

    fwd = jax.jit(bigru_nacgt_forward)
    outs = jax.block_until_ready(fwd(x, params))

    refs = forward_ref(x, params)
    for o, r in zip(outs, refs):
        np.testing.assert_allclose(np.asarray(o), np.asarray(r),
                                   rtol=5e-2, atol=5e-2)

    print("KERNEL_OK")
</pallas_src>

<mosaic_0001>
module attributes {stable_mosaic.version = 11 : i64} {
  func.func @_linear_kernel(%arg0: i32, %arg1: memref<16x18xf32, #tpu.memory_space<vmem>>, %arg2: memref<18x384xf32, #tpu.memory_space<vmem>>, %arg3: memref<1x384xf32, #tpu.memory_space<vmem>>, %arg4: memref<16x384xf32, #tpu.memory_space<vmem>>) attributes {dimension_semantics = [#tpu.dimension_semantics<parallel>], iteration_bounds = array<i64: 1>, scalar_prefetch = 0 : i64, scratch_operands = 0 : i64, tpu.core_type = #tpu.core_type<tc>, window_params = [{transform_indices = @transform_0, window_bounds = array<i64: 16, 18>}, {pipeline_mode = #tpu.pipeline_mode<synchronous>, transform_indices = @transform_1, window_bounds = array<i64: 18, 384>}, {pipeline_mode = #tpu.pipeline_mode<synchronous>, transform_indices = @transform_2, window_bounds = array<i64: 1, 384>}, {transform_indices = @transform_3, window_bounds = array<i64: 16, 384>}]} {
    %c0 = arith.constant 0 : index
    %c0_0 = arith.constant 0 : index
    %0 = vector.load %arg1[%c0, %c0_0] : memref<16x18xf32, #tpu.memory_space<vmem>>, vector<16x18xf32>
    %c0_1 = arith.constant 0 : index
    %c0_2 = arith.constant 0 : index
    %1 = vector.load %arg2[%c0_1, %c0_2] : memref<18x384xf32, #tpu.memory_space<vmem>>, vector<18x384xf32>
    %cst = arith.constant dense<0.000000e+00> : vector<16x384xf32>
    %2 = tpu.matmul %0, %1, %cst {dimension_numbers = #tpu.dot_dimension_numbers<[1], [0], [0], [1], [0, 0, 1, 1], [], []>} : vector<16x18xf32>, vector<18x384xf32>, vector<16x384xf32> -> vector<16x384xf32>
    %c0_3 = arith.constant 0 : index
    %c0_4 = arith.constant 0 : index
    %3 = vector.load %arg3[%c0_3, %c0_4] : memref<1x384xf32, #tpu.memory_space<vmem>>, vector<1x384xf32>
    %4 = vector.broadcast %3 : vector<1x384xf32> to vector<16x384xf32>
    %5 = arith.addf %2, %4 : vector<16x384xf32>
    %c0_5 = arith.constant 0 : index
    %c0_6 = arith.constant 0 : index
    %6 = vector.load %arg4[%c0_5, %c0_6] : memref<16x384xf32, #tpu.memory_space<vmem>>, vector<16x384xf32>
    tpu.vector_store %arg4[%c0_5, %c0_6], %5 {strides = array<i32>} : memref<16x384xf32, #tpu.memory_space<vmem>>, vector<16x384xf32>,
    return
  }
  func.func @transform_0(%arg0: i32) -> (i32, i32) {
    %c0_i32 = arith.constant 0 : i32
    %c0_i32_0 = arith.constant 0 : i32
    return %arg0, %c0_i32 : i32, i32
  }
  func.func @transform_1(%arg0: i32) -> (i32, i32) {
    %c0_i32 = arith.constant 0 : i32
    %c0_i32_0 = arith.constant 0 : i32
    %c0_i32_1 = arith.constant 0 : i32
    return %c0_i32, %c0_i32_0 : i32, i32
  }
  func.func @transform_2(%arg0: i32) -> (i32, i32) {
    %c0_i32 = arith.constant 0 : i32
    %c0_i32_0 = arith.constant 0 : i32
    %c0_i32_1 = arith.constant 0 : i32
    return %c0_i32, %c0_i32_0 : i32, i32
  }
  func.func @transform_3(%arg0: i32) -> (i32, i32) {
    %c0_i32 = arith.constant 0 : i32
    %c0_i32_0 = arith.constant 0 : i32
    return %arg0, %c0_i32 : i32, i32
  }
}

module attributes {stable_mosaic.version = 11 : i64} {
  func.func @_gru_scan_kernel(%arg0: i32, %arg1: memref<1x2x3x128xf32, #tpu.memory_space<vmem>>, %arg2: memref<3x128x128xf32, #tpu.memory_space<vmem>>, %arg3: memref<3x1x128xf32, #tpu.memory_space<vmem>>, %arg4: memref<1x2x128xf32, #tpu.memory_space<vmem>>, %arg5: memref<2x128xf32, #tpu.memory_space<vmem>>) attributes {dimension_semantics = [#tpu.dimension_semantics<arbitrary>], iteration_bounds = array<i64: 8>, scalar_prefetch = 0 : i64, scratch_operands = 1 : i64, tpu.core_type = #tpu.core_type<tc>, window_params = [{transform_indices = @transform_0, window_bounds = array<i64: 1, 2, 3, 128>}, {pipeline_mode = #tpu.pipeline_mode<synchronous>, transform_indices = @transform_1, window_bounds = array<i64: 3, 128, 128>}, {pipeline_mode = #tpu.pipeline_mode<synchronous>, transform_indices = @transform_2, window_bounds = array<i64: 3, 1, 128>}, {transform_indices = @transform_3, window_bounds = array<i64: 1, 2, 128>}]} {
    %c0_i32 = arith.constant 0 : i32
    %0 = arith.cmpi eq, %arg0, %c0_i32 : i32
    %1 = arith.extui %0 : i1 to i32
    %c0_i32_0 = arith.constant 0 : i32
    %2 = arith.cmpi ne, %1, %c0_i32_0 : i32
    scf.if %2 {
      %cst_44 = arith.constant 0.000000e+00 : f32
      %59 = vector.broadcast %cst_44 : f32 to vector<2x128xf32>
      %c0_45 = arith.constant 0 : index
      %c0_46 = arith.constant 0 : index
      %60 = vector.load %arg5[%c0_45, %c0_46] : memref<2x128xf32, #tpu.memory_space<vmem>>, vector<2x128xf32>
      tpu.vector_store %arg5[%c0_45, %c0_46], %59 {strides = array<i32>} : memref<2x128xf32, #tpu.memory_space<vmem>>, vector<2x128xf32>,
    } else {
    }
    %c0 = arith.constant 0 : index
    %c0_1 = arith.constant 0 : index
    %3 = vector.load %arg5[%c0, %c0_1] : memref<2x128xf32, #tpu.memory_space<vmem>>, vector<2x128xf32>
    %c0_2 = arith.constant 0 : index
    %c0_3 = arith.constant 0 : index
    %c0_4 = arith.constant 0 : index
    %c0_5 = arith.constant 0 : index
    %4 = vector.load %arg1[%c0_2, %c0_3, %c0_4, %c0_5] : memref<1x2x3x128xf32, #tpu.memory_space<vmem>>, vector<1x2x1x128xf32>
    %5 = vector.shape_cast %4 : vector<1x2x1x128xf32> to vector<2x128xf32>
    %c0_6 = arith.constant 0 : index
    %c0_7 = arith.constant 0 : index
    %c1 = arith.constant 1 : index
    %c0_8 = arith.constant 0 : index
    %6 = vector.load %arg1[%c0_6, %c0_7, %c1, %c0_8] : memref<1x2x3x128xf32, #tpu.memory_space<vmem>>, vector<1x2x1x128xf32>
    %7 = vector.shape_cast %6 : vector<1x2x1x128xf32> to vector<2x128xf32>
    %c0_9 = arith.constant 0 : index
    %c0_10 = arith.constant 0 : index
    %c2 = arith.constant 2 : index
    %c0_11 = arith.constant 0 : index
    %8 = vector.load %arg1[%c0_9, %c0_10, %c2, %c0_11] : memref<1x2x3x128xf32, #tpu.memory_space<vmem>>, vector<1x2x1x128xf32>
    %9 = vector.shape_cast %8 : vector<1x2x1x128xf32> to vector<2x128xf32>
    %c0_12 = arith.constant 0 : index
    %c0_13 = arith.constant 0 : index
    %c0_14 = arith.constant 0 : index
    %10 = vector.load %arg2[%c0_12, %c0_13, %c0_14] : memref<3x128x128xf32, #tpu.memory_space<vmem>>, vector<1x128x128xf32>
    %11 = vector.shape_cast %10 : vector<1x128x128xf32> to vector<128x128xf32>
    %cst = arith.constant dense<0.000000e+00> : vector<2x128xf32>
    %12 = tpu.matmul %3, %11, %cst {dimension_numbers = #tpu.dot_dimension_numbers<[1], [0], [0], [1], [0, 0, 1, 1], [], []>} : vector<2x128xf32>, vector<128x128xf32>, vector<2x128xf32> -> vector<2x128xf32>
    %c0_15 = arith.constant 0 : index
    %c0_16 = arith.constant 0 : index
    %c0_17 = arith.constant 0 : index
    %13 = vector.load %arg3[%c0_15, %c0_16, %c0_17] : memref<3x1x128xf32, #tpu.memory_space<vmem>>, vector<1x1x128xf32>
    %14 = vector.shape_cast %13 : vector<1x1x128xf32> to vector<1x128xf32>
    %15 = vector.broadcast %14 : vector<1x128xf32> to vector<2x128xf32>
    %16 = arith.addf %12, %15 : vector<2x128xf32>
    %c1_18 = arith.constant 1 : index
    %c0_19 = arith.constant 0 : index
    %c0_20 = arith.constant 0 : index
    %17 = vector.load %arg2[%c1_18, %c0_19, %c0_20] : memref<3x128x128xf32, #tpu.memory_space<vmem>>, vector<1x128x128xf32>
    %18 = vector.shape_cast %17 : vector<1x128x128xf32> to vector<128x128xf32>
    %cst_21 = arith.constant dense<0.000000e+00> : vector<2x128xf32>
    %19 = tpu.matmul %3, %18, %cst_21 {dimension_numbers = #tpu.dot_dimension_numbers<[1], [0], [0], [1], [0, 0, 1, 1], [], []>} : vector<2x128xf32>, vector<128x128xf32>, vector<2x128xf32> -> vector<2x128xf32>
    %c1_22 = arith.constant 1 : index
    %c0_23 = arith.constant 0 : index
    %c0_24 = arith.constant 0 : index
    %20 = vector.load %arg3[%c1_22, %c0_23, %c0_24] : memref<3x1x128xf32, #tpu.memory_space<vmem>>, vector<1x1x128xf32>
    %21 = vector.shape_cast %20 : vector<1x1x128xf32> to vector<1x128xf32>
    %22 = vector.broadcast %21 : vector<1x128xf32> to vector<2x128xf32>
    %23 = arith.addf %19, %22 : vector<2x128xf32>
    %c2_25 = arith.constant 2 : index
    %c0_26 = arith.constant 0 : index
    %c0_27 = arith.constant 0 : index
    %24 = vector.load %arg2[%c2_25, %c0_26, %c0_27] : memref<3x128x128xf32, #tpu.memory_space<vmem>>, vector<1x128x128xf32>
    %25 = vector.shape_cast %24 : vector<1x128x128xf32> to vector<128x128xf32>
    %cst_28 = arith.constant dense<0.000000e+00> : vector<2x128xf32>
    %26 = tpu.matmul %3, %25, %cst_28 {dimension_numbers = #tpu.dot_dimension_numbers<[1], [0], [0], [1], [0, 0, 1, 1], [], []>} : vector<2x128xf32>, vector<128x128xf32>, vector<2x128xf32> -> vector<2x128xf32>
    %c2_29 = arith.constant 2 : index
    %c0_30 = arith.constant 0 : index
    %c0_31 = arith.constant 0 : index
    %27 = vector.load %arg3[%c2_29, %c0_30, %c0_31] : memref<3x1x128xf32, #tpu.memory_space<vmem>>, vector<1x1x128xf32>
    %28 = vector.shape_cast %27 : vector<1x1x128xf32> to vector<1x128xf32>
    %29 = vector.broadcast %28 : vector<1x128xf32> to vector<2x128xf32>
    %30 = arith.addf %26, %29 : vector<2x128xf32>
    %31 = arith.addf %5, %16 : vector<2x128xf32>
    %cst_32 = arith.constant 0.000000e+00 : f32
    %32 = vector.broadcast %cst_32 : f32 to vector<2x128xf32>
    %33 = arith.subf %32, %31 : vector<2x128xf32>
    %34 = math.exp %33 : vector<2x128xf32>
    %cst_33 = arith.constant 1.000000e+00 : f32
    %35 = vector.broadcast %cst_33 : f32 to vector<2x128xf32>
    %36 = arith.addf %35, %34 : vector<2x128xf32>
    %cst_34 = arith.constant 1.000000e+00 : f32
    %37 = vector.broadcast %cst_34 : f32 to vector<2x128xf32>
    %38 = arith.divf %37, %36 : vector<2x128xf32>
    %39 = arith.addf %7, %23 : vector<2x128xf32>
    %cst_35 = arith.constant 0.000000e+00 : f32
    %40 = vector.broadcast %cst_35 : f32 to vector<2x128xf32>
    %41 = arith.subf %40, %39 : vector<2x128xf32>
    %42 = math.exp %41 : vector<2x128xf32>
    %cst_36 = arith.constant 1.000000e+00 : f32
    %43 = vector.broadcast %cst_36 : f32 to vector<2x128xf32>
    %44 = arith.addf %43, %42 : vector<2x128xf32>
    %cst_37 = arith.constant 1.000000e+00 : f32
    %45 = vector.broadcast %cst_37 : f32 to vector<2x128xf32>
    %46 = arith.divf %45, %44 : vector<2x128xf32>
    %47 = arith.mulf %38, %30 : vector<2x128xf32>
    %48 = arith.addf %9, %47 : vector<2x128xf32>
    %49 = math.tanh %48 : vector<2x128xf32>
    %cst_38 = arith.constant 1.000000e+00 : f32
    %50 = vector.broadcast %cst_38 : f32 to vector<2x128xf32>
    %51 = arith.subf %50, %46 : vector<2x128xf32>
    %52 = arith.mulf %51, %49 : vector<2x128xf32>
    %53 = arith.mulf %46, %3 : vector<2x128xf32>
    %54 = arith.addf %52, %53 : vector<2x128xf32>
    %c0_39 = arith.constant 0 : index
    %c0_40 = arith.constant 0 : index
    %55 = vector.load %arg5[%c0_39, %c0_40] : memref<2x128xf32, #tpu.memory_space<vmem>>, vector<2x128xf32>
    tpu.vector_store %arg5[%c0_39, %c0_40], %54 {strides = array<i32>} : memref<2x128xf32, #tpu.memory_space<vmem>>, vector<2x128xf32>,
    %c0_41 = arith.constant 0 : index
    %c0_42 = arith.constant 0 : index
    %c0_43 = arith.constant 0 : index
    %56 = vector.load %arg4[%c0_41, %c0_42, %c0_43] : memref<1x2x128xf32, #tpu.memory_space<vmem>>, vector<1x2x128xf32>
    %57 = vector.shape_cast %56 : vector<1x2x128xf32> to vector<2x128xf32>
    %58 = vector.shape_cast %54 : vector<2x128xf32> to vector<1x2x128xf32>
    tpu.vector_store %arg4[%c0_41, %c0_42, %c0_43], %58 {strides = array<i32>} : memref<1x2x128xf32, #tpu.memory_space<vmem>>, vector<1x2x128xf32>,
    return
  }
  func.func @transform_0(%arg0: i32) -> (i32, i32, i32, i32) {
    %c0_i32 = arith.constant 0 : i32
    %c0_i32_0 = arith.constant 0 : i32
    %c0_i32_1 = arith.constant 0 : i32
    %c0_i32_2 = arith.constant 0 : i32
    return %arg0, %c0_i32, %c0_i32_0, %c0_i32_1 : i32, i32, i32, i32
  }
  func.func @transform_1(%arg0: i32) -> (i32, i32, i32) {
    %c0_i32 = arith.constant 0 : i32
    %c0_i32_0 = arith.constant 0 : i32
    %c0_i32_1 = arith.constant 0 : i32
    %c0_i32_2 = arith.constant 0 : i32
    return %c0_i32, %c0_i32_0, %c0_i32_1 : i32, i32, i32
  }
  func.func @transform_2(%arg0: i32) -> (i32, i32, i32) {
    %c0_i32 = arith.constant 0 : i32
    %c0_i32_0 = arith.constant 0 : i32
    %c0_i32_1 = arith.constant 0 : i32
    %c0_i32_2 = arith.constant 0 : i32
    return %c0_i32, %c0_i32_0, %c0_i32_1 : i32, i32, i32
  }
  func.func @transform_3(%arg0: i32) -> (i32, i32, i32) {
    %c0_i32 = arith.constant 0 : i32
    %c0_i32_0 = arith.constant 0 : i32
    %c0_i32_1 = arith.constant 0 : i32
    return %arg0, %c0_i32, %c0_i32_0 : i32, i32, i32
  }
}

module attributes {stable_mosaic.version = 11 : i64} {
  func.func @_linear_kernel(%arg0: i32, %arg1: memref<16x18xf32, #tpu.memory_space<vmem>>, %arg2: memref<18x384xf32, #tpu.memory_space<vmem>>, %arg3: memref<1x384xf32, #tpu.memory_space<vmem>>, %arg4: memref<16x384xf32, #tpu.memory_space<vmem>>) attributes {dimension_semantics = [#tpu.dimension_semantics<parallel>], iteration_bounds = array<i64: 1>, scalar_prefetch = 0 : i64, scratch_operands = 0 : i64, tpu.core_type = #tpu.core_type<tc>, window_params = [{transform_indices = @transform_0, window_bounds = array<i64: 16, 18>}, {pipeline_mode = #tpu.pipeline_mode<synchronous>, transform_indices = @transform_1, window_bounds = array<i64: 18, 384>}, {pipeline_mode = #tpu.pipeline_mode<synchronous>, transform_indices = @transform_2, window_bounds = array<i64: 1, 384>}, {transform_indices = @transform_3, window_bounds = array<i64: 16, 384>}]} {
    %c0 = arith.constant 0 : index
    %c0_0 = arith.constant 0 : index
    %0 = vector.load %arg1[%c0, %c0_0] : memref<16x18xf32, #tpu.memory_space<vmem>>, vector<16x18xf32>
    %c0_1 = arith.constant 0 : index
    %c0_2 = arith.constant 0 : index
    %1 = vector.load %arg2[%c0_1, %c0_2] : memref<18x384xf32, #tpu.memory_space<vmem>>, vector<18x384xf32>
    %cst = arith.constant dense<0.000000e+00> : vector<16x384xf32>
    %2 = tpu.matmul %0, %1, %cst {dimension_numbers = #tpu.dot_dimension_numbers<[1], [0], [0], [1], [0, 0, 1, 1], [], []>} : vector<16x18xf32>, vector<18x384xf32>, vector<16x384xf32> -> vector<16x384xf32>
    %c0_3 = arith.constant 0 : index
    %c0_4 = arith.constant 0 : index
    %3 = vector.load %arg3[%c0_3, %c0_4] : memref<1x384xf32, #tpu.memory_space<vmem>>, vector<1x384xf32>
    %4 = vector.broadcast %3 : vector<1x384xf32> to vector<16x384xf32>
    %5 = arith.addf %2, %4 : vector<16x384xf32>
    %c0_5 = arith.constant 0 : index
    %c0_6 = arith.constant 0 : index
    %6 = vector.load %arg4[%c0_5, %c0_6] : memref<16x384xf32, #tpu.memory_space<vmem>>, vector<16x384xf32>
    tpu.vector_store %arg4[%c0_5, %c0_6], %5 {strides = array<i32>} : memref<16x384xf32, #tpu.memory_space<vmem>>, vector<16x384xf32>,
    return
  }
  func.func @transform_0(%arg0: i32) -> (i32, i32) {
    %c0_i32 = arith.constant 0 : i32
    %c0_i32_0 = arith.constant 0 : i32
    return %arg0, %c0_i32 : i32, i32
  }
  func.func @transform_1(%arg0: i32) -> (i32, i32) {
    %c0_i32 = arith.constant 0 : i32
    %c0_i32_0 = arith.constant 0 : i32
    %c0_i32_1 = arith.constant 0 : i32
    return %c0_i32, %c0_i32_0 : i32, i32
  }
  func.func @transform_2(%arg0: i32) -> (i32, i32) {
    %c0_i32 = arith.constant 0 : i32
    %c0_i32_0 = arith.constant 0 : i32
    %c0_i32_1 = arith.constant 0 : i32
    return %c0_i32, %c0_i32_0 : i32, i32
  }
  func.func @transform_3(%arg0: i32) -> (i32, i32) {
    %c0_i32 = arith.constant 0 : i32
    %c0_i32_0 = arith.constant 0 : i32
    return %arg0, %c0_i32 : i32, i32
  }
}

module attributes {stable_mosaic.version = 11 : i64} {
  func.func @_linear_kernel(%arg0: i32, %arg1: memref<16x256xf32, #tpu.memory_space<vmem>>, %arg2: memref<256x576xf32, #tpu.memory_space<vmem>>, %arg3: memref<1x576xf32, #tpu.memory_space<vmem>>, %arg4: memref<16x576xf32, #tpu.memory_space<vmem>>) attributes {dimension_semantics = [#tpu.dimension_semantics<parallel>], iteration_bounds = array<i64: 1>, scalar_prefetch = 0 : i64, scratch_operands = 0 : i64, tpu.core_type = #tpu.core_type<tc>, window_params = [{transform_indices = @transform_0, window_bounds = array<i64: 16, 256>}, {pipeline_mode = #tpu.pipeline_mode<synchronous>, transform_indices = @transform_1, window_bounds = array<i64: 256, 576>}, {pipeline_mode = #tpu.pipeline_mode<synchronous>, transform_indices = @transform_2, window_bounds = array<i64: 1, 576>}, {transform_indices = @transform_3, window_bounds = array<i64: 16, 576>}]} {
    %c0 = arith.constant 0 : index
    %c0_0 = arith.constant 0 : index
    %0 = vector.load %arg1[%c0, %c0_0] : memref<16x256xf32, #tpu.memory_space<vmem>>, vector<16x256xf32>
    %c0_1 = arith.constant 0 : index
    %c0_2 = arith.constant 0 : index
    %1 = vector.load %arg2[%c0_1, %c0_2] : memref<256x576xf32, #tpu.memory_space<vmem>>, vector<256x576xf32>
    %cst = arith.constant dense<0.000000e+00> : vector<16x576xf32>
    %2 = tpu.matmul %0, %1, %cst {dimension_numbers = #tpu.dot_dimension_numbers<[1], [0], [0], [1], [0, 0, 1, 1], [], []>} : vector<16x256xf32>, vector<256x576xf32>, vector<16x576xf32> -> vector<16x576xf32>
    %c0_3 = arith.constant 0 : index
    %c0_4 = arith.constant 0 : index
    %3 = vector.load %arg3[%c0_3, %c0_4] : memref<1x576xf32, #tpu.memory_space<vmem>>, vector<1x576xf32>
    %4 = vector.broadcast %3 : vector<1x576xf32> to vector<16x576xf32>
    %5 = arith.addf %2, %4 : vector<16x576xf32>
    %c0_5 = arith.constant 0 : index
    %c0_6 = arith.constant 0 : index
    %6 = vector.load %arg4[%c0_5, %c0_6] : memref<16x576xf32, #tpu.memory_space<vmem>>, vector<16x576xf32>
    tpu.vector_store %arg4[%c0_5, %c0_6], %5 {strides = array<i32>} : memref<16x576xf32, #tpu.memory_space<vmem>>, vector<16x576xf32>,
    return
  }
  func.func @transform_0(%arg0: i32) -> (i32, i32) {
    %c0_i32 = arith.constant 0 : i32
    %c0_i32_0 = arith.constant 0 : i32
    return %arg0, %c0_i32 : i32, i32
  }
  func.func @transform_1(%arg0: i32) -> (i32, i32) {
    %c0_i32 = arith.constant 0 : i32
    %c0_i32_0 = arith.constant 0 : i32
    %c0_i32_1 = arith.constant 0 : i32
    return %c0_i32, %c0_i32_0 : i32, i32
  }
  func.func @transform_2(%arg0: i32) -> (i32, i32) {
    %c0_i32 = arith.constant 0 : i32
    %c0_i32_0 = arith.constant 0 : i32
    %c0_i32_1 = arith.constant 0 : i32
    return %c0_i32, %c0_i32_0 : i32, i32
  }
  func.func @transform_3(%arg0: i32) -> (i32, i32) {
    %c0_i32 = arith.constant 0 : i32
    %c0_i32_0 = arith.constant 0 : i32
    return %arg0, %c0_i32 : i32, i32
  }
}

module attributes {stable_mosaic.version = 11 : i64} {
  func.func @_gru_scan_kernel(%arg0: i32, %arg1: memref<1x2x3x192xf32, #tpu.memory_space<vmem>>, %arg2: memref<3x192x192xf32, #tpu.memory_space<vmem>>, %arg3: memref<3x1x192xf32, #tpu.memory_space<vmem>>, %arg4: memref<1x2x192xf32, #tpu.memory_space<vmem>>, %arg5: memref<2x192xf32, #tpu.memory_space<vmem>>) attributes {dimension_semantics = [#tpu.dimension_semantics<arbitrary>], iteration_bounds = array<i64: 8>, scalar_prefetch = 0 : i64, scratch_operands = 1 : i64, tpu.core_type = #tpu.core_type<tc>, window_params = [{transform_indices = @transform_0, window_bounds = array<i64: 1, 2, 3, 192>}, {pipeline_mode = #tpu.pipeline_mode<synchronous>, transform_indices = @transform_1, window_bounds = array<i64: 3, 192, 192>}, {pipeline_mode = #tpu.pipeline_mode<synchronous>, transform_indices = @transform_2, window_bounds = array<i64: 3, 1, 192>}, {transform_indices = @transform_3, window_bounds = array<i64: 1, 2, 192>}]} {
    %c0_i32 = arith.constant 0 : i32
    %0 = arith.cmpi eq, %arg0, %c0_i32 : i32
    %1 = arith.extui %0 : i1 to i32
    %c0_i32_0 = arith.constant 0 : i32
    %2 = arith.cmpi ne, %1, %c0_i32_0 : i32
    scf.if %2 {
      %cst_44 = arith.constant 0.000000e+00 : f32
      %59 = vector.broadcast %cst_44 : f32 to vector<2x192xf32>
      %c0_45 = arith.constant 0 : index
      %c0_46 = arith.constant 0 : index
      %60 = vector.load %arg5[%c0_45, %c0_46] : memref<2x192xf32, #tpu.memory_space<vmem>>, vector<2x192xf32>
      tpu.vector_store %arg5[%c0_45, %c0_46], %59 {strides = array<i32>} : memref<2x192xf32, #tpu.memory_space<vmem>>, vector<2x192xf32>,
    } else {
    }
    %c0 = arith.constant 0 : index
    %c0_1 = arith.constant 0 : index
    %3 = vector.load %arg5[%c0, %c0_1] : memref<2x192xf32, #tpu.memory_space<vmem>>, vector<2x192xf32>
    %c0_2 = arith.constant 0 : index
    %c0_3 = arith.constant 0 : index
    %c0_4 = arith.constant 0 : index
    %c0_5 = arith.constant 0 : index
    %4 = vector.load %arg1[%c0_2, %c0_3, %c0_4, %c0_5] : memref<1x2x3x192xf32, #tpu.memory_space<vmem>>, vector<1x2x1x192xf32>
    %5 = vector.shape_cast %4 : vector<1x2x1x192xf32> to vector<2x192xf32>
    %c0_6 = arith.constant 0 : index
    %c0_7 = arith.constant 0 : index
    %c1 = arith.constant 1 : index
    %c0_8 = arith.constant 0 : index
    %6 = vector.load %arg1[%c0_6, %c0_7, %c1, %c0_8] : memref<1x2x3x192xf32, #tpu.memory_space<vmem>>, vector<1x2x1x192xf32>
    %7 = vector.shape_cast %6 : vector<1x2x1x192xf32> to vector<2x192xf32>
    %c0_9 = arith.constant 0 : index
    %c0_10 = arith.constant 0 : index
    %c2 = arith.constant 2 : index
    %c0_11 = arith.constant 0 : index
    %8 = vector.load %arg1[%c0_9, %c0_10, %c2, %c0_11] : memref<1x2x3x192xf32, #tpu.memory_space<vmem>>, vector<1x2x1x192xf32>
    %9 = vector.shape_cast %8 : vector<1x2x1x192xf32> to vector<2x192xf32>
    %c0_12 = arith.constant 0 : index
    %c0_13 = arith.constant 0 : index
    %c0_14 = arith.constant 0 : index
    %10 = vector.load %arg2[%c0_12, %c0_13, %c0_14] : memref<3x192x192xf32, #tpu.memory_space<vmem>>, vector<1x192x192xf32>
    %11 = vector.shape_cast %10 : vector<1x192x192xf32> to vector<192x192xf32>
    %cst = arith.constant dense<0.000000e+00> : vector<2x192xf32>
    %12 = tpu.matmul %3, %11, %cst {dimension_numbers = #tpu.dot_dimension_numbers<[1], [0], [0], [1], [0, 0, 1, 1], [], []>} : vector<2x192xf32>, vector<192x192xf32>, vector<2x192xf32> -> vector<2x192xf32>
    %c0_15 = arith.constant 0 : index
    %c0_16 = arith.constant 0 : index
    %c0_17 = arith.constant 0 : index
    %13 = vector.load %arg3[%c0_15, %c0_16, %c0_17] : memref<3x1x192xf32, #tpu.memory_space<vmem>>, vector<1x1x192xf32>
    %14 = vector.shape_cast %13 : vector<1x1x192xf32> to vector<1x192xf32>
    %15 = vector.broadcast %14 : vector<1x192xf32> to vector<2x192xf32>
    %16 = arith.addf %12, %15 : vector<2x192xf32>
    %c1_18 = arith.constant 1 : index
    %c0_19 = arith.constant 0 : index
    %c0_20 = arith.constant 0 : index
    %17 = vector.load %arg2[%c1_18, %c0_19, %c0_20] : memref<3x192x192xf32, #tpu.memory_space<vmem>>, vector<1x192x192xf32>
    %18 = vector.shape_cast %17 : vector<1x192x192xf32> to vector<192x192xf32>
    %cst_21 = arith.constant dense<0.000000e+00> : vector<2x192xf32>
    %19 = tpu.matmul %3, %18, %cst_21 {dimension_numbers = #tpu.dot_dimension_numbers<[1], [0], [0], [1], [0, 0, 1, 1], [], []>} : vector<2x192xf32>, vector<192x192xf32>, vector<2x192xf32> -> vector<2x192xf32>
    %c1_22 = arith.constant 1 : index
    %c0_23 = arith.constant 0 : index
    %c0_24 = arith.constant 0 : index
    %20 = vector.load %arg3[%c1_22, %c0_23, %c0_24] : memref<3x1x192xf32, #tpu.memory_space<vmem>>, vector<1x1x192xf32>
    %21 = vector.shape_cast %20 : vector<1x1x192xf32> to vector<1x192xf32>
    %22 = vector.broadcast %21 : vector<1x192xf32> to vector<2x192xf32>
    %23 = arith.addf %19, %22 : vector<2x192xf32>
    %c2_25 = arith.constant 2 : index
    %c0_26 = arith.constant 0 : index
    %c0_27 = arith.constant 0 : index
    %24 = vector.load %arg2[%c2_25, %c0_26, %c0_27] : memref<3x192x192xf32, #tpu.memory_space<vmem>>, vector<1x192x192xf32>
    %25 = vector.shape_cast %24 : vector<1x192x192xf32> to vector<192x192xf32>
    %cst_28 = arith.constant dense<0.000000e+00> : vector<2x192xf32>
    %26 = tpu.matmul %3, %25, %cst_28 {dimension_numbers = #tpu.dot_dimension_numbers<[1], [0], [0], [1], [0, 0, 1, 1], [], []>} : vector<2x192xf32>, vector<192x192xf32>, vector<2x192xf32> -> vector<2x192xf32>
    %c2_29 = arith.constant 2 : index
    %c0_30 = arith.constant 0 : index
    %c0_31 = arith.constant 0 : index
    %27 = vector.load %arg3[%c2_29, %c0_30, %c0_31] : memref<3x1x192xf32, #tpu.memory_space<vmem>>, vector<1x1x192xf32>
    %28 = vector.shape_cast %27 : vector<1x1x192xf32> to vector<1x192xf32>
    %29 = vector.broadcast %28 : vector<1x192xf32> to vector<2x192xf32>
    %30 = arith.addf %26, %29 : vector<2x192xf32>
    %31 = arith.addf %5, %16 : vector<2x192xf32>
    %cst_32 = arith.constant 0.000000e+00 : f32
    %32 = vector.broadcast %cst_32 : f32 to vector<2x192xf32>
    %33 = arith.subf %32, %31 : vector<2x192xf32>
    %34 = math.exp %33 : vector<2x192xf32>
    %cst_33 = arith.constant 1.000000e+00 : f32
    %35 = vector.broadcast %cst_33 : f32 to vector<2x192xf32>
    %36 = arith.addf %35, %34 : vector<2x192xf32>
    %cst_34 = arith.constant 1.000000e+00 : f32
    %37 = vector.broadcast %cst_34 : f32 to vector<2x192xf32>
    %38 = arith.divf %37, %36 : vector<2x192xf32>
    %39 = arith.addf %7, %23 : vector<2x192xf32>
    %cst_35 = arith.constant 0.000000e+00 : f32
    %40 = vector.broadcast %cst_35 : f32 to vector<2x192xf32>
    %41 = arith.subf %40, %39 : vector<2x192xf32>
    %42 = math.exp %41 : vector<2x192xf32>
    %cst_36 = arith.constant 1.000000e+00 : f32
    %43 = vector.broadcast %cst_36 : f32 to vector<2x192xf32>
    %44 = arith.addf %43, %42 : vector<2x192xf32>
    %cst_37 = arith.constant 1.000000e+00 : f32
    %45 = vector.broadcast %cst_37 : f32 to vector<2x192xf32>
    %46 = arith.divf %45, %44 : vector<2x192xf32>
    %47 = arith.mulf %38, %30 : vector<2x192xf32>
    %48 = arith.addf %9, %47 : vector<2x192xf32>
    %49 = math.tanh %48 : vector<2x192xf32>
    %cst_38 = arith.constant 1.000000e+00 : f32
    %50 = vector.broadcast %cst_38 : f32 to vector<2x192xf32>
    %51 = arith.subf %50, %46 : vector<2x192xf32>
    %52 = arith.mulf %51, %49 : vector<2x192xf32>
    %53 = arith.mulf %46, %3 : vector<2x192xf32>
    %54 = arith.addf %52, %53 : vector<2x192xf32>
    %c0_39 = arith.constant 0 : index
    %c0_40 = arith.constant 0 : index
    %55 = vector.load %arg5[%c0_39, %c0_40] : memref<2x192xf32, #tpu.memory_space<vmem>>, vector<2x192xf32>
    tpu.vector_store %arg5[%c0_39, %c0_40], %54 {strides = array<i32>} : memref<2x192xf32, #tpu.memory_space<vmem>>, vector<2x192xf32>,
    %c0_41 = arith.constant 0 : index
    %c0_42 = arith.constant 0 : index
    %c0_43 = arith.constant 0 : index
    %56 = vector.load %arg4[%c0_41, %c0_42, %c0_43] : memref<1x2x192xf32, #tpu.memory_space<vmem>>, vector<1x2x192xf32>
    %57 = vector.shape_cast %56 : vector<1x2x192xf32> to vector<2x192xf32>
    %58 = vector.shape_cast %54 : vector<2x192xf32> to vector<1x2x192xf32>
    tpu.vector_store %arg4[%c0_41, %c0_42, %c0_43], %58 {strides = array<i32>} : memref<1x2x192xf32, #tpu.memory_space<vmem>>, vector<1x2x192xf32>,
    return
  }
  func.func @transform_0(%arg0: i32) -> (i32, i32, i32, i32) {
    %c0_i32 = arith.constant 0 : i32
    %c0_i32_0 = arith.constant 0 : i32
    %c0_i32_1 = arith.constant 0 : i32
    %c0_i32_2 = arith.constant 0 : i32
    return %arg0, %c0_i32, %c0_i32_0, %c0_i32_1 : i32, i32, i32, i32
  }
  func.func @transform_1(%arg0: i32) -> (i32, i32, i32) {
    %c0_i32 = arith.constant 0 : i32
    %c0_i32_0 = arith.constant 0 : i32
    %c0_i32_1 = arith.constant 0 : i32
    %c0_i32_2 = arith.constant 0 : i32
    return %c0_i32, %c0_i32_0, %c0_i32_1 : i32, i32, i32
  }
  func.func @transform_2(%arg0: i32) -> (i32, i32, i32) {
    %c0_i32 = arith.constant 0 : i32
    %c0_i32_0 = arith.constant 0 : i32
    %c0_i32_1 = arith.constant 0 : i32
    %c0_i32_2 = arith.constant 0 : i32
    return %c0_i32, %c0_i32_0, %c0_i32_1 : i32, i32, i32
  }
  func.func @transform_3(%arg0: i32) -> (i32, i32, i32) {
    %c0_i32 = arith.constant 0 : i32
    %c0_i32_0 = arith.constant 0 : i32
    %c0_i32_1 = arith.constant 0 : i32
    return %arg0, %c0_i32, %c0_i32_0 : i32, i32, i32
  }
}

module attributes {stable_mosaic.version = 11 : i64} {
  func.func @_linear_kernel(%arg0: i32, %arg1: memref<8x3072xf32, #tpu.memory_space<vmem>>, %arg2: memref<3072x128xf32, #tpu.memory_space<vmem>>, %arg3: memref<1x128xf32, #tpu.memory_space<vmem>>, %arg4: memref<8x128xf32, #tpu.memory_space<vmem>>) attributes {dimension_semantics = [#tpu.dimension_semantics<parallel>], iteration_bounds = array<i64: 1>, scalar_prefetch = 0 : i64, scratch_operands = 0 : i64, tpu.core_type = #tpu.core_type<tc>, window_params = [{transform_indices = @transform_0, window_bounds = array<i64: 8, 3072>}, {pipeline_mode = #tpu.pipeline_mode<synchronous>, transform_indices = @transform_1, window_bounds = array<i64: 3072, 128>}, {pipeline_mode = #tpu.pipeline_mode<synchronous>, transform_indices = @transform_2, window_bounds = array<i64: 1, 128>}, {transform_indices = @transform_3, window_bounds = array<i64: 8, 128>}]} {
    %c0 = arith.constant 0 : index
    %c0_0 = arith.constant 0 : index
    %0 = vector.load %arg1[%c0, %c0_0] : memref<8x3072xf32, #tpu.memory_space<vmem>>, vector<8x3072xf32>
    %c0_1 = arith.constant 0 : index
    %c0_2 = arith.constant 0 : index
    %1 = vector.load %arg2[%c0_1, %c0_2] : memref<3072x128xf32, #tpu.memory_space<vmem>>, vector<3072x128xf32>
    %cst = arith.constant dense<0.000000e+00> : vector<8x128xf32>
    %2 = tpu.matmul %0, %1, %cst {dimension_numbers = #tpu.dot_dimension_numbers<[1], [0], [0], [1], [0, 0, 1, 1], [], []>} : vector<8x3072xf32>, vector<3072x128xf32>, vector<8x128xf32> -> vector<8x128xf32>
    %c0_3 = arith.constant 0 : index
    %c0_4 = arith.constant 0 : index
    %3 = vector.load %arg3[%c0_3, %c0_4] : memref<1x128xf32, #tpu.memory_space<vmem>>, vector<1x128xf32>
    %4 = vector.broadcast %3 : vector<1x128xf32> to vector<8x128xf32>
    %5 = arith.addf %2, %4 : vector<8x128xf32>
    %cst_5 = arith.constant 0.000000e+00 : f32
    %6 = vector.broadcast %cst_5 : f32 to vector<8x128xf32>
    %7 = arith.cmpf ogt, %5, %6 : vector<8x128xf32>
    %8 = math.exp %5 : vector<8x128xf32>
    %cst_6 = arith.constant 1.000000e+00 : f32
    %9 = vector.broadcast %cst_6 : f32 to vector<8x128xf32>
    %10 = arith.subf %8, %9 : vector<8x128xf32>
    %cst_7 = arith.constant 1.67326319 : f32
    %11 = vector.broadcast %cst_7 : f32 to vector<8x128xf32>
    %12 = arith.mulf %11, %10 : vector<8x128xf32>
    %13 = arith.select %7, %5, %12 : vector<8x128xi1>, vector<8x128xf32>
    %cst_8 = arith.constant 1.05070102 : f32
    %14 = vector.broadcast %cst_8 : f32 to vector<8x128xf32>
    %15 = arith.mulf %14, %13 : vector<8x128xf32>
    %c0_9 = arith.constant 0 : index
    %c0_10 = arith.constant 0 : index
    %16 = vector.load %arg4[%c0_9, %c0_10] : memref<8x128xf32, #tpu.memory_space<vmem>>, vector<8x128xf32>
    tpu.vector_store %arg4[%c0_9, %c0_10], %15 {strides = array<i32>} : memref<8x128xf32, #tpu.memory_space<vmem>>, vector<8x128xf32>,
    return
  }
  func.func @transform_0(%arg0: i32) -> (i32, i32) {
    %c0_i32 = arith.constant 0 : i32
    %c0_i32_0 = arith.constant 0 : i32
    return %arg0, %c0_i32 : i32, i32
  }
  func.func @transform_1(%arg0: i32) -> (i32, i32) {
    %c0_i32 = arith.constant 0 : i32
    %c0_i32_0 = arith.constant 0 : i32
    %c0_i32_1 = arith.constant 0 : i32
    return %c0_i32, %c0_i32_0 : i32, i32
  }
  func.func @transform_2(%arg0: i32) -> (i32, i32) {
    %c0_i32 = arith.constant 0 : i32
    %c0_i32_0 = arith.constant 0 : i32
    %c0_i32_1 = arith.constant 0 : i32
    return %c0_i32, %c0_i32_0 : i32, i32
  }
  func.func @transform_3(%arg0: i32) -> (i32, i32) {
    %c0_i32 = arith.constant 0 : i32
    %c0_i32_0 = arith.constant 0 : i32
    return %arg0, %c0_i32 : i32, i32
  }
}

module attributes {stable_mosaic.version = 11 : i64} {
  func.func @_linear_kernel(%arg0: i32, %arg1: memref<8x128xf32, #tpu.memory_space<vmem>>, %arg2: memref<128x128xf32, #tpu.memory_space<vmem>>, %arg3: memref<1x128xf32, #tpu.memory_space<vmem>>, %arg4: memref<8x128xf32, #tpu.memory_space<vmem>>) attributes {dimension_semantics = [#tpu.dimension_semantics<parallel>], iteration_bounds = array<i64: 1>, scalar_prefetch = 0 : i64, scratch_operands = 0 : i64, tpu.core_type = #tpu.core_type<tc>, window_params = [{transform_indices = @transform_0, window_bounds = array<i64: 8, 128>}, {pipeline_mode = #tpu.pipeline_mode<synchronous>, transform_indices = @transform_1, window_bounds = array<i64: 128, 128>}, {pipeline_mode = #tpu.pipeline_mode<synchronous>, transform_indices = @transform_2, window_bounds = array<i64: 1, 128>}, {transform_indices = @transform_3, window_bounds = array<i64: 8, 128>}]} {
    %c0 = arith.constant 0 : index
    %c0_0 = arith.constant 0 : index
    %0 = vector.load %arg1[%c0, %c0_0] : memref<8x128xf32, #tpu.memory_space<vmem>>, vector<8x128xf32>
    %c0_1 = arith.constant 0 : index
    %c0_2 = arith.constant 0 : index
    %1 = vector.load %arg2[%c0_1, %c0_2] : memref<128x128xf32, #tpu.memory_space<vmem>>, vector<128x128xf32>
    %cst = arith.constant dense<0.000000e+00> : vector<8x128xf32>
    %2 = tpu.matmul %0, %1, %cst {dimension_numbers = #tpu.dot_dimension_numbers<[1], [0], [0], [1], [0, 0, 1, 1], [], []>} : vector<8x128xf32>, vector<128x128xf32>, vector<8x128xf32> -> vector<8x128xf32>
    %c0_3 = arith.constant 0 : index
    %c0_4 = arith.constant 0 : index
    %3 = vector.load %arg3[%c0_3, %c0_4] : memref<1x128xf32, #tpu.memory_space<vmem>>, vector<1x128xf32>
    %4 = vector.broadcast %3 : vector<1x128xf32> to vector<8x128xf32>
    %5 = arith.addf %2, %4 : vector<8x128xf32>
    %cst_5 = arith.constant 0.000000e+00 : f32
    %6 = vector.broadcast %cst_5 : f32 to vector<8x128xf32>
    %7 = arith.cmpf ogt, %5, %6 : vector<8x128xf32>
    %8 = math.exp %5 : vector<8x128xf32>
    %cst_6 = arith.constant 1.000000e+00 : f32
    %9 = vector.broadcast %cst_6 : f32 to vector<8x128xf32>
    %10 = arith.subf %8, %9 : vector<8x128xf32>
    %cst_7 = arith.constant 1.67326319 : f32
    %11 = vector.broadcast %cst_7 : f32 to vector<8x128xf32>
    %12 = arith.mulf %11, %10 : vector<8x128xf32>
    %13 = arith.select %7, %5, %12 : vector<8x128xi1>, vector<8x128xf32>
    %cst_8 = arith.constant 1.05070102 : f32
    %14 = vector.broadcast %cst_8 : f32 to vector<8x128xf32>
    %15 = arith.mulf %14, %13 : vector<8x128xf32>
    %c0_9 = arith.constant 0 : index
    %c0_10 = arith.constant 0 : index
    %16 = vector.load %arg4[%c0_9, %c0_10] : memref<8x128xf32, #tpu.memory_space<vmem>>, vector<8x128xf32>
    tpu.vector_store %arg4[%c0_9, %c0_10], %15 {strides = array<i32>} : memref<8x128xf32, #tpu.memory_space<vmem>>, vector<8x128xf32>,
    return
  }
  func.func @transform_0(%arg0: i32) -> (i32, i32) {
    %c0_i32 = arith.constant 0 : i32
    %c0_i32_0 = arith.constant 0 : i32
    return %arg0, %c0_i32 : i32, i32
  }
  func.func @transform_1(%arg0: i32) -> (i32, i32) {
    %c0_i32 = arith.constant 0 : i32
    %c0_i32_0 = arith.constant 0 : i32
    %c0_i32_1 = arith.constant 0 : i32
    return %c0_i32, %c0_i32_0 : i32, i32
  }
  func.func @transform_2(%arg0: i32) -> (i32, i32) {
    %c0_i32 = arith.constant 0 : i32
    %c0_i32_0 = arith.constant 0 : i32
    %c0_i32_1 = arith.constant 0 : i32
    return %c0_i32, %c0_i32_0 : i32, i32
  }
  func.func @transform_3(%arg0: i32) -> (i32, i32) {
    %c0_i32 = arith.constant 0 : i32
    %c0_i32_0 = arith.constant 0 : i32
    return %arg0, %c0_i32 : i32, i32
  }
}

module attributes {stable_mosaic.version = 11 : i64} {
  func.func @_linear_kernel(%arg0: i32, %arg1: memref<8x128xf32, #tpu.memory_space<vmem>>, %arg2: memref<128x2xf32, #tpu.memory_space<vmem>>, %arg3: memref<1x2xf32, #tpu.memory_space<vmem>>, %arg4: memref<8x2xf32, #tpu.memory_space<vmem>>) attributes {dimension_semantics = [#tpu.dimension_semantics<parallel>], iteration_bounds = array<i64: 1>, scalar_prefetch = 0 : i64, scratch_operands = 0 : i64, tpu.core_type = #tpu.core_type<tc>, window_params = [{transform_indices = @transform_0, window_bounds = array<i64: 8, 128>}, {pipeline_mode = #tpu.pipeline_mode<synchronous>, transform_indices = @transform_1, window_bounds = array<i64: 128, 2>}, {pipeline_mode = #tpu.pipeline_mode<synchronous>, transform_indices = @transform_2, window_bounds = array<i64: 1, 2>}, {transform_indices = @transform_3, window_bounds = array<i64: 8, 2>}]} {
    %c0 = arith.constant 0 : index
    %c0_0 = arith.constant 0 : index
    %0 = vector.load %arg1[%c0, %c0_0] : memref<8x128xf32, #tpu.memory_space<vmem>>, vector<8x128xf32>
    %c0_1 = arith.constant 0 : index
    %c0_2 = arith.constant 0 : index
    %1 = vector.load %arg2[%c0_1, %c0_2] : memref<128x2xf32, #tpu.memory_space<vmem>>, vector<128x2xf32>
    %cst = arith.constant dense<0.000000e+00> : vector<8x2xf32>
    %2 = tpu.matmul %0, %1, %cst {dimension_numbers = #tpu.dot_dimension_numbers<[1], [0], [0], [1], [0, 0, 1, 1], [], []>} : vector<8x128xf32>, vector<128x2xf32>, vector<8x2xf32> -> vector<8x2xf32>
    %c0_3 = arith.constant 0 : index
    %c0_4 = arith.constant 0 : index
    %3 = vector.load %arg3[%c0_3, %c0_4] : memref<1x2xf32, #tpu.memory_space<vmem>>, vector<1x2xf32>
    %4 = vector.broadcast %3 : vector<1x2xf32> to vector<8x2xf32>
    %5 = arith.addf %2, %4 : vector<8x2xf32>
    %cst_5 = arith.constant 0.000000e+00 : f32
    %6 = vector.broadcast %cst_5 : f32 to vector<8x2xf32>
    %7 = arith.cmpf ogt, %5, %6 : vector<8x2xf32>
    %8 = math.exp %5 : vector<8x2xf32>
    %cst_6 = arith.constant 1.000000e+00 : f32
    %9 = vector.broadcast %cst_6 : f32 to vector<8x2xf32>
    %10 = arith.subf %8, %9 : vector<8x2xf32>
    %cst_7 = arith.constant 1.67326319 : f32
    %11 = vector.broadcast %cst_7 : f32 to vector<8x2xf32>
    %12 = arith.mulf %11, %10 : vector<8x2xf32>
    %13 = arith.select %7, %5, %12 : vector<8x2xi1>, vector<8x2xf32>
    %cst_8 = arith.constant 1.05070102 : f32
    %14 = vector.broadcast %cst_8 : f32 to vector<8x2xf32>
    %15 = arith.mulf %14, %13 : vector<8x2xf32>
    %c0_9 = arith.constant 0 : index
    %c0_10 = arith.constant 0 : index
    %16 = vector.load %arg4[%c0_9, %c0_10] : memref<8x2xf32, #tpu.memory_space<vmem>>, vector<8x2xf32>
    tpu.vector_store %arg4[%c0_9, %c0_10], %15 {strides = array<i32>} : memref<8x2xf32, #tpu.memory_space<vmem>>, vector<8x2xf32>,
    return
  }
  func.func @transform_0(%arg0: i32) -> (i32, i32) {
    %c0_i32 = arith.constant 0 : i32
    %c0_i32_0 = arith.constant 0 : i32
    return %arg0, %c0_i32 : i32, i32
  }
  func.func @transform_1(%arg0: i32) -> (i32, i32) {
    %c0_i32 = arith.constant 0 : i32
    %c0_i32_0 = arith.constant 0 : i32
    %c0_i32_1 = arith.constant 0 : i32
    return %c0_i32, %c0_i32_0 : i32, i32
  }
  func.func @transform_2(%arg0: i32) -> (i32, i32) {
    %c0_i32 = arith.constant 0 : i32
    %c0_i32_0 = arith.constant 0 : i32
    %c0_i32_1 = arith.constant 0 : i32
    return %c0_i32, %c0_i32_0 : i32, i32
  }
  func.func @transform_3(%arg0: i32) -> (i32, i32) {
    %c0_i32 = arith.constant 0 : i32
    %c0_i32_0 = arith.constant 0 : i32
    return %arg0, %c0_i32 : i32, i32
  }
}

</mosaic_0001>

<bundles_post_ra>
// kernel: bigru_nacgt_forward.19
= control target key start
LH: loop header
LB: loop body
LE: loop exit
PB: predicated region body
PF: predicated region fallthrough
CT: control target
= control target key end

     0   :  { %8 = vsyncpa [#allocation3], 0  ;;  %s293_s12 = smov [#allocation2]   ;;  %s360_s0 = inlined_call_operand.vmem [shape: f32[16,18], index: 0, kind: input, shape index: {}]   ;;  %s361_s1 = inlined_call_operand.hbm [shape: f32[18,384], index: 1, kind: input, shape index: {}]   ;;  %s362_s2 = inlined_call_operand.vmem [shape: f32[1,384], index: 2, kind: input, shape index: {}]   ;;  %s363_s3 = inlined_call_operand.vmem [shape: f32[16,384], index: 3, kind: output, shape index: {}]  }
   0x1   :  { %s16_s13 = sshll.u32 %s293_s12, 4  ;;  %s269_s16 = scalar_lea.hbm %s361_s1, 1152  ;;  %s17_s13 = int_to_ptr.vmem [resolvable:$true] %s16_s13 }
   0x2   :  { %p270_p0 = scmp.ne.s32.totalorder %s361_s1, %s269_s16  ;;  %p273_p1 = scmp.lt.u32.totalorder %s269_s16, %s361_s1 }
   0x4   :  { %p275_p2 = pnand %p273_p1, %p270_p0 }
   0x6   :  { %278 = shalt.err (!%p275_p2)
}
   0x7   :  { %s279_s21 = scalar_lea.vmem %s17_s13, 1152  ;;  %p284_p4 = scmp.lt.s32.totalorder %s17_s13, %s17_s13 }
   0x8   :  { %p280_p3 = scmp.ne.s32.totalorder %s17_s13, %s279_s21  ;;  %p285_p5 = scmp.lt.s32.totalorder %s279_s21, %s279_s21 }
   0xa   :  { %p286_p6 = por %p285_p5, %p284_p4 }
   0xc   :  { %p287_p7 = pnand %p286_p6, %p280_p3 }
   0xe   :  { %290 = shalt.err (!%p287_p7)
}
   0xf   :  { %s294_s22 = smov 384   ;;  %s295_s23 = smov 24  }
  0x10   :  { %22 = dma.hbm_to_vmem [thread:$0]  %s361_s1, 1152, %s17_s13, [#allocation3], %s294_s22, %s294_s22, %s295_s23  }
  0x11   :  { %291 = dma.done.wait [#allocation3], 1152  }
  0x12   :  { %292 = vsyncadd [#allocation3], 4294966144  ;;  %v296_v0 = vmov 0.0   ;;  %v31_v1 = vld [vmem:[#allocation2 + $0x8] sm:$0xff]  ;;  %v34_v2 = vld [vmem:[#allocation2 + $0x20] sm:$0xff]  ;;  %vm63_vm0 = vcmask 1041408   ;;  %v41_v15 = vlaneseq }
  0x13   :  { %137 = vmatprep.mubr.f32.mxu0 %v296_v0  ;;  %v30_v3 = vld [vmem:[#allocation2] sm:$0xff]  ;;  %v257_v4 = vpack.c.bf16 %v34_v2, %v31_v1  ;;  %v33_v5 = vld [vmem:[#allocation2 + $0x18] sm:$0xff]  ;;  %v32_v6 = vld [vmem:[#allocation2 + $0x10] sm:$0xff]  ;;  %vm56_vm1 = vcmask 146432  }
  0x14   :  { %v35_v7 = vld [vmem:[#allocation2 + $0x28] sm:$0xff]  ;;  %v259_v8 = vpack.c.bf16 %v33_v5, %v30_v3  ;;  %v37_v10 = vld [vmem:[#allocation2 + $0x38] sm:$0x3]  ;;  %v28_v11 = vld [vmem:[%s360_s0] sm:$0xff]  ;;  %v42_v16 = vshrl.u32 %v41_v15, 7 }
  0x15   :  { %v261_v9 = vpack.c.bf16 %v35_v7, %v32_v6  ;;  %258 = vmatprep.subr.bf16.mxu0 %v257_v4  ;;  %v38_v12 = vld [vmem:[#allocation2 + $0x40] sm:$0x3]  ;;  %254 = vmatprep.mubr.msk.f32.mxu1 %vm56_vm1, %v28_v11  ;;  %v36_v13 = vld [vmem:[#allocation2 + $0x30] sm:$0x3]  ;;  %v29_v14 = vld [vmem:[%s360_s0 + $0x8] sm:$0xff] }
  0x16   :  { %260 = vmatpush1.bf16.msra.mxu0 %v259_v8  ;;  %v43_v17 = vsub.s32 0, %v42_v16  ;;  %v39_v18 = vld [vmem:[%s362_s2] sm:$0x7]  ;;  %v47_v19 = vsub.s32 1, %v42_v16  ;;  %v51_v20 = vsub.s32 2, %v42_v16 }
  0x17   :  { %262 = vmatprep.subr.bf16.mxu1 %v261_v9  ;;  %236 = vmatprep.subr.msk.mxu0 %vm63_vm0, %v37_v10 }
  0x18   :  { %264 = vmatpush3.bf16.msra.mxu1 %v261_v9  ;;  %v44_v21 = vrot.slane %v39_v18, %v43_v17  ;;  %v48_v22 = vrot.slane %v39_v18, %v47_v19  ;;  %v52_v23 = vrot.slane %v39_v18, %v51_v20 }
  0x19   :  { %252 = vmatprep.subr.msk.mxu1 %vm63_vm0, %v38_v12 }
  0x1a   :  { %237 = vmatpush1.msk.msra.mxu0 %vm63_vm0, %v36_v13 }
  0x1b   :  { %238 = vmatmul.mubr.msk.f32.vlgmr.msra.gmra.mrb[0].mxu0 %vm56_vm1, %v28_v11 }
  0x1c   :  { %253 = vmatpush3.msk.msra.mxu1 %vm63_vm0, %v38_v12  ;;  %143 = vmatprep.mubr.f32.mxu0 %v296_v0 }
  0x1d   :  { %255 = vmatmul.mubr.msk.f32.vlgmr.msra.gmra.mrb[0].mxu1 %vm56_vm1, %v29_v14 }
  0x1f   :  { %239 = vmatmul.mubr.msk.f32.gmra.mrb[2].mxu0 %vm56_vm1, %v29_v14 }
  0xee   :  { %v139_v24 = vpop.f32.mrb[0].mxu0 }
  0xef   :  { %v140_v25 = vadd.f32 %v139_v24, %v44_v21  ;;  %v141_v26 = vpop.f32.mrb[1].mxu0 }
  0xf0   :  { %v256_v27 = vpop.f32.mrb[0].mxu1  ;;  %v142_v28 = vadd.f32 %v141_v26, %v48_v22 }
  0xf1   :  { %v222_v29 = vadd.f32 %v256_v27, %v52_v23  ;;  %v216_v30 = vpop.f32.mrb[1].mxu1  ;;  %225 = vst [vmem:[%s363_s3] sm:$0xff] %v140_v25 }
  0xf2   :  { %v217_v31 = vadd.f32 %v216_v30, %v52_v23  ;;  %226 = vst [vmem:[%s363_s3 + $0x8] sm:$0xff] %v142_v28  ;;  %v145_v32 = vpop.f32.mrb[2].mxu0 }
  0xf3   :  { %230 = vst [vmem:[%s363_s3 + $0x28] sm:$0xff] %v222_v29  ;;  %v146_v33 = vadd.f32 %v145_v32, %v44_v21  ;;  %v147_v34 = vpop.f32.mrb[3].mxu0 }
  0xf4   :  { %227 = vst [vmem:[%s363_s3 + $0x10] sm:$0xff] %v217_v31  ;;  %v148_v35 = vadd.f32 %v147_v34, %v48_v22 }
  0xf5   :  { %228 = vst [vmem:[%s363_s3 + $0x18] sm:$0xff] %v146_v33 }
  0xf6   :  { %229 = vst [vmem:[%s363_s3 + $0x20] sm:$0xff] %v148_v35 }
  0xf7   :  { %235 = vsyncpa [#allocation3], 1 }

// kernel: bigru_nacgt_forward.20
= control target key start
LH: loop header
LB: loop body
LE: loop exit
PB: predicated region body
PF: predicated region fallthrough
CT: control target
= control target key end

     0   :  { %s924_s12 = smov 0   ;;  %s1142_s0 = inlined_call_operand.vmem [shape: f32[8,2,3,128], index: 0, kind: input, shape index: {}]   ;;  %s1143_s1 = inlined_call_operand.vmem [shape: f32[3,128,128], index: 1, kind: input, shape index: {}]   ;;  %s1144_s2 = inlined_call_operand.vmem [shape: f32[3,1,128], index: 2, kind: input, shape index: {}]   ;;  %s1145_s3 = inlined_call_operand.vmem [shape: f32[8,2,128], index: 3, kind: output, shape index: {}]  }
   0x1 LB: > { %s583_s13 = sadd.s32 4294967295, %s898_s12   ;;  %p587_p0 = scmp.ge.s32.totalorder %s898_s12, 1  ;;  %s898_s12 = sphi %s924_s12, %s13_s12  }
   0x2   : > { %p137_p1 = scmp.lt.s32.totalorder %s898_s12, 9 }
   0x4   : > { %p138_p2 = pnand %p587_p0, %p137_p1 }
   0x5   : > { %p160_p3 = scmp.lt.s32.totalorder (!%p138_p2), %s583_s13, 7  ;;  %p591_p4 = scmp.ne.s32.totalorder (!%p138_p2), %s583_s13, 0 }
   0x6   : > { %141 = sbr.rel (%p138_p2) target bundleno = 326 (0x146), region = 32 }
   0xd   : > { %s161_s14 = scalar_select %p160_p3, %s583_s13, 7 }
   0xe   : > { %172 = sbr.rel (%p591_p4) target bundleno = 21 (0x15), region = 36  ;;  %v900_v0 = vmov (!%p591_p4), 0.0  }
   0xf   : > { %s631_s15 = sshll.u32 %s161_s14, 3  ;;  %s590_s16 = sshll.u32 %s161_s14, 1  ;;  %173 = vst [vmem:[#allocation2] sm:$0x3] (!%p591_p4), %v900_v0 }
  0x10   : > { %s935_s19 = scalar_lea.vmem %s1142_s0, %s631_s15  ;;  %s940_s22 = scalar_lea.vmem %s1145_s3, %s590_s16 }
  0x15 PF: > { %v181_v1 = vld [vmem:[%s1143_s1] sm:$0xff]  ;;  %v182_v2 = vld [vmem:[%s1143_s1 + $0x8] sm:$0xff]  ;;  %v183_v3 = vld [vmem:[%s1143_s1 + $0x10] sm:$0xff]  ;;  %v901_v4 = vmov 0.0|0.0   ;;  %vm902_vm0 = vmmov 0   ;;  %v903_v8 = vmov 0.0  }
  0x16   : > { %788 = vmatprep.subr.bf16.mxu0 %v901_v4  ;;  %v789_v5 = vpack.c.bf16 %v182_v2, %v181_v1  ;;  %v184_v6 = vld [vmem:[%s1143_s1 + $0x18] sm:$0xff]  ;;  %812 = vmatprep.subr.bf16.mxu1 %v901_v4  ;;  %v593_v7 = vld [vmem:[%s1143_s1 + $0x80] sm:$0xff]  ;;  %v594_v11 = vld [vmem:[%s1143_s1 + $0x88] sm:$0xff]  ;;  %vm525_vm1 = vcmask 1041409  }
  0x17   : > { %715 = vmatprep.mubr.msk.f32.mxu0 %vm902_vm0, %v903_v8  ;;  %750 = vmatprep.mubr.msk.f32.mxu1 %vm902_vm0, %v903_v8  ;;  %v792_v9 = vpack.c.bf16 %v184_v6, %v183_v3  ;;  %v185_v10 = vld [vmem:[%s1143_s1 + $0x20] sm:$0xff]  ;;  %v186_v12 = vld [vmem:[%s1143_s1 + $0x28] sm:$0xff]  ;;  %v813_v13 = vpack.c.bf16 %v594_v11, %v593_v7  ;;  %v595_v14 = vld [vmem:[%s1143_s1 + $0x90] sm:$0xff] }
  0x18   : > { %790 = vmatpush3.bf16.msra.mxu0 %v789_v5  ;;  %v596_v15 = vld [vmem:[%s1143_s1 + $0x98] sm:$0xff]  ;;  %v795_v17 = vpack.c.bf16 %v186_v12, %v185_v10  ;;  %v597_v18 = vld [vmem:[%s1143_s1 + $0xa0] sm:$0xff]  ;;  %v598_v19 = vld [vmem:[%s1143_s1 + $0xa8] sm:$0xff] }
  0x19   : > { %791 = vmatprep.subr.bf16.mxu0 %v901_v4  ;;  %814 = vmatpush3.bf16.msra.mxu1 %v813_v13  ;;  %v816_v16 = vpack.c.bf16 %v596_v15, %v595_v14  ;;  %v187_v20 = vld [vmem:[%s1143_s1 + $0x30] sm:$0xff]  ;;  %v188_v21 = vld [vmem:[%s1143_s1 + $0x38] sm:$0xff]  ;;  %v819_v22 = vpack.c.bf16 %v598_v19, %v597_v18  ;;  %v189_v26 = vld [vmem:[%s1143_s1 + $0x40] sm:$0xff] }
  0x1a   : > { %815 = vmatprep.subr.bf16.mxu1 %v901_v4  ;;  %v798_v23 = vpack.c.bf16 %v188_v21, %v187_v20  ;;  %v599_v24 = vld [vmem:[%s1143_s1 + $0xb0] sm:$0xff]  ;;  %v600_v25 = vld [vmem:[%s1143_s1 + $0xb8] sm:$0xff]  ;;  %v190_v27 = vld [vmem:[%s1143_s1 + $0x48] sm:$0xff] }
  0x1b   : > { %v822_v28 = vpack.c.bf16 %v600_v25, %v599_v24  ;;  %v801_v29 = vpack.c.bf16 %v190_v27, %v189_v26  ;;  %v601_v30 = vld [vmem:[%s1143_s1 + $0xc0] sm:$0xff]  ;;  %v602_v31 = vld [vmem:[%s1143_s1 + $0xc8] sm:$0xff]  ;;  %v191_v32 = vld [vmem:[%s1143_s1 + $0x50] sm:$0xff] }
  0x1c   : > { %793 = vmatpush3.bf16.msra.mxu0 %v792_v9  ;;  %v192_v33 = vld [vmem:[%s1143_s1 + $0x58] sm:$0xff]  ;;  %v825_v34 = vpack.c.bf16 %v602_v31, %v601_v30  ;;  %v603_v36 = vld [vmem:[%s1143_s1 + $0xd0] sm:$0xff]  ;;  %v193_v38 = vld [vmem:[%s1143_s1 + $0x60] sm:$0xff] }
  0x1d   : > { %794 = vmatprep.subr.bf16.mxu0 %v901_v4  ;;  %817 = vmatpush3.bf16.msra.mxu1 %v816_v16  ;;  %v804_v35 = vpack.c.bf16 %v192_v33, %v191_v32  ;;  %v604_v37 = vld [vmem:[%s1143_s1 + $0xd8] sm:$0xff]  ;;  %v194_v39 = vld [vmem:[%s1143_s1 + $0x68] sm:$0xff]  ;;  %v605_v42 = vld [vmem:[%s1143_s1 + $0xe0] sm:$0xff] }
  0x1e   : > { %818 = vmatprep.subr.bf16.mxu1 %v901_v4  ;;  %v828_v40 = vpack.c.bf16 %v604_v37, %v603_v36  ;;  %v807_v41 = vpack.c.bf16 %v194_v39, %v193_v38  ;;  %v606_v43 = vld [vmem:[%s1143_s1 + $0xe8] sm:$0xff]  ;;  %v195_v44 = vld [vmem:[%s1143_s1 + $0x70] sm:$0xff]  ;;  %v196_v45 = vld [vmem:[%s1143_s1 + $0x78] sm:$0xff] }
  0x1f   : > { %v831_v46 = vpack.c.bf16 %v606_v43, %v605_v42  ;;  %v810_v47 = vpack.c.bf16 %v196_v45, %v195_v44  ;;  %v607_v48 = vld [vmem:[%s1143_s1 + $0xf0] sm:$0xff]  ;;  %v608_v49 = vld [vmem:[%s1143_s1 + $0xf8] sm:$0xff]  ;;  %v611_v50 = vld [vmem:[%s1143_s1 + $0x100] sm:$0xff] }
  0x20   : > { %796 = vmatpush3.bf16.msra.mxu0 %v795_v17  ;;  %v612_v51 = vld [vmem:[%s1143_s1 + $0x108] sm:$0xff]  ;;  %v834_v52 = vpack.c.bf16 %v608_v49, %v607_v48  ;;  %v1063_v53 = vld [vmem:[#allocation2] sm:$0x3]  ;;  %v613_v55 = vld [vmem:[%s1143_s1 + $0x110] sm:$0xff] }
  0x21   : > { %797 = vmatprep.subr.bf16.mxu0 %v901_v4  ;;  %820 = vmatpush3.bf16.msra.mxu1 %v819_v22  ;;  %v837_v54 = vpack.c.bf16 %v612_v51, %v611_v50  ;;  %v614_v56 = vld [vmem:[%s1143_s1 + $0x118] sm:$0xff]  ;;  %v615_v58 = vld [vmem:[%s1143_s1 + $0x120] sm:$0xff]  ;;  %v616_v59 = vld [vmem:[%s1143_s1 + $0x128] sm:$0xff] }
  0x22   : > { %821 = vmatprep.subr.bf16.mxu1 %v901_v4  ;;  %v840_v57 = vpack.c.bf16 %v614_v56, %v613_v55  ;;  %v843_v60 = vpack.c.bf16 %v616_v59, %v615_v58  ;;  %v617_v61 = vld [vmem:[%s1143_s1 + $0x130] sm:$0xff]  ;;  %v618_v62 = vld [vmem:[%s1143_s1 + $0x138] sm:$0xff]  ;;  %v619_v0 = vld [vmem:[%s1143_s1 + $0x140] sm:$0xff] }
  0x23   : > { %v846_v63 = vpack.c.bf16 %v618_v62, %v617_v61  ;;  %v620_v1 = vld [vmem:[%s1143_s1 + $0x148] sm:$0xff]  ;;  %v621_v3 = vld [vmem:[%s1143_s1 + $0x150] sm:$0xff]  ;;  %v622_v5 = vld [vmem:[%s1143_s1 + $0x158] sm:$0xff] }
  0x24   : > { %799 = vmatpush3.bf16.msra.mxu0 %v798_v23  ;;  %v849_v2 = vpack.c.bf16 %v620_v1, %v619_v0  ;;  %v852_v6 = vpack.c.bf16 %v622_v5, %v621_v3  ;;  %v623_v7 = vld [vmem:[%s1143_s1 + $0x160] sm:$0xff]  ;;  %v625_v10 = vld [vmem:[%s1143_s1 + $0x170] sm:$0xff]  ;;  %v626_v11 = vld [vmem:[%s1143_s1 + $0x178] sm:$0xff] }
  0x25   : > { %800 = vmatprep.subr.bf16.mxu0 %v901_v4  ;;  %823 = vmatpush3.bf16.msra.mxu1 %v822_v28  ;;  %v858_v12 = vpack.c.bf16 %v626_v11, %v625_v10  ;;  %v592_v13 = vld [vmem:[%s1144_s2] ss:$0 sm:$0xff]  ;;  %v610_v18 = vld [vmem:[%s1144_s2 + $0x1] ss:$0 sm:$0xff]  ;;  %v176_v19 = vld [vmem:[%s935_s19 + $0x4] sm:$0x1] }
  0x26   : > { %824 = vmatprep.subr.bf16.mxu1 %v901_v4  ;;  %v175_v14 = vld [vmem:[%s935_s19] sm:$0x1]  ;;  %v178_v27 = vld [vmem:[%s935_s19 + $0x5] sm:$0x1]  ;;  %v628_v45 = vld [vmem:[%s1144_s2 + $0x2] ss:$0 sm:$0xff] }
  0x27   : > { %v180_v56 = vld [vmem:[%s935_s19 + $0x6] sm:$0x1] }
  0x28   : > { %802 = vmatpush3.bf16.msra.mxu0 %v801_v29 }
  0x29   : > { %803 = vmatprep.subr.bf16.mxu0 %v901_v4  ;;  %826 = vmatpush3.bf16.msra.mxu1 %v825_v34 }
  0x2a   : > { %827 = vmatprep.subr.bf16.mxu1 %v901_v4 }
  0x2c   : > { %805 = vmatpush3.bf16.msra.mxu0 %v804_v35 }
  0x2d   : > { %806 = vmatprep.subr.bf16.mxu0 %v901_v4  ;;  %829 = vmatpush3.bf16.msra.mxu1 %v828_v40 }
  0x2e   : > { %830 = vmatprep.subr.bf16.mxu1 %v901_v4 }
  0x30   : > { %808 = vmatpush3.bf16.msra.mxu0 %v807_v41 }
  0x31   : > { %809 = vmatprep.subr.bf16.mxu0 %v901_v4  ;;  %832 = vmatpush3.bf16.msra.mxu1 %v831_v46 }
  0x32   : > { %833 = vmatprep.subr.bf16.mxu1 %v901_v4 }
  0x34   : > { %811 = vmatpush3.bf16.msra.mxu0 %v810_v47 }
  0x35   : > { %836 = vmatprep.subr.bf16.mxu0 %v901_v4  ;;  %835 = vmatpush3.bf16.msra.mxu1 %v834_v52  ;;  %v179_v52 = vld [vmem:[%s935_s19 + $0x2] sm:$0x1] }
  0x37   : > { %716 = vmatmul.mubr.f32.vlgmr.msra.gmra.mrb[0].mxu0 %v1063_v53 }
  0x38   : > { %838 = vmatpush3.bf16.msra.mxu0 %v837_v54  ;;  %785 = vmatprep.mubr.msk.f32.mxu0 %vm902_vm0, %v903_v8  ;;  %v624_v8 = vld [vmem:[%s1143_s1 + $0x168] sm:$0xff] }
  0x39   : > { %839 = vmatprep.subr.bf16.mxu0 %v901_v4  ;;  %751 = vmatmul.mubr.f32.vlgmr.msra.gmra.mrb[0].mxu1 %v1063_v53  ;;  %v855_v9 = vpack.c.bf16 %v624_v8, %v623_v7 }
  0x3c   : > { %841 = vmatpush3.bf16.msra.mxu0 %v840_v57 }
  0x3d   : > { %842 = vmatprep.subr.bf16.mxu0 %v901_v4 }
  0x40   : > { %844 = vmatpush3.bf16.msra.mxu0 %v843_v60 }
  0x41   : > { %845 = vmatprep.subr.bf16.mxu0 %v901_v4 }
  0x44   : > { %847 = vmatpush3.bf16.msra.mxu0 %v846_v63  ;;  %v515_v63 = vrot.slane %v1063_v53, 1 }
  0x45   : > { %848 = vmatprep.subr.bf16.mxu0 %v901_v4 }
  0x48   : > { %850 = vmatpush3.bf16.msra.mxu0 %v849_v2 }
  0x49   : > { %851 = vmatprep.subr.bf16.mxu0 %v901_v4 }
  0x4c   : > { %853 = vmatpush3.bf16.msra.mxu0 %v852_v6 }
  0x4d   : > { %854 = vmatprep.subr.bf16.mxu0 %v901_v4 }
  0x50   : > { %856 = vmatpush3.bf16.msra.mxu0 %v855_v9 }
  0x51   : > { %857 = vmatprep.subr.bf16.mxu0 %v901_v4  ;;  %v177_v4 = vld [vmem:[%s935_s19 + $0x1] sm:$0x1] }
  0x54   : > { %859 = vmatpush3.bf16.msra.mxu0 %v858_v12 }
  0x57   : > { %786 = vmatmul.mubr.f32.vlgmr.msra.gmra.mrb[2].mxu0 %v1063_v53 }
 0x10a   : > { %v270_v15 = vpop.f32.mrb[0].mxu0 }
 0x10b   : > { %v271_v16 = vadd.f32 %v592_v13, %v270_v15  ;;  %v717_v17 = vpop.f32.mrb[1].mxu0 }
 0x10c   : > { %v365_v22 = vpop.f32.mrb[0].mxu1 }
 0x10d   : > { %v465_v20 = vrot.slane %v271_v16, 1  ;;  %v468_v21 = vadd.f32 %v271_v16, %v175_v14  ;;  %v366_v23 = vadd.f32 %v610_v18, %v365_v22  ;;  %v752_v24 = vpop.f32.mrb[1].mxu1 }
 0x10f   : > { %v469_v25 = vadd.f32 %v465_v20, %v176_v19  ;;  %v470_v26 = vsub.f32 0.0, %v468_v21  ;;  %v483_v28 = vrot.slane %v366_v23, 1  ;;  %v486_v29 = vadd.f32 %v366_v23, %v177_v4 }
 0x111   : > { %v471_v30 = vsub.f32 0.0, %v469_v25  ;;  %v472_v31 = vmul.f32 1.442695, %v470_v26  ;;  %v487_v32 = vadd.f32 %v483_v28, %v178_v27  ;;  %v488_v33 = vsub.f32 0.0, %v486_v29 }
 0x113   : > { %872 = vpow2.f32 %v472_v31  ;;  %v474_v34 = vmul.f32 1.442695, %v471_v30  ;;  %v489_v35 = vsub.f32 0.0, %v487_v32  ;;  %v490_v36 = vmul.f32 1.442695, %v488_v33 }
 0x115   : > { %874 = vpow2.f32 %v474_v34  ;;  %v492_v37 = vmul.f32 1.442695, %v489_v35 }
 0x116   : > { %876 = vpow2.f32 %v490_v36 }
 0x117   : > { %878 = vpow2.f32 %v492_v37 }
 0x11d   : > { %v873_v38 = vpop.eup %872 }
 0x11e   : > { %v476_v39 = vadd.f32 1.0, %v873_v38 }
 0x11f   : > { %v875_v40 = vpop.eup %874 }
 0x120   : > { %v477_v41 = vadd.f32 1.0, %v875_v40  ;;  %880 = vrcp.f32 %v476_v39  ;;  %v877_v42 = vpop.eup %876 }
 0x121   : > { %v879_v43 = vpop.eup %878  ;;  %v494_v44 = vadd.f32 1.0, %v877_v42 }
 0x122   : > { %882 = vrcp.f32 %v477_v41  ;;  %v495_v46 = vadd.f32 1.0, %v879_v43 }
 0x123   : > { %884 = vrcp.f32 %v494_v44 }
 0x124   : > { %886 = vrcp.f32 %v495_v46 }
 0x12a   : > { %v881_v47 = vpop.eup %880  ;;  %v460_v48 = vpop.f32.mrb[2].mxu0 }
 0x12b   : > { %v461_v49 = vadd.f32 %v628_v45, %v460_v48  ;;  %v787_v50 = vpop.f32.mrb[3].mxu0 }
 0x12c   : > { %v883_v51 = vpop.eup %882 }
 0x12d   : > { %v501_v54 = vrot.slane %v461_v49, 1  ;;  %v504_v55 = vmul.f32 %v881_v47, %v461_v49  ;;  %v885_v60 = vpop.eup %884 }
 0x12e   : > { %v887_v61 = vpop.eup %886  ;;  %v510_v62 = vsub.f32 1.0, %v885_v60  ;;  %v518_v2 = vmul.f32 %v885_v60, %v1063_v53 }
 0x12f   : > { %v505_v57 = vmul.f32 %v883_v51, %v501_v54  ;;  %v506_v58 = vadd.f32 %v504_v55, %v179_v52  ;;  %v511_v0 = vsub.f32 1.0, %v887_v61  ;;  %v519_v6 = vmul.f32 %v887_v61, %v515_v63 }
 0x131   : > { %v507_v59 = vadd.f32 %v505_v57, %v180_v56  ;;  %888 = vtanh.f32 %v506_v58 }
 0x133   : > { %890 = vtanh.f32 %v507_v59 }
 0x13b   : > { %v889_v1 = vpop.eup %888 }
 0x13c   : > { %v512_v3 = vmul.f32 %v889_v1, %v510_v62 }
 0x13d   : > { %v891_v5 = vpop.eup %890 }
 0x13e   : > { %v513_v7 = vmul.f32 %v891_v5, %v511_v0  ;;  %v520_v8 = vadd.f32 %v518_v2, %v512_v3 }
 0x140   : > { %v521_v9 = vadd.f32 %v519_v6, %v513_v7 }
 0x142   : > { %v524_v10 = vrot.slane %v521_v9, 7 }
 0x144   : > { %v526_v11 = vsel %vm525_vm1, %v524_v10, %v520_v8 }
 0x145   : > { %528 = vst [vmem:[#allocation2] sm:$0x3] %v526_v11  ;;  %529 = vst [vmem:[%s940_s22] sm:$0x3] %v526_v11 }
 0x146 PF: > { %s13_s12 = sadd.s32 1, %s898_s12  }
 0x147   : > { %p10_p5 = scmp.ge.s32.totalorder %s13_s12, 10  }
 0x149   :  { %12 = sbr.rel (!%p10_p5) target bundleno = 1 (0x1), region = 70 }

// kernel: bigru_nacgt_forward.17
= control target key start
LH: loop header
LB: loop body
LE: loop exit
PB: predicated region body
PF: predicated region fallthrough
CT: control target
= control target key end

     0   :  { %8 = vsyncpa [#allocation3], 0  ;;  %s411_s0 = inlined_call_operand.hbm [shape: f32[16,18], index: 0, kind: input, shape index: {}]   ;;  %s412_s1 = inlined_call_operand.hbm [shape: f32[18,384], index: 1, kind: input, shape index: {}]   ;;  %s413_s2 = inlined_call_operand.vmem [shape: f32[1,384], index: 2, kind: input, shape index: {}]   ;;  %s414_s3 = inlined_call_operand.vmem [shape: f32[16,384], index: 3, kind: output, shape index: {}]  }
   0x1   :  { %9 = vsyncpa [#allocation5], 0  ;;  %s335_s12 = smov [#allocation2]   ;;  %s287_s16 = scalar_lea.hbm %s411_s0, 256 }
   0x2   :  { %s15_s13 = sshll.u32 %s335_s12, 4  ;;  %p288_p0 = scmp.ne.s32.totalorder %s411_s0, %s287_s16  ;;  %s16_s13 = int_to_ptr.vmem [resolvable:$true] %s15_s13 }
   0x3   :  { %p291_p1 = scmp.lt.u32.totalorder %s287_s16, %s411_s0 }
   0x5   :  { %p293_p2 = pnand %p291_p1, %p288_p0 }
   0x7   :  { %296 = shalt.err (!%p293_p2)
}
   0x8   :  { %s297_s21 = scalar_lea.vmem %s16_s13, 256  ;;  %p302_p4 = scmp.lt.s32.totalorder %s16_s13, %s16_s13 }
   0x9   :  { %p298_p3 = scmp.ne.s32.totalorder %s16_s13, %s297_s21  ;;  %p303_p5 = scmp.lt.s32.totalorder %s297_s21, %s297_s21 }
   0xb   :  { %p304_p6 = por %p303_p5, %p302_p4 }
   0xd   :  { %p305_p7 = pnand %p304_p6, %p298_p3 }
   0xf   :  { %308 = shalt.err (!%p305_p7)
}
  0x10   :  { %s336_s22 = smov 128   ;;  %s337_s23 = smov 8  }
  0x11   :  { %21 = dma.hbm_to_vmem [thread:$0]  %s411_s0, 256, %s16_s13, [#allocation3], %s336_s22, %s336_s22, %s337_s23  }
  0x12   :  { %s338_s26 = smov [#allocation4]   ;;  %s309_s30 = scalar_lea.hbm %s412_s1, 1152 }
  0x13   :  { %s27_s27 = sshll.u32 %s338_s26, 4  ;;  %p310_p8 = scmp.ne.s32.totalorder %s412_s1, %s309_s30  ;;  %s28_s27 = int_to_ptr.vmem [resolvable:$true] %s27_s27 }
  0x14   :  { %p313_p9 = scmp.lt.u32.totalorder %s309_s30, %s412_s1 }
  0x16   :  { %p315_p10 = pnand %p313_p9, %p310_p8 }
  0x18   :  { %318 = shalt.err (!%p315_p10)
}
  0x19   :  { %s319_s8 = scalar_lea.vmem %s28_s27, 1152  ;;  %p324_p12 = scmp.lt.s32.totalorder %s28_s27, %s28_s27 }
  0x1a   :  { %p320_p11 = scmp.ne.s32.totalorder %s28_s27, %s319_s8  ;;  %p325_p13 = scmp.lt.s32.totalorder %s319_s8, %s319_s8 }
  0x1c   :  { %p326_p0 = por %p325_p13, %p324_p12 }
  0x1e   :  { %p327_p1 = pnand %p326_p0, %p320_p11 }
  0x20   :  { %330 = shalt.err (!%p327_p1)
}
  0x21   :  { %s339_s0 = smov 384   ;;  %s340_s9 = smov 24  }
  0x22   :  { %33 = dma.hbm_to_vmem [thread:$0]  %s412_s1, 1152, %s28_s27, [#allocation5], %s339_s0, %s339_s0, %s340_s9  }
  0x23   :  { %331 = dma.done.wait [#allocation3], 256  }
  0x24   :  { %332 = vsyncadd [#allocation3], 4294967040 }
  0x25   :  { %333 = dma.done.wait [#allocation5], 1152  }
  0x26   :  { %334 = vsyncadd [#allocation5], 4294966144  ;;  %v341_v0 = vmov 0.0   ;;  %v45_v1 = vld [vmem:[#allocation4 + $0x8] sm:$0xff]  ;;  %v48_v2 = vld [vmem:[#allocation4 + $0x20] sm:$0xff]  ;;  %vm77_vm0 = vcmask 1041408   ;;  %v55_v15 = vlaneseq }
  0x27   :  { %151 = vmatprep.mubr.f32.mxu0 %v341_v0  ;;  %v44_v3 = vld [vmem:[#allocation4] sm:$0xff]  ;;  %v272_v4 = vpack.c.bf16 %v48_v2, %v45_v1  ;;  %v47_v5 = vld [vmem:[#allocation4 + $0x18] sm:$0xff]  ;;  %v46_v6 = vld [vmem:[#allocation4 + $0x10] sm:$0xff]  ;;  %vm70_vm1 = vcmask 146432  }
  0x28   :  { %v49_v7 = vld [vmem:[#allocation4 + $0x28] sm:$0xff]  ;;  %v274_v8 = vpack.c.bf16 %v47_v5, %v44_v3  ;;  %v51_v10 = vld [vmem:[#allocation4 + $0x38] sm:$0x3]  ;;  %v42_v11 = vld [vmem:[#allocation2] sm:$0xff]  ;;  %v56_v16 = vshrl.u32 %v55_v15, 7 }
  0x29   :  { %v276_v9 = vpack.c.bf16 %v49_v7, %v46_v6  ;;  %273 = vmatprep.subr.bf16.mxu0 %v272_v4  ;;  %v52_v12 = vld [vmem:[#allocation4 + $0x40] sm:$0x3]  ;;  %269 = vmatprep.mubr.msk.f32.mxu1 %vm70_vm1, %v42_v11  ;;  %v50_v13 = vld [vmem:[#allocation4 + $0x30] sm:$0x3]  ;;  %v43_v14 = vld [vmem:[#allocation2 + $0x8] sm:$0xff] }
  0x2a   :  { %275 = vmatpush1.bf16.msra.mxu0 %v274_v8  ;;  %v57_v17 = vsub.s32 0, %v56_v16  ;;  %v53_v18 = vld [vmem:[%s413_s2] sm:$0x7]  ;;  %v61_v19 = vsub.s32 1, %v56_v16  ;;  %v65_v20 = vsub.s32 2, %v56_v16 }
  0x2b   :  { %277 = vmatprep.subr.bf16.mxu1 %v276_v9  ;;  %251 = vmatprep.subr.msk.mxu0 %vm77_vm0, %v51_v10 }
  0x2c   :  { %279 = vmatpush3.bf16.msra.mxu1 %v276_v9  ;;  %v58_v21 = vrot.slane %v53_v18, %v57_v17  ;;  %v62_v22 = vrot.slane %v53_v18, %v61_v19  ;;  %v66_v23 = vrot.slane %v53_v18, %v65_v20 }
  0x2d   :  { %267 = vmatprep.subr.msk.mxu1 %vm77_vm0, %v52_v12 }
  0x2e   :  { %252 = vmatpush1.msk.msra.mxu0 %vm77_vm0, %v50_v13 }
  0x2f   :  { %253 = vmatmul.mubr.msk.f32.vlgmr.msra.gmra.mrb[0].mxu0 %vm70_vm1, %v42_v11 }
  0x30   :  { %268 = vmatpush3.msk.msra.mxu1 %vm77_vm0, %v52_v12  ;;  %157 = vmatprep.mubr.f32.mxu0 %v341_v0 }
  0x31   :  { %270 = vmatmul.mubr.msk.f32.vlgmr.msra.gmra.mrb[0].mxu1 %vm70_vm1, %v43_v14 }
  0x33   :  { %254 = vmatmul.mubr.msk.f32.gmra.mrb[2].mxu0 %vm70_vm1, %v43_v14 }
 0x102   :  { %v153_v24 = vpop.f32.mrb[0].mxu0 }
 0x103   :  { %v154_v25 = vadd.f32 %v153_v24, %v58_v21  ;;  %v155_v26 = vpop.f32.mrb[1].mxu0 }
 0x104   :  { %v271_v27 = vpop.f32.mrb[0].mxu1  ;;  %v156_v28 = vadd.f32 %v155_v26, %v62_v22 }
 0x105   :  { %v236_v29 = vadd.f32 %v271_v27, %v66_v23  ;;  %v230_v30 = vpop.f32.mrb[1].mxu1  ;;  %239 = vst [vmem:[%s414_s3] sm:$0xff] %v154_v25 }
 0x106   :  { %v231_v31 = vadd.f32 %v230_v30, %v66_v23  ;;  %240 = vst [vmem:[%s414_s3 + $0x8] sm:$0xff] %v156_v28  ;;  %v159_v32 = vpop.f32.mrb[2].mxu0 }
 0x107   :  { %244 = vst [vmem:[%s414_s3 + $0x28] sm:$0xff] %v236_v29  ;;  %v160_v33 = vadd.f32 %v159_v32, %v58_v21  ;;  %v161_v34 = vpop.f32.mrb[3].mxu0 }
 0x108   :  { %241 = vst [vmem:[%s414_s3 + $0x10] sm:$0xff] %v231_v31  ;;  %v162_v35 = vadd.f32 %v161_v34, %v62_v22 }
 0x109   :  { %242 = vst [vmem:[%s414_s3 + $0x18] sm:$0xff] %v160_v33 }
 0x10a   :  { %243 = vst [vmem:[%s414_s3 + $0x20] sm:$0xff] %v162_v35 }
 0x10b   :  { %249 = vsyncpa [#allocation3], 1 }
 0x10c   :  { %250 = vsyncpa [#allocation5], 1 }

// kernel: bigru_nacgt_forward.23
= control target key start
LH: loop header
LB: loop body
LE: loop exit
PB: predicated region body
PF: predicated region fallthrough
CT: control target
= control target key end

     0   :  { %vm438_vm0 = vcmask 523264   ;;  %s1223_s1 = inlined_call_operand.vmem [shape: f32[256,576], index: 1, kind: input, shape index: {}]   ;;  %s1224_s0 = inlined_call_operand.vmem [shape: f32[16,256], index: 0, kind: input, shape index: {}]   ;;  %s1225_s2 = inlined_call_operand.vmem [shape: f32[1,576], index: 2, kind: input, shape index: {}]   ;;  %s1226_s3 = inlined_call_operand.vmem [shape: f32[16,576], index: 3, kind: output, shape index: {}]  }
   0x1   :  { %v19_v0 = vld [vmem:[%s1223_s1 + $0x8] sm:$0xff]  ;;  %v24_v1 = vld [vmem:[%s1223_s1 + $0x30] sm:$0xff]  ;;  %v21_v2 = vld [vmem:[%s1223_s1 + $0x18] sm:$0xff] }
   0x2   :  { %v487_v3 = vpack.c.bf16 %v24_v1, %v19_v0  ;;  %v26_v4 = vld [vmem:[%s1223_s1 + $0x40] sm:$0xff]  ;;  %v23_v6 = vld [vmem:[%s1223_s1 + $0x28] sm:$0xff]  ;;  %v20_v9 = vld [vmem:[%s1223_s1 + $0x10] sm:$0xff] }
   0x3   :  { %v18_v5 = vld [vmem:[%s1223_s1] sm:$0xff]  ;;  %v551_v7 = vpack.c.bf16 %v26_v4, %v21_v2  ;;  %v25_v10 = vld [vmem:[%s1223_s1 + $0x38] sm:$0xff]  ;;  %v31_v14 = vld [vmem:[%s1223_s1 + $0x68] sm:$0xff] }
   0x4   :  { %v489_v8 = vpack.c.bf16 %v23_v6, %v18_v5  ;;  %v29_v11 = vld [vmem:[%s1223_s1 + $0x58] sm:$0xff]  ;;  %488 = vmatprep.subr.bf16.mxu0 %v487_v3  ;;  %v553_v12 = vpack.c.bf16 %v25_v10, %v20_v9  ;;  %v34_v13 = vld [vmem:[%s1223_s1 + $0x80] sm:$0xff]  ;;  %v36_v15 = vld [vmem:[%s1223_s1 + $0x90] sm:$0xff] }
   0x5   :  { %552 = vmatprep.subr.bf16.mxu1 %v551_v7  ;;  %v491_v16 = vpack.c.bf16 %v34_v13, %v29_v11  ;;  %v555_v17 = vpack.c.bf16 %v36_v15, %v31_v14  ;;  %v28_v18 = vld [vmem:[%s1223_s1 + $0x50] sm:$0xff]  ;;  %v33_v19 = vld [vmem:[%s1223_s1 + $0x78] sm:$0xff]  ;;  %v30_v20 = vld [vmem:[%s1223_s1 + $0x60] sm:$0xff] }
   0x6   :  { %490 = vmatpush1.bf16.msra.mxu0 %v489_v8  ;;  %554 = vmatpush1.bf16.msra.mxu1 %v553_v12  ;;  %v493_v21 = vpack.c.bf16 %v33_v19, %v28_v18  ;;  %v35_v22 = vld [vmem:[%s1223_s1 + $0x88] sm:$0xff]  ;;  %v44_v24 = vld [vmem:[%s1223_s1 + $0xd0] sm:$0xff]  ;;  %v41_v27 = vld [vmem:[%s1223_s1 + $0xb8] sm:$0xff] }
   0x7   :  { %v39_v23 = vld [vmem:[%s1223_s1 + $0xa8] sm:$0xff]  ;;  %492 = vmatprep.subr.bf16.mxu0 %v491_v16  ;;  %556 = vmatprep.subr.bf16.mxu1 %v555_v17  ;;  %v557_v25 = vpack.c.bf16 %v35_v22, %v30_v20  ;;  %v46_v28 = vld [vmem:[%s1223_s1 + $0xe0] sm:$0xff]  ;;  %v40_v32 = vld [vmem:[%s1223_s1 + $0xb0] sm:$0xff] }
   0x8   :  { %v495_v26 = vpack.c.bf16 %v44_v24, %v39_v23  ;;  %v38_v29 = vld [vmem:[%s1223_s1 + $0xa0] sm:$0xff]  ;;  %v559_v30 = vpack.c.bf16 %v46_v28, %v41_v27  ;;  %v43_v31 = vld [vmem:[%s1223_s1 + $0xc8] sm:$0xff]  ;;  %v45_v33 = vld [vmem:[%s1223_s1 + $0xd8] sm:$0xff] }
   0x9   :  { %v497_v34 = vpack.c.bf16 %v43_v31, %v38_v29  ;;  %v49_v35 = vld [vmem:[%s1223_s1 + $0xf8] sm:$0xff]  ;;  %v54_v36 = vld [vmem:[%s1223_s1 + $0x120] sm:$0xff]  ;;  %v51_v37 = vld [vmem:[%s1223_s1 + $0x108] sm:$0xff]  ;;  %v561_v38 = vpack.c.bf16 %v45_v33, %v40_v32 }
   0xa   :  { %494 = vmatpush1.bf16.msra.mxu0 %v493_v21  ;;  %558 = vmatpush1.bf16.msra.mxu1 %v557_v25  ;;  %v499_v39 = vpack.c.bf16 %v54_v36, %v49_v35  ;;  %v56_v40 = vld [vmem:[%s1223_s1 + $0x130] sm:$0xff]  ;;  %v53_v42 = vld [vmem:[%s1223_s1 + $0x118] sm:$0xff]  ;;  %v50_v44 = vld [vmem:[%s1223_s1 + $0x100] sm:$0xff] }
   0xb   :  { %496 = vmatprep.subr.bf16.mxu0 %v495_v26  ;;  %v48_v41 = vld [vmem:[%s1223_s1 + $0xf0] sm:$0xff]  ;;  %560 = vmatprep.subr.bf16.mxu1 %v559_v30  ;;  %v563_v43 = vpack.c.bf16 %v56_v40, %v51_v37  ;;  %v55_v45 = vld [vmem:[%s1223_s1 + $0x128] sm:$0xff]  ;;  %v61_v48 = vld [vmem:[%s1223_s1 + $0x158] sm:$0xff] }
   0xc   :  { %v59_v46 = vld [vmem:[%s1223_s1 + $0x148] sm:$0xff]  ;;  %v64_v47 = vld [vmem:[%s1223_s1 + $0x170] sm:$0xff]  ;;  %v66_v49 = vld [vmem:[%s1223_s1 + $0x180] sm:$0xff]  ;;  %v501_v50 = vpack.c.bf16 %v53_v42, %v48_v41  ;;  %v565_v51 = vpack.c.bf16 %v55_v45, %v50_v44 }
   0xd   :  { %v503_v52 = vpack.c.bf16 %v64_v47, %v59_v46  ;;  %v58_v53 = vld [vmem:[%s1223_s1 + $0x140] sm:$0xff]  ;;  %v63_v54 = vld [vmem:[%s1223_s1 + $0x168] sm:$0xff]  ;;  %v60_v55 = vld [vmem:[%s1223_s1 + $0x150] sm:$0xff]  ;;  %v567_v56 = vpack.c.bf16 %v66_v49, %v61_v48 }
   0xe   :  { %498 = vmatpush1.bf16.msra.mxu0 %v497_v34  ;;  %562 = vmatpush1.bf16.msra.mxu1 %v561_v38  ;;  %v65_v57 = vld [vmem:[%s1223_s1 + $0x178] sm:$0xff]  ;;  %v74_v59 = vld [vmem:[%s1223_s1 + $0x1c0] sm:$0xff]  ;;  %v71_v60 = vld [vmem:[%s1223_s1 + $0x1a8] sm:$0xff]  ;;  %v505_v62 = vpack.c.bf16 %v63_v54, %v58_v53 }
   0xf   :  { %500 = vmatprep.subr.bf16.mxu0 %v499_v39  ;;  %564 = vmatprep.subr.bf16.mxu1 %v563_v43  ;;  %v69_v58 = vld [vmem:[%s1223_s1 + $0x198] sm:$0xff]  ;;  %v76_v61 = vld [vmem:[%s1223_s1 + $0x1d0] sm:$0xff]  ;;  %v569_v63 = vpack.c.bf16 %v65_v57, %v60_v55  ;;  %v70_v3 = vld [vmem:[%s1223_s1 + $0x1a0] sm:$0xff] }
  0x10   :  { %v507_v0 = vpack.c.bf16 %v74_v59, %v69_v58  ;;  %v68_v1 = vld [vmem:[%s1223_s1 + $0x190] sm:$0xff]  ;;  %v73_v2 = vld [vmem:[%s1223_s1 + $0x1b8] sm:$0xff]  ;;  %v571_v4 = vpack.c.bf16 %v76_v61, %v71_v60  ;;  %v75_v5 = vld [vmem:[%s1223_s1 + $0x1c8] sm:$0xff] }
  0x11   :  { %v79_v6 = vld [vmem:[%s1223_s1 + $0x1e8] sm:$0xff]  ;;  %v84_v7 = vld [vmem:[%s1223_s1 + $0x210] sm:$0xff]  ;;  %v81_v8 = vld [vmem:[%s1223_s1 + $0x1f8] sm:$0xff]  ;;  %v509_v10 = vpack.c.bf16 %v73_v2, %v68_v1  ;;  %v573_v11 = vpack.c.bf16 %v75_v5, %v70_v3 }
  0x12   :  { %502 = vmatpush1.bf16.msra.mxu0 %v501_v50  ;;  %566 = vmatpush1.bf16.msra.mxu1 %v565_v51  ;;  %v86_v9 = vld [vmem:[%s1223_s1 + $0x220] sm:$0xff]  ;;  %v511_v12 = vpack.c.bf16 %v84_v7, %v79_v6  ;;  %v83_v14 = vld [vmem:[%s1223_s1 + $0x208] sm:$0xff]  ;;  %v80_v15 = vld [vmem:[%s1223_s1 + $0x1f0] sm:$0xff] }
  0x13   :  { %504 = vmatprep.subr.bf16.mxu0 %v503_v52  ;;  %568 = vmatprep.subr.bf16.mxu1 %v567_v56  ;;  %v78_v13 = vld [vmem:[%s1223_s1 + $0x1e0] sm:$0xff]  ;;  %v575_v16 = vpack.c.bf16 %v86_v9, %v81_v8  ;;  %v85_v17 = vld [vmem:[%s1223_s1 + $0x218] sm:$0xff]  ;;  %v91_v20 = vld [vmem:[%s1223_s1 + $0x248] sm:$0xff] }
  0x14   :  { %v89_v18 = vld [vmem:[%s1223_s1 + $0x238] sm:$0xff]  ;;  %v94_v19 = vld [vmem:[%s1223_s1 + $0x260] sm:$0xff]  ;;  %v96_v21 = vld [vmem:[%s1223_s1 + $0x270] sm:$0xff]  ;;  %v513_v22 = vpack.c.bf16 %v83_v14, %v78_v13  ;;  %v577_v23 = vpack.c.bf16 %v85_v17, %v80_v15 }
  0x15   :  { %v515_v24 = vpack.c.bf16 %v94_v19, %v89_v18  ;;  %v88_v25 = vld [vmem:[%s1223_s1 + $0x230] sm:$0xff]  ;;  %v93_v26 = vld [vmem:[%s1223_s1 + $0x258] sm:$0xff]  ;;  %v90_v27 = vld [vmem:[%s1223_s1 + $0x240] sm:$0xff]  ;;  %v579_v28 = vpack.c.bf16 %v96_v21, %v91_v20 }
  0x16   :  { %506 = vmatpush1.bf16.msra.mxu0 %v505_v62  ;;  %570 = vmatpush1.bf16.msra.mxu1 %v569_v63  ;;  %v95_v29 = vld [vmem:[%s1223_s1 + $0x268] sm:$0xff]  ;;  %v104_v31 = vld [vmem:[%s1223_s1 + $0x2b0] sm:$0xff]  ;;  %v101_v32 = vld [vmem:[%s1223_s1 + $0x298] sm:$0xff]  ;;  %v517_v34 = vpack.c.bf16 %v93_v26, %v88_v25 }
  0x17   :  { %508 = vmatprep.subr.bf16.mxu0 %v507_v0  ;;  %572 = vmatprep.subr.bf16.mxu1 %v571_v4  ;;  %v99_v30 = vld [vmem:[%s1223_s1 + $0x288] sm:$0xff]  ;;  %v106_v33 = vld [vmem:[%s1223_s1 + $0x2c0] sm:$0xff]  ;;  %v581_v35 = vpack.c.bf16 %v95_v29, %v90_v27  ;;  %v100_v39 = vld [vmem:[%s1223_s1 + $0x290] sm:$0xff] }
  0x18   :  { %v519_v36 = vpack.c.bf16 %v104_v31, %v99_v30  ;;  %v98_v37 = vld [vmem:[%s1223_s1 + $0x280] sm:$0xff]  ;;  %v103_v38 = vld [vmem:[%s1223_s1 + $0x2a8] sm:$0xff]  ;;  %v583_v40 = vpack.c.bf16 %v106_v33, %v101_v32  ;;  %v105_v41 = vld [vmem:[%s1223_s1 + $0x2b8] sm:$0xff] }
  0x19   :  { %v109_v42 = vld [vmem:[%s1223_s1 + $0x2d8] sm:$0xff]  ;;  %v114_v43 = vld [vmem:[%s1223_s1 + $0x300] sm:$0xff]  ;;  %v111_v44 = vld [vmem:[%s1223_s1 + $0x2e8] sm:$0xff]  ;;  %v521_v46 = vpack.c.bf16 %v103_v38, %v98_v37  ;;  %v585_v47 = vpack.c.bf16 %v105_v41, %v100_v39 }
  0x1a   :  { %510 = vmatpush1.bf16.msra.mxu0 %v509_v10  ;;  %574 = vmatpush1.bf16.msra.mxu1 %v573_v11  ;;  %v116_v45 = vld [vmem:[%s1223_s1 + $0x310] sm:$0xff]  ;;  %v523_v48 = vpack.c.bf16 %v114_v43, %v109_v42  ;;  %v113_v50 = vld [vmem:[%s1223_s1 + $0x2f8] sm:$0xff]  ;;  %v110_v51 = vld [vmem:[%s1223_s1 + $0x2e0] sm:$0xff] }
  0x1b   :  { %512 = vmatprep.subr.bf16.mxu0 %v511_v12  ;;  %576 = vmatprep.subr.bf16.mxu1 %v575_v16  ;;  %v108_v49 = vld [vmem:[%s1223_s1 + $0x2d0] sm:$0xff]  ;;  %v587_v52 = vpack.c.bf16 %v116_v45, %v111_v44  ;;  %v115_v53 = vld [vmem:[%s1223_s1 + $0x308] sm:$0xff]  ;;  %v121_v56 = vld [vmem:[%s1223_s1 + $0x338] sm:$0xff] }
  0x1c   :  { %v119_v54 = vld [vmem:[%s1223_s1 + $0x328] sm:$0xff]  ;;  %v124_v55 = vld [vmem:[%s1223_s1 + $0x350] sm:$0xff]  ;;  %v126_v57 = vld [vmem:[%s1223_s1 + $0x360] sm:$0xff]  ;;  %v525_v58 = vpack.c.bf16 %v113_v50, %v108_v49  ;;  %v589_v59 = vpack.c.bf16 %v115_v53, %v110_v51 }
  0x1d   :  { %v527_v60 = vpack.c.bf16 %v124_v55, %v119_v54  ;;  %v118_v61 = vld [vmem:[%s1223_s1 + $0x320] sm:$0xff]  ;;  %v123_v62 = vld [vmem:[%s1223_s1 + $0x348] sm:$0xff]  ;;  %v120_v63 = vld [vmem:[%s1223_s1 + $0x330] sm:$0xff]  ;;  %v591_v0 = vpack.c.bf16 %v126_v57, %v121_v56 }
  0x1e   :  { %514 = vmatpush1.bf16.msra.mxu0 %v513_v22  ;;  %578 = vmatpush1.bf16.msra.mxu1 %v577_v23  ;;  %v125_v1 = vld [vmem:[%s1223_s1 + $0x358] sm:$0xff]  ;;  %v134_v3 = vld [vmem:[%s1223_s1 + $0x3a0] sm:$0xff]  ;;  %v131_v4 = vld [vmem:[%s1223_s1 + $0x388] sm:$0xff]  ;;  %v529_v6 = vpack.c.bf16 %v123_v62, %v118_v61 }
  0x1f   :  { %516 = vmatprep.subr.bf16.mxu0 %v515_v24  ;;  %580 = vmatprep.subr.bf16.mxu1 %v579_v28  ;;  %v129_v2 = vld [vmem:[%s1223_s1 + $0x378] sm:$0xff]  ;;  %v136_v5 = vld [vmem:[%s1223_s1 + $0x3b0] sm:$0xff]  ;;  %v593_v8 = vpack.c.bf16 %v125_v1, %v120_v63  ;;  %v130_v11 = vld [vmem:[%s1223_s1 + $0x380] sm:$0xff] }
  0x20   :  { %v128_v7 = vld [vmem:[%s1223_s1 + $0x370] sm:$0xff]  ;;  %v531_v9 = vpack.c.bf16 %v134_v3, %v129_v2  ;;  %v133_v10 = vld [vmem:[%s1223_s1 + $0x398] sm:$0xff]  ;;  %v135_v12 = vld [vmem:[%s1223_s1 + $0x3a8] sm:$0xff]  ;;  %v595_v13 = vpack.c.bf16 %v136_v5, %v131_v4 }
  0x21   :  { %v139_v14 = vld [vmem:[%s1223_s1 + $0x3c8] sm:$0xff]  ;;  %v144_v15 = vld [vmem:[%s1223_s1 + $0x3f0] sm:$0xff]  ;;  %v141_v17 = vld [vmem:[%s1223_s1 + $0x3d8] sm:$0xff]  ;;  %v533_v19 = vpack.c.bf16 %v133_v10, %v128_v7  ;;  %v597_v20 = vpack.c.bf16 %v135_v12, %v130_v11 }
  0x22   :  { %518 = vmatpush1.bf16.msra.mxu0 %v517_v34  ;;  %582 = vmatpush1.bf16.msra.mxu1 %v581_v35  ;;  %v980_v16 = vld [vmem:[%s1224_s0 + $0x8] sm:$0xff]  ;;  %v146_v18 = vld [vmem:[%s1223_s1 + $0x400] sm:$0xff]  ;;  %v535_v21 = vpack.c.bf16 %v144_v15, %v139_v14  ;;  %v140_v24 = vld [vmem:[%s1223_s1 + $0x3d0] sm:$0xff] }
  0x23   :  { %520 = vmatprep.subr.bf16.mxu0 %v519_v36  ;;  %584 = vmatprep.subr.bf16.mxu1 %v583_v40  ;;  %v138_v22 = vld [vmem:[%s1223_s1 + $0x3c0] sm:$0xff]  ;;  %v143_v23 = vld [vmem:[%s1223_s1 + $0x3e8] sm:$0xff]  ;;  %v599_v25 = vpack.c.bf16 %v146_v18, %v141_v17  ;;  %v145_v26 = vld [vmem:[%s1223_s1 + $0x3f8] sm:$0xff] }
  0x24   :  { %269 = vmatprep.mubr.f32.mxu0 %v980_v16  ;;  %346 = vmatprep.mubr.f32.mxu1 %v980_v16  ;;  %v149_v27 = vld [vmem:[%s1223_s1 + $0x418] sm:$0xff]  ;;  %v154_v28 = vld [vmem:[%s1223_s1 + $0x440] sm:$0xff]  ;;  %v151_v29 = vld [vmem:[%s1223_s1 + $0x428] sm:$0xff]  ;;  %v537_v31 = vpack.c.bf16 %v143_v23, %v138_v22  ;;  %v601_v32 = vpack.c.bf16 %v145_v26, %v140_v24 }
  0x25   :  { %v156_v30 = vld [vmem:[%s1223_s1 + $0x450] sm:$0xff]  ;;  %v539_v33 = vpack.c.bf16 %v154_v28, %v149_v27  ;;  %v153_v35 = vld [vmem:[%s1223_s1 + $0x438] sm:$0xff]  ;;  %v150_v36 = vld [vmem:[%s1223_s1 + $0x420] sm:$0xff] }
  0x26   :  { %522 = vmatpush1.bf16.msra.mxu0 %v521_v46  ;;  %586 = vmatpush1.bf16.msra.mxu1 %v585_v47  ;;  %v148_v34 = vld [vmem:[%s1223_s1 + $0x410] sm:$0xff]  ;;  %v603_v37 = vpack.c.bf16 %v156_v30, %v151_v29  ;;  %v155_v38 = vld [vmem:[%s1223_s1 + $0x448] sm:$0xff]  ;;  %v161_v41 = vld [vmem:[%s1223_s1 + $0x478] sm:$0xff] }
  0x27   :  { %524 = vmatprep.subr.bf16.mxu0 %v523_v48  ;;  %588 = vmatprep.subr.bf16.mxu1 %v587_v52  ;;  %v159_v39 = vld [vmem:[%s1223_s1 + $0x468] sm:$0xff]  ;;  %v164_v40 = vld [vmem:[%s1223_s1 + $0x490] sm:$0xff]  ;;  %v166_v42 = vld [vmem:[%s1223_s1 + $0x4a0] sm:$0xff]  ;;  %v541_v43 = vpack.c.bf16 %v153_v35, %v148_v34  ;;  %v605_v44 = vpack.c.bf16 %v155_v38, %v150_v36 }
  0x28   :  { %v543_v45 = vpack.c.bf16 %v164_v40, %v159_v39  ;;  %v158_v46 = vld [vmem:[%s1223_s1 + $0x460] sm:$0xff]  ;;  %v163_v47 = vld [vmem:[%s1223_s1 + $0x488] sm:$0xff]  ;;  %v160_v48 = vld [vmem:[%s1223_s1 + $0x470] sm:$0xff]  ;;  %v607_v49 = vpack.c.bf16 %v166_v42, %v161_v41 }
  0x29   :  { %v165_v50 = vld [vmem:[%s1223_s1 + $0x498] sm:$0xff]  ;;  %v174_v52 = vld [vmem:[%s1223_s1 + $0x4e0] sm:$0xff]  ;;  %v171_v53 = vld [vmem:[%s1223_s1 + $0x4c8] sm:$0xff]  ;;  %v545_v55 = vpack.c.bf16 %v163_v47, %v158_v46 }
  0x2a   :  { %526 = vmatpush1.bf16.msra.mxu0 %v525_v58  ;;  %590 = vmatpush1.bf16.msra.mxu1 %v589_v59  ;;  %v169_v51 = vld [vmem:[%s1223_s1 + $0x4b8] sm:$0xff]  ;;  %v176_v54 = vld [vmem:[%s1223_s1 + $0x4f0] sm:$0xff]  ;;  %v609_v56 = vpack.c.bf16 %v165_v50, %v160_v48  ;;  %v175_v62 = vld [vmem:[%s1223_s1 + $0x4e8] sm:$0xff] }
  0x2b   :  { %528 = vmatprep.subr.bf16.mxu0 %v527_v60  ;;  %592 = vmatprep.subr.bf16.mxu1 %v591_v0  ;;  %v547_v57 = vpack.c.bf16 %v174_v52, %v169_v51  ;;  %v168_v58 = vld [vmem:[%s1223_s1 + $0x4b0] sm:$0xff]  ;;  %v173_v59 = vld [vmem:[%s1223_s1 + $0x4d8] sm:$0xff]  ;;  %v170_v60 = vld [vmem:[%s1223_s1 + $0x4c0] sm:$0xff]  ;;  %v611_v61 = vpack.c.bf16 %v176_v54, %v171_v53  ;;  %v180_v52 = vlaneseq }
  0x2c   :  { %v102_v63 = vld [vmem:[%s1223_s1 + $0x2a0] sm:$0xff]  ;;  %v107_v0 = vld [vmem:[%s1223_s1 + $0x2c8] sm:$0xff]  ;;  %v549_v1 = vpack.c.bf16 %v173_v59, %v168_v58  ;;  %v613_v2 = vpack.c.bf16 %v175_v62, %v170_v60  ;;  %v117_v7 = vld [vmem:[%s1223_s1 + $0x318] sm:$0xff] }
  0x2d   :  { %v615_v3 = vpack.c.bf16 %v107_v0, %v102_v63  ;;  %v22_v4 = vld [vmem:[%s1223_s1 + $0x20] sm:$0xff]  ;;  %v27_v5 = vld [vmem:[%s1223_s1 + $0x48] sm:$0xff]  ;;  %v32_v11 = vld [vmem:[%s1223_s1 + $0x70] sm:$0xff]  ;;  %v181_v53 = vshrl.u32 %v180_v52, 7 }
  0x2e   :  { %530 = vmatpush1.bf16.msra.mxu0 %v529_v6  ;;  %594 = vmatpush1.bf16.msra.mxu1 %v593_v8  ;;  %v112_v6 = vld [vmem:[%s1223_s1 + $0x2f0] sm:$0xff]  ;;  %v1095_v8 = vld [vmem:[%s1224_s0] sm:$0xff]  ;;  %v37_v12 = vld [vmem:[%s1223_s1 + $0x98] sm:$0xff] }
  0x2f   :  { %532 = vmatprep.subr.bf16.mxu0 %v531_v9  ;;  %596 = vmatprep.subr.bf16.mxu1 %v595_v13  ;;  %v617_v9 = vpack.c.bf16 %v27_v5, %v22_v4  ;;  %v619_v10 = vpack.c.bf16 %v117_v7, %v112_v6  ;;  %v122_v13 = vld [vmem:[%s1223_s1 + $0x340] sm:$0xff]  ;;  %v127_v14 = vld [vmem:[%s1223_s1 + $0x368] sm:$0xff]  ;;  %v17_v15 = vld [vmem:[%s1224_s0 + $0x18] sm:$0xff]  ;;  %v621_v17 = vpack.c.bf16 %v37_v12, %v32_v11  ;;  %v182_v54 = vsub.s32 0, %v181_v53 }
  0x30   :  { %v1117_v18 = vld [vmem:[%s1224_s0 + $0x10] sm:$0xff]  ;;  %v137_v23 = vld [vmem:[%s1223_s1 + $0x3b8] sm:$0xff]  ;;  %v142_v28 = vld [vmem:[%s1223_s1 + $0x3e0] sm:$0xff]  ;;  %v194_v58 = vsub.s32 3, %v181_v53 }
  0x31   :  { %v132_v22 = vld [vmem:[%s1223_s1 + $0x390] sm:$0xff]  ;;  %v57_v27 = vld [vmem:[%s1223_s1 + $0x138] sm:$0xff]  ;;  %v147_v29 = vld [vmem:[%s1223_s1 + $0x408] sm:$0xff] }
  0x32   :  { %534 = vmatpush1.bf16.msra.mxu0 %v533_v19  ;;  %598 = vmatpush1.bf16.msra.mxu1 %v597_v20  ;;  %v623_v19 = vpack.c.bf16 %v127_v14, %v122_v13  ;;  %v42_v20 = vld [vmem:[%s1223_s1 + $0xc0] sm:$0xff]  ;;  %v52_v26 = vld [vmem:[%s1223_s1 + $0x110] sm:$0xff]  ;;  %v77_v38 = vld [vmem:[%s1223_s1 + $0x1d8] sm:$0xff] }
  0x33   :  { %536 = vmatprep.subr.bf16.mxu0 %v535_v21  ;;  %600 = vmatprep.subr.bf16.mxu1 %v599_v25  ;;  %v47_v21 = vld [vmem:[%s1223_s1 + $0xe8] sm:$0xff]  ;;  %v627_v25 = vpack.c.bf16 %v137_v23, %v132_v22  ;;  %v629_v30 = vpack.c.bf16 %v57_v27, %v52_v26  ;;  %v152_v34 = vld [vmem:[%s1223_s1 + $0x430] sm:$0xff]  ;;  %v162_v39 = vld [vmem:[%s1223_s1 + $0x480] sm:$0xff] }
  0x34   :  { %v625_v24 = vpack.c.bf16 %v47_v21, %v42_v20  ;;  %v167_v40 = vld [vmem:[%s1223_s1 + $0x4a8] sm:$0xff]  ;;  %v177_v46 = vld [vmem:[%s1223_s1 + $0x4f8] sm:$0xff] }
  0x35   :  { %v639_v42 = vpack.c.bf16 %v167_v40, %v162_v39  ;;  %v97_v50 = vld [vmem:[%s1223_s1 + $0x278] sm:$0xff] }
  0x36   :  { %538 = vmatpush1.bf16.msra.mxu0 %v537_v31  ;;  %602 = vmatpush1.bf16.msra.mxu1 %v601_v32  ;;  %v631_v31 = vpack.c.bf16 %v147_v29, %v142_v28  ;;  %v62_v32 = vld [vmem:[%s1223_s1 + $0x160] sm:$0xff] }
  0x37   :  { %540 = vmatprep.subr.bf16.mxu0 %v539_v33  ;;  %604 = vmatprep.subr.bf16.mxu1 %v603_v37  ;;  %v67_v33 = vld [vmem:[%s1223_s1 + $0x188] sm:$0xff]  ;;  %v72_v37 = vld [vmem:[%s1223_s1 + $0x1b0] sm:$0xff] }
  0x38   :  { %v633_v35 = vpack.c.bf16 %v67_v33, %v62_v32  ;;  %v637_v41 = vpack.c.bf16 %v77_v38, %v72_v37 }
  0x3a   :  { %542 = vmatpush1.bf16.msra.mxu0 %v541_v43  ;;  %606 = vmatpush1.bf16.msra.mxu1 %v605_v44  ;;  %v82_v43 = vld [vmem:[%s1223_s1 + $0x200] sm:$0xff]  ;;  %v87_v44 = vld [vmem:[%s1223_s1 + $0x228] sm:$0xff] }
  0x3b   :  { %544 = vmatprep.subr.bf16.mxu0 %v543_v45  ;;  %608 = vmatprep.subr.bf16.mxu1 %v607_v49  ;;  %v172_v45 = vld [vmem:[%s1223_s1 + $0x4d0] sm:$0xff]  ;;  %v641_v47 = vpack.c.bf16 %v87_v44, %v82_v43 }
  0x3c   :  { %v643_v48 = vpack.c.bf16 %v177_v46, %v172_v45  ;;  %v92_v49 = vld [vmem:[%s1223_s1 + $0x250] sm:$0xff] }
  0x3d   :  { %v645_v51 = vpack.c.bf16 %v97_v50, %v92_v49 }
  0x3e   :  { %546 = vmatpush1.bf16.msra.mxu0 %v545_v55  ;;  %610 = vmatpush1.bf16.msra.mxu1 %v609_v56  ;;  %v178_v55 = vld [vmem:[%s1225_s2] sm:$0x1f]  ;;  %v190_v56 = vsub.s32 2, %v181_v53 }
  0x3f   :  { %548 = vmatprep.subr.bf16.mxu0 %v547_v57  ;;  %612 = vmatprep.subr.bf16.mxu1 %v611_v61  ;;  %v186_v57 = vsub.s32 1, %v181_v53  ;;  %v183_v59 = vrot.slane %v178_v55, %v182_v54  ;;  %v195_v62 = vrot.slane %v178_v55, %v194_v58 }
  0x40   :  { %v191_v60 = vrot.slane %v178_v55, %v190_v56 }
  0x41   :  { %v187_v61 = vrot.slane %v178_v55, %v186_v57 }
  0x42   :  { %550 = vmatpush1.bf16.msra.mxu0 %v549_v1  ;;  %614 = vmatpush1.bf16.msra.mxu1 %v613_v2 }
  0x43   :  { %616 = vmatprep.subr.bf16.mxu0 %v615_v3  ;;  %647 = vmatprep.subr.bf16.mxu1 %v615_v3 }
  0x45   :  { %270 = vmatmul.mubr.f32.vlgmr.msra.gmra.mrb[0].mxu0 %v1095_v8  ;;  %347 = vmatmul.mubr.f32.vlgmr.msra.gmra.mrb[0].mxu1 %v1095_v8 }
  0x46   :  { %618 = vmatpush3.bf16.msra.mxu0 %v617_v9  ;;  %655 = vmatpush3.bf16.msra.mxu1 %v617_v9 }
  0x47   :  { %620 = vmatprep.subr.bf16.mxu0 %v619_v10  ;;  %648 = vmatprep.subr.bf16.mxu1 %v619_v10 }
  0x48   :  { %275 = vmatprep.mubr.f32.mxu0 %v17_v15  ;;  %352 = vmatprep.mubr.f32.mxu1 %v17_v15 }
  0x49   :  { %276 = vmatmul.mubr.f32.gmra.mrb[2].mxu0 %v1117_v18  ;;  %353 = vmatmul.mubr.f32.gmra.mrb[2].mxu1 %v1117_v18 }
  0x4a   :  { %622 = vmatpush3.bf16.msra.mxu0 %v621_v17  ;;  %656 = vmatpush3.bf16.msra.mxu1 %v621_v17 }
  0x4b   :  { %624 = vmatprep.subr.bf16.mxu0 %v623_v19  ;;  %649 = vmatprep.subr.bf16.mxu1 %v623_v19 }
  0x4c   :  { %423 = vmatprep.mubr.f32.mxu0 %v980_v16  ;;  %428 = vmatprep.mubr.f32.mxu1 %v17_v15  ;;  %v157_v16 = vld [vmem:[%s1223_s1 + $0x458] sm:$0xff]  ;;  %v198_v15 = vsub.s32 4, %v181_v53 }
  0x4d   :  { %v635_v36 = vpack.c.bf16 %v157_v16, %v152_v34 }
  0x4e   :  { %626 = vmatpush3.bf16.msra.mxu0 %v625_v24  ;;  %657 = vmatpush3.bf16.msra.mxu1 %v625_v24 }
  0x4f   :  { %628 = vmatprep.subr.bf16.mxu0 %v627_v25  ;;  %650 = vmatprep.subr.bf16.mxu1 %v627_v25 }
  0x52   :  { %630 = vmatpush3.bf16.msra.mxu0 %v629_v30  ;;  %658 = vmatpush3.bf16.msra.mxu1 %v629_v30 }
  0x53   :  { %632 = vmatprep.subr.bf16.mxu0 %v631_v31  ;;  %651 = vmatprep.subr.bf16.mxu1 %v631_v31 }
  0x56   :  { %634 = vmatpush3.bf16.msra.mxu0 %v633_v35  ;;  %659 = vmatpush3.bf16.msra.mxu1 %v633_v35 }
  0x57   :  { %636 = vmatprep.subr.bf16.mxu0 %v635_v36  ;;  %652 = vmatprep.subr.bf16.mxu1 %v635_v36 }
  0x5a   :  { %638 = vmatpush3.bf16.msra.mxu0 %v637_v41  ;;  %660 = vmatpush3.bf16.msra.mxu1 %v637_v41 }
  0x5b   :  { %640 = vmatprep.subr.bf16.mxu0 %v639_v42  ;;  %653 = vmatprep.subr.bf16.mxu1 %v639_v42 }
  0x5e   :  { %642 = vmatpush3.bf16.msra.mxu0 %v641_v47  ;;  %661 = vmatpush3.bf16.msra.mxu1 %v641_v47 }
  0x5f   :  { %644 = vmatprep.subr.bf16.mxu0 %v643_v48  ;;  %654 = vmatprep.subr.bf16.mxu1 %v643_v48 }
  0x62   :  { %646 = vmatpush3.bf16.msra.mxu0 %v645_v51  ;;  %662 = vmatpush3.bf16.msra.mxu1 %v645_v51 }
  0x65   :  { %424 = vmatmul.mubr.f32.vlgmr.msra.gmra.mrb[4].mxu0 %v1095_v8  ;;  %429 = vmatmul.mubr.f32.vlgmr.msra.gmra.mrb[4].mxu1 %v1117_v18  ;;  %v199_v18 = vrot.slane %v178_v55, %v198_v15 }
 0x118   :  { %v271_v63 = vpop.f32.mrb[0].mxu0  ;;  %v348_v1 = vpop.f32.mrb[0].mxu1 }
 0x119   :  { %v272_v0 = vadd.f32 %v271_v63, %v183_v59  ;;  %v273_v2 = vpop.f32.mrb[1].mxu0  ;;  %v349_v3 = vadd.f32 %v348_v1, %v191_v60  ;;  %v350_v5 = vpop.f32.mrb[1].mxu1 }
 0x11a   :  { %v274_v4 = vadd.f32 %v273_v2, %v187_v61  ;;  %v351_v6 = vadd.f32 %v350_v5, %v195_v62 }
 0x11b   :  { %434 = vst [vmem:[%s1226_s3] sm:$0xff] %v272_v0  ;;  %436 = vst [vmem:[%s1226_s3 + $0x10] sm:$0xff] %v349_v3 }
 0x11c   :  { %435 = vst [vmem:[%s1226_s3 + $0x8] sm:$0xff] %v274_v4  ;;  %v277_v7 = vpop.f32.mrb[2].mxu0  ;;  %437 = vst [vmem:[%s1226_s3 + $0x18] sm:$0xff] %v351_v6  ;;  %v354_v9 = vpop.f32.mrb[2].mxu1 }
 0x11d   :  { %v278_v8 = vadd.f32 %v277_v7, %v183_v59  ;;  %v279_v10 = vpop.f32.mrb[3].mxu0  ;;  %v355_v11 = vadd.f32 %v354_v9, %v191_v60  ;;  %v356_v13 = vpop.f32.mrb[3].mxu1 }
 0x11e   :  { %v280_v12 = vadd.f32 %v279_v10, %v187_v61  ;;  %v357_v14 = vadd.f32 %v356_v13, %v195_v62 }
 0x11f   :  { %440 = vst [vmem:[%s1226_s3 + $0x28] sm:$0xff] %v278_v8  ;;  %442 = vst [vmem:[%s1226_s3 + $0x38] sm:$0xff] %v355_v11 }
 0x120   :  { %441 = vst [vmem:[%s1226_s3 + $0x30] sm:$0xff] %v280_v12  ;;  %443 = vst [vmem:[%s1226_s3 + $0x40] sm:$0xff] %v357_v14 }
 0x138   :  { %v481_v17 = vpop.f32.mrb[4].mxu0  ;;  %v484_v19 = vpop.f32.mrb[4].mxu1 }
 0x139   :  { %v482_v20 = vpop.f32.mrb[5].mxu0  ;;  %v485_v22 = vpop.f32.mrb[5].mxu1 }
 0x13a   :  { %v483_v21 = vadd.f32 %v482_v20, %v481_v17  ;;  %v486_v23 = vadd.f32 %v485_v22, %v484_v19 }
 0x13c   :  { %v426_v24 = vadd.f32 %v483_v21, %v199_v18  ;;  %v431_v25 = vadd.f32 %v486_v23, %v199_v18 }
 0x13e   :  { %439 = vst.msk [vmem:[%s1226_s3 + $0x20] sm:$0xff] %vm438_vm0, %v426_v24  ;;  %444 = vst.msk [vmem:[%s1226_s3 + $0x48] sm:$0xff] %vm438_vm0, %v431_v25 }

// kernel: bigru_nacgt_forward.24
= control target key start
LH: loop header
LB: loop body
LE: loop exit
PB: predicated region body
PF: predicated region fallthrough
CT: control target
= control target key end

     0   :  { %s1133_s12 = smov 0   ;;  %s1640_s0 = inlined_call_operand.vmem [shape: f32[8,2,3,192], index: 0, kind: input, shape index: {}]   ;;  %s1641_s1 = inlined_call_operand.vmem [shape: f32[3,192,192], index: 1, kind: input, shape index: {}]   ;;  %s1642_s2 = inlined_call_operand.vmem [shape: f32[3,1,192], index: 2, kind: input, shape index: {}]   ;;  %s1643_s3 = inlined_call_operand.vmem [shape: f32[8,2,192], index: 3, kind: output, shape index: {}]  }
   0x1 LB: > { %s805_s13 = sadd.s32 4294967295, %s1107_s12   ;;  %p809_p0 = scmp.ge.s32.totalorder %s1107_s12, 1  ;;  %s1107_s12 = sphi %s1133_s12, %s13_s12  }
   0x2   : > { %p137_p1 = scmp.lt.s32.totalorder %s1107_s12, 9 }
   0x4   : > { %p138_p2 = pnand %p809_p0, %p137_p1 }
   0x5   : > { %p161_p3 = scmp.lt.s32.totalorder (!%p138_p2), %s805_s13, 7  ;;  %p814_p4 = scmp.ne.s32.totalorder (!%p138_p2), %s805_s13, 0 }
   0x6   : > { %141 = sbr.rel (%p138_p2) target bundleno = 367 (0x16f), region = 32 }
   0xd   : > { %s162_s14 = scalar_select %p161_p3, %s805_s13, 7 }
   0xe   : > { %174 = sbr.rel (%p814_p4) target bundleno = 21 (0x15), region = 36  ;;  %vm175_vm0 = vcmask (!%p814_p4), 1041408   ;;  %vm176_vm1 = vcmask (!%p814_p4), 519170   ;;  %v1109_v0 = vmov (!%p814_p4), 0.0  }
   0xf   : > { %s923_s15 = sshll.u32 %s162_s14, 4  ;;  %s924_s16 = sshll.u32 %s162_s14, 2  ;;  %vm177_vm2 = vmor (!%p814_p4), %vm176_vm1, %vm175_vm0 }
  0x10   : > { %s1144_s19 = scalar_lea.vmem %s1640_s0, %s923_s15  ;;  %s1149_s22 = scalar_lea.vmem %s1643_s3, %s924_s16  ;;  %178 = vst.msk [vmem:[#allocation2] sm:$0xf] (!%p814_p4), %vm177_vm2, %v1109_v0 }
  0x15 PF: > { %v192_v1 = vld [vmem:[%s1641_s1 + $0x8] sm:$0xff]  ;;  %v194_v2 = vld [vmem:[%s1641_s1 + $0x18] sm:$0xff]  ;;  %v191_v3 = vld [vmem:[%s1641_s1] sm:$0xff]  ;;  %v241_v30 = vlaneseq  ;;  %v1110_v31 = vmov 1983009808   ;;  %vm261_vm3 = vcmask 523264  }
  0x16   : > { %v925_v4 = vpack.c.bf16 %v194_v2, %v192_v1  ;;  %v193_v5 = vld [vmem:[%s1641_s1 + $0x10] sm:$0xff]  ;;  %v196_v6 = vld [vmem:[%s1641_s1 + $0x28] sm:$0xff]  ;;  %v198_v7 = vld [vmem:[%s1641_s1 + $0x38] sm:$0xff]  ;;  %v253_v32 = vunpack.c.l.s4 %v1110_v31  ;;  %vm745_vm4 = vcmask 1041408   ;;  %vm746_vm5 = vcmask 519170  }
  0x17   : > { %v927_v8 = vpack.c.bf16 %v193_v5, %v191_v3  ;;  %v929_v9 = vpack.c.bf16 %v198_v7, %v196_v6  ;;  %v195_v10 = vld [vmem:[%s1641_s1 + $0x20] sm:$0xff]  ;;  %v197_v11 = vld [vmem:[%s1641_s1 + $0x30] sm:$0xff]  ;;  %v200_v12 = vld [vmem:[%s1641_s1 + $0x48] sm:$0xff]  ;;  %v1241_v47 = vshrl.u32 %v241_v30, 7 }
  0x18   : > { %926 = vmatprep.subr.bf16.mxu0 %v925_v4  ;;  %v202_v13 = vld [vmem:[%s1641_s1 + $0x58] sm:$0xff]  ;;  %v931_v14 = vpack.c.bf16 %v197_v11, %v195_v10  ;;  %v199_v16 = vld [vmem:[%s1641_s1 + $0x40] sm:$0xff]  ;;  %v201_v17 = vld [vmem:[%s1641_s1 + $0x50] sm:$0xff]  ;;  %v254_v48 = vunpack.c.0.s8 %v253_v32 }
  0x19   : > { %928 = vmatpush1.bf16.msra.mxu0 %v927_v8  ;;  %v933_v15 = vpack.c.bf16 %v202_v13, %v200_v12  ;;  %v204_v18 = vld [vmem:[%s1641_s1 + $0x68] sm:$0xff]  ;;  %v206_v19 = vld [vmem:[%s1641_s1 + $0x78] sm:$0xff]  ;;  %v935_v20 = vpack.c.bf16 %v201_v17, %v199_v16  ;;  %v203_v22 = vld [vmem:[%s1641_s1 + $0x60] sm:$0xff] }
  0x1a   : > { %930 = vmatprep.subr.bf16.mxu0 %v929_v9  ;;  %v937_v21 = vpack.c.bf16 %v206_v19, %v204_v18  ;;  %v205_v23 = vld [vmem:[%s1641_s1 + $0x70] sm:$0xff]  ;;  %v208_v24 = vld [vmem:[%s1641_s1 + $0x88] sm:$0xff]  ;;  %v210_v25 = vld [vmem:[%s1641_s1 + $0x98] sm:$0xff]  ;;  %v257_v63 = vsub.s32 %v254_v48, %v1241_v47 }
  0x1b   : > { %v822_v26 = vld [vmem:[%s1641_s1 + $0x188] sm:$0xff]  ;;  %v824_v27 = vld [vmem:[%s1641_s1 + $0x198] sm:$0xff]  ;;  %v821_v28 = vld [vmem:[%s1641_s1 + $0x180] sm:$0xff]  ;;  %v939_v33 = vpack.c.bf16 %v205_v23, %v203_v22  ;;  %v941_v38 = vpack.c.bf16 %v210_v25, %v208_v24 }
  0x1c   : > { %v823_v29 = vld [vmem:[%s1641_s1 + $0x190] sm:$0xff]  ;;  %v207_v34 = vld [vmem:[%s1641_s1 + $0x80] sm:$0xff]  ;;  %v973_v36 = vpack.c.bf16 %v824_v27, %v822_v26  ;;  %v212_v39 = vld [vmem:[%s1641_s1 + $0xa8] sm:$0xff] }
  0x1d   : > { %932 = vmatpush1.bf16.msra.mxu0 %v931_v14  ;;  %v209_v35 = vld [vmem:[%s1641_s1 + $0x90] sm:$0xff]  ;;  %v975_v37 = vpack.c.bf16 %v823_v29, %v821_v28  ;;  %v826_v40 = vld [vmem:[%s1641_s1 + $0x1a8] sm:$0xff]  ;;  %v828_v41 = vld [vmem:[%s1641_s1 + $0x1b8] sm:$0xff] }
  0x1e   : > { %934 = vmatprep.subr.bf16.mxu0 %v933_v15  ;;  %v214_v42 = vld [vmem:[%s1641_s1 + $0xb8] sm:$0xff]  ;;  %974 = vmatprep.subr.bf16.mxu1 %v973_v36  ;;  %v977_v43 = vpack.c.bf16 %v828_v41, %v826_v40  ;;  %v825_v44 = vld [vmem:[%s1641_s1 + $0x1a0] sm:$0xff]  ;;  %v827_v45 = vld [vmem:[%s1641_s1 + $0x1b0] sm:$0xff]  ;;  %v943_v49 = vpack.c.bf16 %v209_v35, %v207_v34 }
  0x1f   : > { %976 = vmatpush1.bf16.msra.mxu1 %v975_v37  ;;  %v979_v46 = vpack.c.bf16 %v827_v45, %v825_v44  ;;  %v830_v50 = vld [vmem:[%s1641_s1 + $0x1c8] sm:$0xff]  ;;  %v832_v51 = vld [vmem:[%s1641_s1 + $0x1d8] sm:$0xff]  ;;  %v829_v52 = vld [vmem:[%s1641_s1 + $0x1c0] sm:$0xff]  ;;  %v945_v53 = vpack.c.bf16 %v214_v42, %v212_v39 }
  0x20   : > { %978 = vmatprep.subr.bf16.mxu1 %v977_v43  ;;  %v211_v54 = vld [vmem:[%s1641_s1 + $0xa0] sm:$0xff]  ;;  %v213_v55 = vld [vmem:[%s1641_s1 + $0xb0] sm:$0xff]  ;;  %v981_v56 = vpack.c.bf16 %v832_v51, %v830_v50  ;;  %v216_v58 = vld [vmem:[%s1641_s1 + $0xc8] sm:$0xff] }
  0x21   : > { %936 = vmatpush1.bf16.msra.mxu0 %v935_v20  ;;  %v831_v57 = vld [vmem:[%s1641_s1 + $0x1d0] sm:$0xff]  ;;  %v218_v59 = vld [vmem:[%s1641_s1 + $0xd8] sm:$0xff]  ;;  %v834_v60 = vld [vmem:[%s1641_s1 + $0x1e8] sm:$0xff]  ;;  %v947_v0 = vpack.c.bf16 %v213_v55, %v211_v54 }
  0x22   : > { %938 = vmatprep.subr.bf16.mxu0 %v937_v21  ;;  %v983_v61 = vpack.c.bf16 %v831_v57, %v829_v52  ;;  %v836_v62 = vld [vmem:[%s1641_s1 + $0x1f8] sm:$0xff]  ;;  %v215_v1 = vld [vmem:[%s1641_s1 + $0xc0] sm:$0xff]  ;;  %v835_v4 = vld [vmem:[%s1641_s1 + $0x1f0] sm:$0xff]  ;;  %v949_v5 = vpack.c.bf16 %v218_v59, %v216_v58 }
  0x23   : > { %980 = vmatpush1.bf16.msra.mxu1 %v979_v46  ;;  %v985_v2 = vpack.c.bf16 %v836_v62, %v834_v60  ;;  %v833_v3 = vld [vmem:[%s1641_s1 + $0x1e0] sm:$0xff]  ;;  %v217_v6 = vld [vmem:[%s1641_s1 + $0xd0] sm:$0xff]  ;;  %v838_v7 = vld [vmem:[%s1641_s1 + $0x208] sm:$0xff] }
  0x24   : > { %982 = vmatprep.subr.bf16.mxu1 %v981_v56  ;;  %v840_v8 = vld [vmem:[%s1641_s1 + $0x218] sm:$0xff]  ;;  %v220_v9 = vld [vmem:[%s1641_s1 + $0xe8] sm:$0xff]  ;;  %v1298_v11 = vld [vmem:[#allocation2] sm:$0xf]  ;;  %v987_v12 = vpack.c.bf16 %v835_v4, %v833_v3  ;;  %v951_v14 = vpack.c.bf16 %v217_v6, %v215_v1 }
  0x25   : > { %940 = vmatpush1.bf16.msra.mxu0 %v939_v33  ;;  %v222_v10 = vld [vmem:[%s1641_s1 + $0xf8] sm:$0xff]  ;;  %v1301_v13 = vrot.slane %v1298_v11, %v257_v63  ;;  %v219_v15 = vld [vmem:[%s1641_s1 + $0xe0] sm:$0xff]  ;;  %v989_v16 = vpack.c.bf16 %v840_v8, %v838_v7  ;;  %v839_v18 = vld [vmem:[%s1641_s1 + $0x210] sm:$0xff] }
  0x26   : > { %942 = vmatprep.subr.bf16.mxu0 %v941_v38  ;;  %v837_v17 = vld [vmem:[%s1641_s1 + $0x200] sm:$0xff]  ;;  %v953_v19 = vpack.c.bf16 %v222_v10, %v220_v9  ;;  %v221_v20 = vld [vmem:[%s1641_s1 + $0xf0] sm:$0xff]  ;;  %v842_v22 = vld [vmem:[%s1641_s1 + $0x228] sm:$0xff] }
  0x27   : > { %984 = vmatpush1.bf16.msra.mxu1 %v983_v61  ;;  %v1317_v21 = vcombine.high %v1301_v13, %v1301_v13  ;;  %v844_v23 = vld [vmem:[%s1641_s1 + $0x238] sm:$0xff]  ;;  %v224_v24 = vld [vmem:[%s1641_s1 + $0x108] sm:$0xff]  ;;  %v991_v26 = vpack.c.bf16 %v839_v18, %v837_v17  ;;  %v955_v27 = vpack.c.bf16 %v221_v20, %v219_v15  ;;  %v223_v28 = vld [vmem:[%s1641_s1 + $0x100] sm:$0xff] }
  0x28   : > { %986 = vmatprep.subr.bf16.mxu1 %v985_v2  ;;  %v226_v25 = vld [vmem:[%s1641_s1 + $0x118] sm:$0xff]  ;;  %v993_v29 = vpack.c.bf16 %v844_v23, %v842_v22  ;;  %v841_v30 = vld [vmem:[%s1641_s1 + $0x220] sm:$0xff]  ;;  %v843_v31 = vld [vmem:[%s1641_s1 + $0x230] sm:$0xff] }
  0x29   : > { %944 = vmatpush1.bf16.msra.mxu0 %v943_v49  ;;  %820 = vmatprep.mubr.msk.f32.mxu0 %vm261_vm3, %v1317_v21  ;;  %v957_v32 = vpack.c.bf16 %v226_v25, %v224_v24  ;;  %v225_v33 = vld [vmem:[%s1641_s1 + $0x110] sm:$0xff]  ;;  %v846_v34 = vld [vmem:[%s1641_s1 + $0x248] sm:$0xff]  ;;  %v848_v35 = vld [vmem:[%s1641_s1 + $0x258] sm:$0xff]  ;;  %v995_v38 = vpack.c.bf16 %v843_v31, %v841_v30 }
  0x2a   : > { %946 = vmatprep.subr.bf16.mxu0 %v945_v53  ;;  %870 = vmatprep.mubr.msk.f32.mxu1 %vm261_vm3, %v1317_v21  ;;  %v228_v36 = vld [vmem:[%s1641_s1 + $0x128] sm:$0xff]  ;;  %v230_v37 = vld [vmem:[%s1641_s1 + $0x138] sm:$0xff]  ;;  %v959_v39 = vpack.c.bf16 %v225_v33, %v223_v28  ;;  %v227_v40 = vld [vmem:[%s1641_s1 + $0x120] sm:$0xff]  ;;  %v997_v41 = vpack.c.bf16 %v848_v35, %v846_v34 }
  0x2b   : > { %988 = vmatpush1.bf16.msra.mxu1 %v987_v12  ;;  %v845_v42 = vld [vmem:[%s1641_s1 + $0x240] sm:$0xff]  ;;  %v847_v43 = vld [vmem:[%s1641_s1 + $0x250] sm:$0xff]  ;;  %v961_v44 = vpack.c.bf16 %v230_v37, %v228_v36  ;;  %v850_v46 = vld [vmem:[%s1641_s1 + $0x268] sm:$0xff] }
  0x2c   : > { %990 = vmatprep.subr.bf16.mxu1 %v989_v16  ;;  %v229_v45 = vld [vmem:[%s1641_s1 + $0x130] sm:$0xff]  ;;  %v852_v48 = vld [vmem:[%s1641_s1 + $0x278] sm:$0xff]  ;;  %v232_v49 = vld [vmem:[%s1641_s1 + $0x148] sm:$0xff]  ;;  %v999_v51 = vpack.c.bf16 %v847_v43, %v845_v42 }
  0x2d   : > { %948 = vmatpush1.bf16.msra.mxu0 %v947_v0  ;;  %v234_v50 = vld [vmem:[%s1641_s1 + $0x158] sm:$0xff]  ;;  %v963_v52 = vpack.c.bf16 %v229_v45, %v227_v40  ;;  %v231_v53 = vld [vmem:[%s1641_s1 + $0x140] sm:$0xff]  ;;  %v1001_v54 = vpack.c.bf16 %v852_v48, %v850_v46  ;;  %v851_v56 = vld [vmem:[%s1641_s1 + $0x270] sm:$0xff] }
  0x2e   : > { %950 = vmatprep.subr.bf16.mxu0 %v949_v5  ;;  %v849_v55 = vld [vmem:[%s1641_s1 + $0x260] sm:$0xff]  ;;  %v965_v57 = vpack.c.bf16 %v234_v50, %v232_v49  ;;  %v233_v58 = vld [vmem:[%s1641_s1 + $0x150] sm:$0xff]  ;;  %v854_v59 = vld [vmem:[%s1641_s1 + $0x288] sm:$0xff] }
  0x2f   : > { %992 = vmatpush1.bf16.msra.mxu1 %v991_v26  ;;  %v856_v60 = vld [vmem:[%s1641_s1 + $0x298] sm:$0xff]  ;;  %v236_v61 = vld [vmem:[%s1641_s1 + $0x168] sm:$0xff]  ;;  %v1003_v63 = vpack.c.bf16 %v851_v56, %v849_v55  ;;  %v967_v0 = vpack.c.bf16 %v233_v58, %v231_v53  ;;  %v235_v1 = vld [vmem:[%s1641_s1 + $0x160] sm:$0xff] }
  0x30   : > { %994 = vmatprep.subr.bf16.mxu1 %v993_v29  ;;  %v238_v62 = vld [vmem:[%s1641_s1 + $0x178] sm:$0xff]  ;;  %v1005_v2 = vpack.c.bf16 %v856_v60, %v854_v59  ;;  %v853_v3 = vld [vmem:[%s1641_s1 + $0x280] sm:$0xff]  ;;  %v855_v4 = vld [vmem:[%s1641_s1 + $0x290] sm:$0xff] }
  0x31   : > { %952 = vmatpush1.bf16.msra.mxu0 %v951_v14  ;;  %v969_v5 = vpack.c.bf16 %v238_v62, %v236_v61  ;;  %v237_v6 = vld [vmem:[%s1641_s1 + $0x170] sm:$0xff]  ;;  %v858_v7 = vld [vmem:[%s1641_s1 + $0x2a8] sm:$0xff]  ;;  %v860_v8 = vld [vmem:[%s1641_s1 + $0x2b8] sm:$0xff]  ;;  %v1007_v12 = vpack.c.bf16 %v855_v4, %v853_v3 }
  0x32   : > { %954 = vmatprep.subr.bf16.mxu0 %v953_v19  ;;  %v872_v9 = vld [vmem:[%s1641_s1 + $0x308] sm:$0xff]  ;;  %v874_v10 = vld [vmem:[%s1641_s1 + $0x318] sm:$0xff]  ;;  %v971_v14 = vpack.c.bf16 %v237_v6, %v235_v1  ;;  %v871_v15 = vld [vmem:[%s1641_s1 + $0x300] sm:$0xff]  ;;  %v1009_v16 = vpack.c.bf16 %v860_v8, %v858_v7 }
  0x33   : > { %996 = vmatpush1.bf16.msra.mxu1 %v995_v38  ;;  %v857_v17 = vld [vmem:[%s1641_s1 + $0x2a0] sm:$0xff]  ;;  %v859_v18 = vld [vmem:[%s1641_s1 + $0x2b0] sm:$0xff]  ;;  %v1021_v19 = vpack.c.bf16 %v874_v10, %v872_v9  ;;  %v862_v22 = vld [vmem:[%s1641_s1 + $0x2c8] sm:$0xff] }
  0x34   : > { %998 = vmatprep.subr.bf16.mxu1 %v997_v41  ;;  %v873_v20 = vld [vmem:[%s1641_s1 + $0x310] sm:$0xff]  ;;  %v864_v23 = vld [vmem:[%s1641_s1 + $0x2d8] sm:$0xff]  ;;  %v876_v24 = vld [vmem:[%s1641_s1 + $0x328] sm:$0xff]  ;;  %v1011_v26 = vpack.c.bf16 %v859_v18, %v857_v17 }
  0x35   : > { %956 = vmatpush1.bf16.msra.mxu0 %v955_v27  ;;  %v878_v25 = vld [vmem:[%s1641_s1 + $0x338] sm:$0xff]  ;;  %v1023_v27 = vpack.c.bf16 %v873_v20, %v871_v15  ;;  %v875_v28 = vld [vmem:[%s1641_s1 + $0x320] sm:$0xff]  ;;  %v1013_v29 = vpack.c.bf16 %v864_v23, %v862_v22  ;;  %v863_v31 = vld [vmem:[%s1641_s1 + $0x2d0] sm:$0xff] }
  0x36   : > { %958 = vmatprep.subr.bf16.mxu0 %v957_v32  ;;  %v861_v30 = vld [vmem:[%s1641_s1 + $0x2c0] sm:$0xff]  ;;  %v1025_v32 = vpack.c.bf16 %v878_v25, %v876_v24  ;;  %v877_v33 = vld [vmem:[%s1641_s1 + $0x330] sm:$0xff]  ;;  %v866_v34 = vld [vmem:[%s1641_s1 + $0x2e8] sm:$0xff] }
  0x37   : > { %1000 = vmatpush1.bf16.msra.mxu1 %v999_v51  ;;  %v868_v35 = vld [vmem:[%s1641_s1 + $0x2f8] sm:$0xff]  ;;  %v880_v36 = vld [vmem:[%s1641_s1 + $0x348] sm:$0xff]  ;;  %v1015_v38 = vpack.c.bf16 %v863_v31, %v861_v30  ;;  %v865_v41 = vld [vmem:[%s1641_s1 + $0x2e0] sm:$0xff] }
  0x38   : > { %1002 = vmatprep.subr.bf16.mxu1 %v1001_v54  ;;  %v882_v37 = vld [vmem:[%s1641_s1 + $0x358] sm:$0xff]  ;;  %v1017_v40 = vpack.c.bf16 %v868_v35, %v866_v34  ;;  %v867_v42 = vld [vmem:[%s1641_s1 + $0x2f0] sm:$0xff]  ;;  %v884_v46 = vld [vmem:[%s1641_s1 + $0x368] sm:$0xff] }
  0x39   : > { %960 = vmatpush1.bf16.msra.mxu0 %v959_v39  ;;  %v1027_v39 = vpack.c.bf16 %v877_v33, %v875_v28  ;;  %v1029_v43 = vpack.c.bf16 %v882_v37, %v880_v36  ;;  %v881_v45 = vld [vmem:[%s1641_s1 + $0x350] sm:$0xff]  ;;  %v886_v48 = vld [vmem:[%s1641_s1 + $0x378] sm:$0xff]  ;;  %v1019_v49 = vpack.c.bf16 %v867_v42, %v865_v41  ;;  %v888_v53 = vld [vmem:[%s1641_s1 + $0x388] sm:$0xff]  ;;  %v243_v41 = vsub.s32 0, %v1241_v47 }
  0x3a   : > { %962 = vmatprep.subr.bf16.mxu0 %v961_v44  ;;  %v879_v44 = vld [vmem:[%s1641_s1 + $0x340] sm:$0xff]  ;;  %v1033_v51 = vpack.c.bf16 %v886_v48, %v884_v46  ;;  %v890_v54 = vld [vmem:[%s1641_s1 + $0x398] sm:$0xff]  ;;  %v889_v58 = vld [vmem:[%s1641_s1 + $0x390] sm:$0xff] }
  0x3b   : > { %1004 = vmatpush1.bf16.msra.mxu1 %v1003_v63  ;;  %v1031_v50 = vpack.c.bf16 %v881_v45, %v879_v44  ;;  %v1037_v56 = vpack.c.bf16 %v890_v54, %v888_v53  ;;  %v892_v59 = vld [vmem:[%s1641_s1 + $0x3a8] sm:$0xff]  ;;  %v894_v60 = vld [vmem:[%s1641_s1 + $0x3b8] sm:$0xff]  ;;  %v891_v63 = vld [vmem:[%s1641_s1 + $0x3a0] sm:$0xff]  ;;  %v1111_v44 = vmov 1966171168  }
  0x3c   : > { %1006 = vmatprep.subr.bf16.mxu1 %v1005_v2  ;;  %v1041_v62 = vpack.c.bf16 %v894_v60, %v892_v59  ;;  %v896_v1 = vld [vmem:[%s1641_s1 + $0x3c8] sm:$0xff]  ;;  %v898_v2 = vld [vmem:[%s1641_s1 + $0x3d8] sm:$0xff]  ;;  %v897_v6 = vld [vmem:[%s1641_s1 + $0x3d0] sm:$0xff]  ;;  %v605_v45 = vunpack.c.l.s4 %v1111_v44 }
  0x3d   : > { %964 = vmatpush1.bf16.msra.mxu0 %v963_v52  ;;  %v883_v52 = vld [vmem:[%s1641_s1 + $0x360] sm:$0xff]  ;;  %v1045_v4 = vpack.c.bf16 %v898_v2, %v896_v1  ;;  %v900_v7 = vld [vmem:[%s1641_s1 + $0x3e8] sm:$0xff]  ;;  %v902_v8 = vld [vmem:[%s1641_s1 + $0x3f8] sm:$0xff] }
  0x3e   : > { %966 = vmatprep.subr.bf16.mxu0 %v965_v57  ;;  %v887_v57 = vld [vmem:[%s1641_s1 + $0x380] sm:$0xff]  ;;  %v1049_v10 = vpack.c.bf16 %v902_v8, %v900_v7  ;;  %v904_v15 = vld [vmem:[%s1641_s1 + $0x408] sm:$0xff]  ;;  %v905_v20 = vld [vmem:[%s1641_s1 + $0x410] sm:$0xff] }
  0x3f   : > { %1008 = vmatpush1.bf16.msra.mxu1 %v1007_v12  ;;  %v1039_v61 = vpack.c.bf16 %v889_v58, %v887_v57  ;;  %v899_v12 = vld [vmem:[%s1641_s1 + $0x3e0] sm:$0xff]  ;;  %v908_v22 = vld [vmem:[%s1641_s1 + $0x428] sm:$0xff]  ;;  %v910_v23 = vld [vmem:[%s1641_s1 + $0x438] sm:$0xff] }
  0x40   : > { %1010 = vmatprep.subr.bf16.mxu1 %v1009_v16  ;;  %v906_v16 = vld [vmem:[%s1641_s1 + $0x418] sm:$0xff]  ;;  %v1057_v25 = vpack.c.bf16 %v910_v23, %v908_v22  ;;  %v912_v28 = vld [vmem:[%s1641_s1 + $0x448] sm:$0xff]  ;;  %v913_v33 = vld [vmem:[%s1641_s1 + $0x450] sm:$0xff] }
  0x41   : > { %968 = vmatpush1.bf16.msra.mxu0 %v967_v0  ;;  %v893_v0 = vld [vmem:[%s1641_s1 + $0x3b0] sm:$0xff]  ;;  %v1053_v18 = vpack.c.bf16 %v906_v16, %v904_v15  ;;  %v916_v34 = vld [vmem:[%s1641_s1 + $0x468] sm:$0xff]  ;;  %v918_v35 = vld [vmem:[%s1641_s1 + $0x478] sm:$0xff] }
  0x42   : > { %970 = vmatprep.subr.bf16.mxu0 %v969_v5  ;;  %v1043_v3 = vpack.c.bf16 %v893_v0, %v891_v63  ;;  %v895_v5 = vld [vmem:[%s1641_s1 + $0x3c0] sm:$0xff]  ;;  %v1065_v37 = vpack.c.bf16 %v918_v35, %v916_v34  ;;  %v817_v16 = vld [vmem:[%s1144_s19 + $0x9] ss:$4 sm:$0x3]  ;;  %vm747_vm6 = vmor %vm746_vm5, %vm745_vm4 }
  0x43   : > { %1012 = vmatpush1.bf16.msra.mxu1 %v1011_v26  ;;  %v1047_v9 = vpack.c.bf16 %v897_v6, %v895_v5  ;;  %v907_v26 = vld [vmem:[%s1641_s1 + $0x420] sm:$0xff] }
  0x44   : > { %1014 = vmatprep.subr.bf16.mxu1 %v1013_v29  ;;  %v914_v29 = vld [vmem:[%s1641_s1 + $0x458] sm:$0xff]  ;;  %v239_v42 = vld [vmem:[%s1642_s2] sm:$0x3]  ;;  %v869_v54 = vld [vmem:[%s1642_s2 + $0x2] sm:$0x3] }
  0x45   : > { %972 = vmatpush1.bf16.msra.mxu0 %v971_v14  ;;  %v901_v14 = vld [vmem:[%s1641_s1 + $0x3f0] sm:$0xff]  ;;  %v1061_v31 = vpack.c.bf16 %v914_v29, %v912_v28  ;;  %v244_v46 = vrot.slane %v239_v42, %v243_v41  ;;  %v180_v0 = vld [vmem:[%s1144_s19] ss:$4 sm:$0x3] }
  0x46   : > { %1022 = vmatprep.subr.bf16.mxu0 %v1021_v19  ;;  %v1051_v17 = vpack.c.bf16 %v901_v14, %v899_v12  ;;  %v903_v19 = vld [vmem:[%s1641_s1 + $0x400] sm:$0xff] }
  0x47   : > { %1016 = vmatpush1.bf16.msra.mxu1 %v1015_v38  ;;  %v1055_v24 = vpack.c.bf16 %v905_v20, %v903_v19  ;;  %v915_v38 = vld [vmem:[%s1641_s1 + $0x460] sm:$0xff] }
  0x48   : > { %329 = vmatmul.mubr.f32.vlgmr.msra.gmra.mrb[0].mxu0 %v1301_v13  ;;  %1018 = vmatprep.subr.bf16.mxu1 %v1017_v40  ;;  %v816_v12 = vld [vmem:[%s1144_s19 + $0x1] ss:$4 sm:$0x3] }
  0x49   : > { %1024 = vmatpush1.bf16.msra.mxu0 %v1023_v27  ;;  %920 = vmatprep.mubr.msk.f32.mxu0 %vm261_vm3, %v1317_v21  ;;  %v885_v21 = vld [vmem:[%s1641_s1 + $0x370] sm:$0xff] }
  0x4a   : > { %1026 = vmatprep.subr.bf16.mxu0 %v1025_v32  ;;  %v1035_v55 = vpack.c.bf16 %v885_v21, %v883_v52  ;;  %v909_v27 = vld [vmem:[%s1641_s1 + $0x430] sm:$0xff]  ;;  %v911_v32 = vld [vmem:[%s1641_s1 + $0x440] sm:$0xff] }
  0x4b   : > { %1020 = vmatpush1.bf16.msra.mxu1 %v1019_v49  ;;  %v1059_v30 = vpack.c.bf16 %v909_v27, %v907_v26  ;;  %v1063_v36 = vpack.c.bf16 %v913_v33, %v911_v32  ;;  %v606_v49 = vunpack.c.0.s8 %v605_v45  ;;  %v919_v27 = vld [vmem:[%s1642_s2 + $0x4] sm:$0x3]  ;;  %v818_v45 = vld [vmem:[%s1144_s19 + $0x2] ss:$4 sm:$0x3] }
  0x4d   : > { %1028 = vmatpush1.bf16.msra.mxu0 %v1027_v39  ;;  %v917_v39 = vld [vmem:[%s1641_s1 + $0x470] sm:$0xff] }
  0x4e   : > { %1030 = vmatprep.subr.bf16.mxu0 %v1029_v43  ;;  %462 = vmatmul.mubr.f32.vlgmr.msra.gmra.mrb[0].mxu1 %v1301_v13  ;;  %v1067_v40 = vpack.c.bf16 %v917_v39, %v915_v38  ;;  %v247_v43 = vsub.s32 1, %v1241_v47 }
  0x50   : > { %v248_v48 = vrot.slane %v239_v42, %v247_v43  ;;  %v394_v57 = vrot.slane %v869_v54, %v247_v43 }
  0x51   : > { %1032 = vmatpush1.bf16.msra.mxu0 %v1031_v50 }
  0x52   : > { %1034 = vmatprep.subr.bf16.mxu0 %v1033_v51 }
  0x55   : > { %1036 = vmatpush1.bf16.msra.mxu0 %v1035_v55 }
  0x56   : > { %1038 = vmatprep.subr.bf16.mxu0 %v1037_v56  ;;  %v390_v56 = vrot.slane %v869_v54, %v243_v41 }
  0x59   : > { %1040 = vmatpush1.bf16.msra.mxu0 %v1039_v61 }
  0x5a   : > { %1042 = vmatprep.subr.bf16.mxu0 %v1041_v62 }
  0x5d   : > { %1044 = vmatpush1.bf16.msra.mxu0 %v1043_v3  ;;  %v815_v3 = vld [vmem:[%s1144_s19 + $0x8] ss:$4 sm:$0x3] }
  0x5e   : > { %1046 = vmatprep.subr.bf16.mxu0 %v1045_v4 }
  0x61   : > { %1048 = vmatpush1.bf16.msra.mxu0 %v1047_v9 }
  0x62   : > { %1050 = vmatprep.subr.bf16.mxu0 %v1049_v10 }
  0x65   : > { %1052 = vmatpush1.bf16.msra.mxu0 %v1051_v17 }
  0x66   : > { %1054 = vmatprep.subr.bf16.mxu0 %v1053_v18 }
  0x69   : > { %1056 = vmatpush1.bf16.msra.mxu0 %v1055_v24 }
  0x6a   : > { %1058 = vmatprep.subr.bf16.mxu0 %v1057_v25 }
  0x6d   : > { %1060 = vmatpush1.bf16.msra.mxu0 %v1059_v30  ;;  %v523_v30 = vrot.slane %v919_v27, %v243_v41 }
  0x6e   : > { %1062 = vmatprep.subr.bf16.mxu0 %v1061_v31  ;;  %v527_v31 = vrot.slane %v919_v27, %v247_v43 }
  0x71   : > { %1064 = vmatpush1.bf16.msra.mxu0 %v1063_v36 }
  0x72   : > { %1066 = vmatprep.subr.bf16.mxu0 %v1065_v37 }
  0x75   : > { %1068 = vmatpush1.bf16.msra.mxu0 %v1067_v40 }
  0x78   : > { %595 = vmatmul.mubr.f32.vlgmr.msra.gmra.mrb[2].mxu0 %v1301_v13  ;;  %v1610_v13 = vsub.s32 %v606_v49, %v1241_v47 }
  0x7a   : > { %v726_v54 = vrot.slane %v1298_v11, %v1610_v13 }
 0x11b   : > { %v330_v50 = vpop.f32.mrb[0].mxu0 }
 0x11c   : > { %v331_v51 = vadd.f32 %v330_v50, %v244_v46  ;;  %v332_v52 = vpop.f32.mrb[1].mxu0  ;;  %v819_v50 = vld [vmem:[%s1144_s19 + $0xa] ss:$4 sm:$0x3] }
 0x11d   : > { %v333_v21 = vadd.f32 %v332_v52, %v248_v48 }
 0x11f   : > { %v603_v53 = vcombine.low %v331_v51, %v333_v21 }
 0x121   : > { %v610_v55 = vrot.slane %v603_v53, %v1610_v13  ;;  %v463_v58 = vpop.f32.mrb[0].mxu1 }
 0x122   : > { %v464_v60 = vadd.f32 %v463_v58, %v390_v56  ;;  %v465_v61 = vpop.f32.mrb[1].mxu1 }
 0x123   : > { %v611_v59 = vcombine.high %v610_v55, %v610_v55  ;;  %v466_v62 = vadd.f32 %v465_v61, %v394_v57  ;;  %v618_v63 = vrot.slane %v610_v55, %v1610_v13  ;;  %v1112_v57 = vmov 1935823168  }
 0x124   : > { %v738_v58 = vunpack.c.l.s4 %v1112_v57 }
 0x125   : > { %v644_v1 = vcombine.low %v464_v60, %v466_v62  ;;  %v625_v2 = vrot.slane %v611_v59, %v1610_v13  ;;  %v628_v5 = vadd.f32 %v618_v63, %v180_v0  ;;  %v727_v59 = vcombine.high %v726_v54, %v726_v54 }
 0x126   : > { %v739_v0 = vunpack.c.0.s8 %v738_v58 }
 0x127   : > { %v651_v4 = vrot.slane %v644_v1, %v1610_v13  ;;  %v629_v6 = vadd.f32 %v815_v3, %v625_v2  ;;  %v630_v8 = vsub.f32 0.0, %v628_v5 }
 0x129   : > { %v652_v7 = vcombine.high %v651_v4, %v651_v4  ;;  %v659_v9 = vrot.slane %v651_v4, %v1610_v13  ;;  %v631_v10 = vsub.f32 0.0, %v629_v6  ;;  %v632_v15 = vmul.f32 1.442695, %v630_v8 }
 0x12a   : > { %v742_v6 = vsub.s32 %v739_v0, %v1241_v47 }
 0x12b   : > { %v666_v14 = vrot.slane %v652_v7, %v1610_v13  ;;  %v669_v17 = vadd.f32 %v816_v12, %v659_v9  ;;  %v634_v18 = vmul.f32 1.442695, %v631_v10  ;;  %1081 = vpow2.f32 %v632_v15 }
 0x12d   : > { %v670_v19 = vadd.f32 %v817_v16, %v666_v14  ;;  %v671_v20 = vsub.f32 0.0, %v669_v17  ;;  %1083 = vpow2.f32 %v634_v18 }
 0x12f   : > { %v672_v22 = vsub.f32 0.0, %v670_v19  ;;  %v673_v23 = vmul.f32 1.442695, %v671_v20 }
 0x131   : > { %v675_v24 = vmul.f32 1.442695, %v672_v22  ;;  %1085 = vpow2.f32 %v673_v23 }
 0x133   : > { %1087 = vpow2.f32 %v675_v24 }
 0x135   : > { %v1082_v25 = vpop.eup %1081 }
 0x136   : > { %v636_v28 = vadd.f32 1.0, %v1082_v25 }
 0x137   : > { %v1084_v26 = vpop.eup %1083 }
 0x138   : > { %v637_v29 = vadd.f32 1.0, %v1084_v26  ;;  %1089 = vrcp.f32 %v636_v28 }
 0x13a   : > { %1091 = vrcp.f32 %v637_v29 }
 0x13b   : > { %v1086_v33 = vpop.eup %1085 }
 0x13c   : > { %v677_v38 = vadd.f32 1.0, %v1086_v33 }
 0x13d   : > { %v1088_v37 = vpop.eup %1087 }
 0x13e   : > { %v678_v40 = vadd.f32 1.0, %v1088_v37  ;;  %1093 = vrcp.f32 %v677_v38 }
 0x140   : > { %1095 = vrcp.f32 %v678_v40 }
 0x142   : > { %v1090_v43 = vpop.eup %1089 }
 0x144   : > { %v1092_v49 = vpop.eup %1091 }
 0x148   : > { %v1094_v53 = vpop.eup %1093 }
 0x149   : > { %v716_v56 = vsub.f32 1.0, %v1094_v53  ;;  %v730_v62 = vmul.f32 %v1094_v53, %v726_v54 }
 0x14a   : > { %v1096_v55 = vpop.eup %1095 }
 0x14b   : > { %v596_v32 = vpop.f32.mrb[2].mxu0  ;;  %v717_v60 = vsub.f32 1.0, %v1096_v55  ;;  %v731_v2 = vmul.f32 %v1096_v55, %v727_v59 }
 0x14c   : > { %v597_v34 = vadd.f32 %v596_v32, %v523_v30  ;;  %v598_v35 = vpop.f32.mrb[3].mxu0 }
 0x14d   : > { %v599_v36 = vadd.f32 %v598_v35, %v527_v31 }
 0x14f   : > { %v685_v39 = vcombine.low %v597_v34, %v599_v36 }
 0x151   : > { %v692_v42 = vrot.slane %v685_v39, %v1610_v13 }
 0x153   : > { %v693_v44 = vcombine.high %v692_v42, %v692_v42  ;;  %v700_v41 = vrot.slane %v692_v42, %v1610_v13 }
 0x155   : > { %v707_v46 = vrot.slane %v693_v44, %v1610_v13  ;;  %v710_v48 = vmul.f32 %v1090_v43, %v700_v41 }
 0x157   : > { %v711_v51 = vmul.f32 %v1092_v49, %v707_v46  ;;  %v712_v52 = vadd.f32 %v818_v45, %v710_v48 }
 0x159   : > { %v713_v21 = vadd.f32 %v819_v50, %v711_v51  ;;  %1097 = vtanh.f32 %v712_v52 }
 0x15b   : > { %1099 = vtanh.f32 %v713_v21 }
 0x163   : > { %v1098_v61 = vpop.eup %1097 }
 0x164   : > { %v718_v63 = vmul.f32 %v1098_v61, %v716_v56 }
 0x165   : > { %v1100_v1 = vpop.eup %1099 }
 0x166   : > { %v719_v3 = vmul.f32 %v1100_v1, %v717_v60  ;;  %v732_v4 = vadd.f32 %v730_v62, %v718_v63 }
 0x168   : > { %v733_v5 = vadd.f32 %v731_v2, %v719_v3 }
 0x16a   : > { %v736_v11 = vcombine.low %v732_v4, %v733_v5 }
 0x16c   : > { %v743_v13 = vrot.slane %v736_v11, %v742_v6 }
 0x16e   : > { %748 = vst.msk [vmem:[#allocation2] sm:$0xf] %vm747_vm6, %v743_v13  ;;  %749 = vst.msk [vmem:[%s1149_s22] sm:$0xf] %vm747_vm6, %v743_v13 }
 0x16f PF: > { %s13_s12 = sadd.s32 1, %s1107_s12  }
 0x170   : > { %p10_p5 = scmp.ge.s32.totalorder %s13_s12, 10  }
 0x172   :  { %12 = sbr.rel (!%p10_p5) target bundleno = 1 (0x1), region = 75 }

// kernel: bigru_nacgt_forward.28
= control target key start
LH: loop header
LB: loop body
LE: loop exit
PB: predicated region body
PF: predicated region fallthrough
CT: control target
= control target key end

     0   :  { %v203_v0 = vmov 0.0|0.0   ;;  %vm204_vm0 = vmmov 0   ;;  %v205_v4 = vmov 0.0   ;;  %s283_s1 = inlined_call_operand.vmem [shape: f32[128,128], index: 1, kind: input, shape index: {}]   ;;  %s284_s0 = inlined_call_operand.vmem [shape: f32[8,128], index: 0, kind: input, shape index: {}]   ;;  %s285_s2 = inlined_call_operand.vmem [shape: f32[1,128], index: 2, kind: input, shape index: {}]   ;;  %s286_s3 = inlined_call_operand.vmem [shape: f32[8,128], index: 3, kind: output, shape index: {}]  }
   0x1   :  { %174 = vmatprep.subr.bf16.mxu0 %v203_v0  ;;  %v15_v1 = vld [vmem:[%s283_s1] sm:$0xff]  ;;  %v16_v2 = vld [vmem:[%s283_s1 + $0x8] sm:$0xff]  ;;  %v17_v3 = vld [vmem:[%s283_s1 + $0x10] sm:$0xff]  ;;  %171 = vmatprep.mubr.msk.f32.mxu0 %vm204_vm0, %v205_v4 }
   0x2   :  { %v175_v5 = vpack.c.bf16 %v16_v2, %v15_v1  ;;  %v18_v6 = vld [vmem:[%s283_s1 + $0x18] sm:$0xff]  ;;  %v19_v8 = vld [vmem:[%s283_s1 + $0x20] sm:$0xff]  ;;  %v20_v9 = vld [vmem:[%s283_s1 + $0x28] sm:$0xff] }
   0x3   :  { %v178_v7 = vpack.c.bf16 %v18_v6, %v17_v3  ;;  %v181_v10 = vpack.c.bf16 %v20_v9, %v19_v8  ;;  %v21_v11 = vld [vmem:[%s283_s1 + $0x30] sm:$0xff]  ;;  %v22_v12 = vld [vmem:[%s283_s1 + $0x38] sm:$0xff]  ;;  %v23_v14 = vld [vmem:[%s283_s1 + $0x40] sm:$0xff] }
   0x4   :  { %176 = vmatpush3.bf16.msra.mxu0 %v175_v5  ;;  %v184_v13 = vpack.c.bf16 %v22_v12, %v21_v11  ;;  %v24_v15 = vld [vmem:[%s283_s1 + $0x48] sm:$0xff]  ;;  %v25_v17 = vld [vmem:[%s283_s1 + $0x50] sm:$0xff]  ;;  %v26_v18 = vld [vmem:[%s283_s1 + $0x58] sm:$0xff] }
   0x5   :  { %177 = vmatprep.subr.bf16.mxu0 %v203_v0  ;;  %v187_v16 = vpack.c.bf16 %v24_v15, %v23_v14  ;;  %v190_v19 = vpack.c.bf16 %v26_v18, %v25_v17  ;;  %v27_v20 = vld [vmem:[%s283_s1 + $0x60] sm:$0xff]  ;;  %v28_v21 = vld [vmem:[%s283_s1 + $0x68] sm:$0xff]  ;;  %v29_v23 = vld [vmem:[%s283_s1 + $0x70] sm:$0xff] }
   0x6   :  { %v193_v22 = vpack.c.bf16 %v28_v21, %v27_v20  ;;  %v30_v24 = vld [vmem:[%s283_s1 + $0x78] sm:$0xff]  ;;  %v14_v26 = vld [vmem:[%s284_s0] sm:$0xff] }
   0x7   :  { %v196_v25 = vpack.c.bf16 %v30_v24, %v29_v23  ;;  %v120_v27 = vld [vmem:[%s285_s2] ss:$0 sm:$0xff] }
   0x8   :  { %179 = vmatpush3.bf16.msra.mxu0 %v178_v7 }
   0x9   :  { %180 = vmatprep.subr.bf16.mxu0 %v203_v0 }
   0xc   :  { %182 = vmatpush3.bf16.msra.mxu0 %v181_v10 }
   0xd   :  { %183 = vmatprep.subr.bf16.mxu0 %v203_v0 }
  0x10   :  { %185 = vmatpush3.bf16.msra.mxu0 %v184_v13 }
  0x11   :  { %186 = vmatprep.subr.bf16.mxu0 %v203_v0 }
  0x14   :  { %188 = vmatpush3.bf16.msra.mxu0 %v187_v16 }
  0x15   :  { %189 = vmatprep.subr.bf16.mxu0 %v203_v0 }
  0x18   :  { %191 = vmatpush3.bf16.msra.mxu0 %v190_v19 }
  0x19   :  { %192 = vmatprep.subr.bf16.mxu0 %v203_v0 }
  0x1c   :  { %194 = vmatpush3.bf16.msra.mxu0 %v193_v22 }
  0x1d   :  { %195 = vmatprep.subr.bf16.mxu0 %v203_v0 }
  0x20   :  { %197 = vmatpush3.bf16.msra.mxu0 %v196_v25 }
  0x23   :  { %172 = vmatmul.mubr.f32.vlgmr.msra.gmra.mrb[0].mxu0 %v14_v26 }
  0xf6   :  { %v104_v28 = vpop.f32.mrb[0].mxu0 }
  0xf7   :  { %v105_v29 = vadd.f32 %v120_v27, %v104_v28  ;;  %v173_v30 = vpop.f32.mrb[1].mxu0 }
  0xf9   :  { %v109_v31 = vmul.f32 1.442695, %v105_v29  ;;  %vm108_vm1 = vcmp.gt.f32.partialorder %v105_v29, 0.0 }
  0xfb   :  { %201 = vpow2.f32 %v109_v31 }
 0x105   :  { %v202_v32 = vpop.eup %201 }
 0x106   :  { %v121_v33 = vadd.f32 -1.0, %v202_v32 }
 0x108   :  { %v112_v34 = vmul.f32 1.6732632, %v121_v33 }
 0x10a   :  { %v113_v35 = vsel %vm108_vm1, %v105_v29, %v112_v34 }
 0x10b   :  { %v114_v36 = vmul.f32 1.050701, %v113_v35 }
 0x10d   :  { %115 = vst [vmem:[%s286_s3] sm:$0xff] %v114_v36 }

// kernel: bigru_nacgt_forward.25
= control target key start
LH: loop header
LB: loop body
LE: loop exit
PB: predicated region body
PF: predicated region fallthrough
CT: control target
= control target key end

     0   :  { %s3339_s1 = inlined_call_operand.vmem [shape: f32[3072,128], index: 1, kind: input, shape index: {}]   ;;  %s3340_s0 = inlined_call_operand.vmem [shape: f32[8,3072], index: 0, kind: input, shape index: {}]   ;;  %s3341_s2 = inlined_call_operand.vmem [shape: f32[1,128], index: 2, kind: input, shape index: {}]   ;;  %s3342_s3 = inlined_call_operand.vmem [shape: f32[8,128], index: 3, kind: output, shape index: {}]  }
   0x1   :  { %v54_v0 = vld [vmem:[%s3339_s1 + $0x80] sm:$0xff]  ;;  %v55_v1 = vld [vmem:[%s3339_s1 + $0x88] sm:$0xff]  ;;  %v56_v11 = vld [vmem:[%s3339_s1 + $0x90] sm:$0xff] }
   0x2   :  { %v38_v2 = vld [vmem:[%s3339_s1] sm:$0xff]  ;;  %v1703_v3 = vpack.c.bf16 %v55_v1, %v54_v0  ;;  %v39_v4 = vld [vmem:[%s3339_s1 + $0x8] sm:$0xff]  ;;  %v57_v13 = vld [vmem:[%s3339_s1 + $0x98] sm:$0xff] }
   0x3   :  { %v86_v5 = vld [vmem:[%s3339_s1 + $0x180] sm:$0xff]  ;;  %v87_v6 = vld [vmem:[%s3339_s1 + $0x188] sm:$0xff]  ;;  %v1705_v7 = vpack.c.bf16 %v39_v4, %v38_v2  ;;  %v40_v14 = vld [vmem:[%s3339_s1 + $0x10] sm:$0xff]  ;;  %v1707_v16 = vpack.c.bf16 %v57_v13, %v56_v11 }
   0x4   :  { %v1735_v8 = vpack.c.bf16 %v87_v6, %v86_v5  ;;  %v70_v9 = vld [vmem:[%s3339_s1 + $0x100] sm:$0xff]  ;;  %v71_v10 = vld [vmem:[%s3339_s1 + $0x108] sm:$0xff]  ;;  %1704 = vmatprep.subr.bf16.mxu0 %v1703_v3  ;;  %v41_v15 = vld [vmem:[%s3339_s1 + $0x18] sm:$0xff] }
   0x5   :  { %v1737_v12 = vpack.c.bf16 %v71_v10, %v70_v9  ;;  %1706 = vmatpush3.bf16.msra.mxu0 %v1705_v7  ;;  %v1709_v17 = vpack.c.bf16 %v41_v15, %v40_v14  ;;  %v88_v18 = vld [vmem:[%s3339_s1 + $0x190] sm:$0xff]  ;;  %v89_v19 = vld [vmem:[%s3339_s1 + $0x198] sm:$0xff]  ;;  %v58_v23 = vld [vmem:[%s3339_s1 + $0xa0] sm:$0xff] }
   0x6   :  { %1736 = vmatprep.subr.bf16.mxu1 %v1735_v8  ;;  %v72_v20 = vld [vmem:[%s3339_s1 + $0x110] sm:$0xff]  ;;  %v1739_v21 = vpack.c.bf16 %v89_v19, %v88_v18  ;;  %v73_v22 = vld [vmem:[%s3339_s1 + $0x118] sm:$0xff]  ;;  %v59_v24 = vld [vmem:[%s3339_s1 + $0xa8] sm:$0xff]  ;;  %1708 = vmatprep.subr.bf16.mxu0 %v1707_v16 }
   0x7   :  { %1738 = vmatpush3.bf16.msra.mxu1 %v1737_v12  ;;  %v1741_v25 = vpack.c.bf16 %v73_v22, %v72_v20  ;;  %v1711_v26 = vpack.c.bf16 %v59_v24, %v58_v23  ;;  %v42_v27 = vld [vmem:[%s3339_s1 + $0x20] sm:$0xff]  ;;  %v43_v28 = vld [vmem:[%s3339_s1 + $0x28] sm:$0xff]  ;;  %v60_v35 = vld [vmem:[%s3339_s1 + $0xb0] sm:$0xff] }
   0x8   :  { %v90_v29 = vld [vmem:[%s3339_s1 + $0x1a0] sm:$0xff]  ;;  %1740 = vmatprep.subr.bf16.mxu1 %v1739_v21  ;;  %v91_v30 = vld [vmem:[%s3339_s1 + $0x1a8] sm:$0xff]  ;;  %v1713_v33 = vpack.c.bf16 %v43_v28, %v42_v27  ;;  %v61_v36 = vld [vmem:[%s3339_s1 + $0xb8] sm:$0xff] }
   0x9   :  { %v74_v31 = vld [vmem:[%s3339_s1 + $0x120] sm:$0xff]  ;;  %v75_v32 = vld [vmem:[%s3339_s1 + $0x128] sm:$0xff]  ;;  %1710 = vmatpush3.bf16.msra.mxu0 %v1709_v17  ;;  %v1743_v34 = vpack.c.bf16 %v91_v30, %v90_v29  ;;  %v44_v37 = vld [vmem:[%s3339_s1 + $0x30] sm:$0xff]  ;;  %v1715_v39 = vpack.c.bf16 %v61_v36, %v60_v35 }
   0xa   :  { %1712 = vmatprep.subr.bf16.mxu0 %v1711_v26  ;;  %v1745_v38 = vpack.c.bf16 %v75_v32, %v74_v31  ;;  %v45_v40 = vld [vmem:[%s3339_s1 + $0x38] sm:$0xff]  ;;  %v92_v41 = vld [vmem:[%s3339_s1 + $0x1b0] sm:$0xff]  ;;  %v62_v46 = vld [vmem:[%s3339_s1 + $0xc0] sm:$0xff] }
   0xb   :  { %1742 = vmatpush3.bf16.msra.mxu1 %v1741_v25  ;;  %v93_v42 = vld [vmem:[%s3339_s1 + $0x1b8] sm:$0xff]  ;;  %v76_v44 = vld [vmem:[%s3339_s1 + $0x130] sm:$0xff]  ;;  %v63_v47 = vld [vmem:[%s3339_s1 + $0xc8] sm:$0xff]  ;;  %v1717_v48 = vpack.c.bf16 %v45_v40, %v44_v37 }
   0xc   :  { %1744 = vmatprep.subr.bf16.mxu1 %v1743_v34  ;;  %v1747_v43 = vpack.c.bf16 %v93_v42, %v92_v41  ;;  %v77_v45 = vld [vmem:[%s3339_s1 + $0x138] sm:$0xff]  ;;  %v94_v49 = vld [vmem:[%s3339_s1 + $0x1c0] sm:$0xff]  ;;  %v95_v50 = vld [vmem:[%s3339_s1 + $0x1c8] sm:$0xff]  ;;  %v1719_v52 = vpack.c.bf16 %v63_v47, %v62_v46 }
   0xd   :  { %1714 = vmatpush3.bf16.msra.mxu0 %v1713_v33  ;;  %v1749_v51 = vpack.c.bf16 %v77_v45, %v76_v44  ;;  %v46_v53 = vld [vmem:[%s3339_s1 + $0x40] sm:$0xff]  ;;  %v47_v54 = vld [vmem:[%s3339_s1 + $0x48] sm:$0xff]  ;;  %v1751_v56 = vpack.c.bf16 %v95_v50, %v94_v49  ;;  %v64_v58 = vld [vmem:[%s3339_s1 + $0xd0] sm:$0xff] }
   0xe   :  { %1716 = vmatprep.subr.bf16.mxu0 %v1715_v39  ;;  %v78_v55 = vld [vmem:[%s3339_s1 + $0x140] sm:$0xff]  ;;  %v79_v57 = vld [vmem:[%s3339_s1 + $0x148] sm:$0xff]  ;;  %v65_v59 = vld [vmem:[%s3339_s1 + $0xd8] sm:$0xff]  ;;  %v1721_v62 = vpack.c.bf16 %v47_v54, %v46_v53 }
   0xf   :  { %1746 = vmatpush3.bf16.msra.mxu1 %v1745_v38  ;;  %v96_v60 = vld [vmem:[%s3339_s1 + $0x1d0] sm:$0xff]  ;;  %v97_v61 = vld [vmem:[%s3339_s1 + $0x1d8] sm:$0xff]  ;;  %v1753_v63 = vpack.c.bf16 %v79_v57, %v78_v55  ;;  %v1723_v0 = vpack.c.bf16 %v65_v59, %v64_v58  ;;  %v66_v6 = vld [vmem:[%s3339_s1 + $0xe0] sm:$0xff] }
  0x10   :  { %1748 = vmatprep.subr.bf16.mxu1 %v1747_v43  ;;  %v48_v1 = vld [vmem:[%s3339_s1 + $0x50] sm:$0xff]  ;;  %v49_v2 = vld [vmem:[%s3339_s1 + $0x58] sm:$0xff]  ;;  %v1755_v4 = vpack.c.bf16 %v97_v61, %v96_v60  ;;  %v67_v7 = vld [vmem:[%s3339_s1 + $0xe8] sm:$0xff] }
  0x11   :  { %1718 = vmatpush3.bf16.msra.mxu0 %v1717_v48  ;;  %v80_v3 = vld [vmem:[%s3339_s1 + $0x150] sm:$0xff]  ;;  %v81_v5 = vld [vmem:[%s3339_s1 + $0x158] sm:$0xff]  ;;  %v98_v8 = vld [vmem:[%s3339_s1 + $0x1e0] sm:$0xff]  ;;  %v1725_v10 = vpack.c.bf16 %v49_v2, %v48_v1  ;;  %v1727_v14 = vpack.c.bf16 %v67_v7, %v66_v6 }
  0x12   :  { %1720 = vmatprep.subr.bf16.mxu0 %v1719_v52  ;;  %v99_v9 = vld [vmem:[%s3339_s1 + $0x1e8] sm:$0xff]  ;;  %v50_v11 = vld [vmem:[%s3339_s1 + $0x60] sm:$0xff]  ;;  %v1757_v13 = vpack.c.bf16 %v81_v5, %v80_v3  ;;  %v68_v19 = vld [vmem:[%s3339_s1 + $0xf0] sm:$0xff] }
  0x13   :  { %1750 = vmatpush3.bf16.msra.mxu1 %v1749_v51  ;;  %v51_v12 = vld [vmem:[%s3339_s1 + $0x68] sm:$0xff]  ;;  %v82_v15 = vld [vmem:[%s3339_s1 + $0x160] sm:$0xff]  ;;  %v1759_v18 = vpack.c.bf16 %v99_v9, %v98_v8  ;;  %v69_v20 = vld [vmem:[%s3339_s1 + $0xf8] sm:$0xff] }
  0x14   :  { %1752 = vmatprep.subr.bf16.mxu1 %v1751_v56  ;;  %v83_v16 = vld [vmem:[%s3339_s1 + $0x168] sm:$0xff]  ;;  %v17_v21 = vld [vmem:[%s3340_s0 + $0x18] sm:$0xff]  ;;  %v100_v22 = vld [vmem:[%s3339_s1 + $0x1f0] sm:$0xff]  ;;  %v1729_v24 = vpack.c.bf16 %v51_v12, %v50_v11  ;;  %v1731_v26 = vpack.c.bf16 %v69_v20, %v68_v19 }
  0x15   :  { %1722 = vmatpush3.bf16.msra.mxu0 %v1721_v62  ;;  %v15_v17 = vld [vmem:[%s3340_s0 + $0x8] sm:$0xff]  ;;  %v101_v23 = vld [vmem:[%s3339_s1 + $0x1f8] sm:$0xff]  ;;  %563 = vmatprep.mubr.f32.mxu1 %v17_v21  ;;  %v1761_v25 = vpack.c.bf16 %v83_v16, %v82_v15  ;;  %v52_v27 = vld [vmem:[%s3339_s1 + $0x70] sm:$0xff] }
  0x16   :  { %1724 = vmatprep.subr.bf16.mxu0 %v1723_v0  ;;  %493 = vmatprep.mubr.f32.mxu0 %v15_v17  ;;  %v53_v28 = vld [vmem:[%s3339_s1 + $0x78] sm:$0xff]  ;;  %v84_v29 = vld [vmem:[%s3339_s1 + $0x170] sm:$0xff]  ;;  %v1763_v30 = vpack.c.bf16 %v101_v23, %v100_v22  ;;  %v118_v32 = vld [vmem:[%s3339_s1 + $0x280] sm:$0xff] }
  0x17   :  { %1754 = vmatpush3.bf16.msra.mxu1 %v1753_v63  ;;  %v85_v31 = vld [vmem:[%s3339_s1 + $0x178] sm:$0xff]  ;;  %v119_v33 = vld [vmem:[%s3339_s1 + $0x288] sm:$0xff]  ;;  %v150_v34 = vld [vmem:[%s3339_s1 + $0x380] sm:$0xff]  ;;  %v1733_v36 = vpack.c.bf16 %v53_v28, %v52_v27 }
  0x18   :  { %1756 = vmatprep.subr.bf16.mxu1 %v1755_v4  ;;  %v151_v35 = vld [vmem:[%s3339_s1 + $0x388] sm:$0xff]  ;;  %v1765_v37 = vpack.c.bf16 %v85_v31, %v84_v29  ;;  %v1767_v38 = vpack.c.bf16 %v119_v33, %v118_v32  ;;  %v102_v39 = vld [vmem:[%s3339_s1 + $0x200] sm:$0xff]  ;;  %v120_v44 = vld [vmem:[%s3339_s1 + $0x290] sm:$0xff] }
  0x19   :  { %1726 = vmatpush3.bf16.msra.mxu0 %v1725_v10  ;;  %v103_v40 = vld [vmem:[%s3339_s1 + $0x208] sm:$0xff]  ;;  %v134_v41 = vld [vmem:[%s3339_s1 + $0x300] sm:$0xff]  ;;  %v1799_v42 = vpack.c.bf16 %v151_v35, %v150_v34  ;;  %v121_v45 = vld [vmem:[%s3339_s1 + $0x298] sm:$0xff] }
  0x1a   :  { %1728 = vmatprep.subr.bf16.mxu0 %v1727_v14  ;;  %v135_v43 = vld [vmem:[%s3339_s1 + $0x308] sm:$0xff]  ;;  %v152_v46 = vld [vmem:[%s3339_s1 + $0x390] sm:$0xff]  ;;  %v153_v47 = vld [vmem:[%s3339_s1 + $0x398] sm:$0xff]  ;;  %v1769_v49 = vpack.c.bf16 %v103_v40, %v102_v39  ;;  %v1771_v52 = vpack.c.bf16 %v121_v45, %v120_v44 }
  0x1b   :  { %1758 = vmatpush3.bf16.msra.mxu1 %v1757_v13  ;;  %v14_v48 = vld [vmem:[%s3340_s0] sm:$0xff]  ;;  %v16_v50 = vld [vmem:[%s3340_s0 + $0x10] sm:$0xff]  ;;  %v1801_v51 = vpack.c.bf16 %v135_v43, %v134_v41  ;;  %v105_v54 = vld [vmem:[%s3339_s1 + $0x218] sm:$0xff]  ;;  %v1803_v56 = vpack.c.bf16 %v153_v47, %v152_v46 }
  0x1c   :  { %1760 = vmatprep.subr.bf16.mxu1 %v1759_v18  ;;  %v104_v53 = vld [vmem:[%s3339_s1 + $0x210] sm:$0xff]  ;;  %v137_v57 = vld [vmem:[%s3339_s1 + $0x318] sm:$0xff]  ;;  %v122_v58 = vld [vmem:[%s3339_s1 + $0x2a0] sm:$0xff] }
  0x1d   :  { %1730 = vmatpush3.bf16.msra.mxu0 %v1729_v24  ;;  %v136_v55 = vld [vmem:[%s3339_s1 + $0x310] sm:$0xff]  ;;  %v123_v59 = vld [vmem:[%s3339_s1 + $0x2a8] sm:$0xff]  ;;  %v154_v60 = vld [vmem:[%s3339_s1 + $0x3a0] sm:$0xff]  ;;  %v1773_v62 = vpack.c.bf16 %v105_v54, %v104_v53 }
  0x1e   :  { %1732 = vmatprep.subr.bf16.mxu0 %v1731_v26  ;;  %v155_v61 = vld [vmem:[%s3339_s1 + $0x3a8] sm:$0xff]  ;;  %v1805_v63 = vpack.c.bf16 %v137_v57, %v136_v55  ;;  %v1775_v0 = vpack.c.bf16 %v123_v59, %v122_v58  ;;  %v106_v1 = vld [vmem:[%s3339_s1 + $0x220] sm:$0xff]  ;;  %v124_v6 = vld [vmem:[%s3339_s1 + $0x2b0] sm:$0xff] }
  0x1f   :  { %1762 = vmatpush3.bf16.msra.mxu1 %v1761_v25  ;;  %v107_v2 = vld [vmem:[%s3339_s1 + $0x228] sm:$0xff]  ;;  %v138_v3 = vld [vmem:[%s3339_s1 + $0x320] sm:$0xff]  ;;  %v1807_v4 = vpack.c.bf16 %v155_v61, %v154_v60  ;;  %v125_v7 = vld [vmem:[%s3339_s1 + $0x2b8] sm:$0xff] }
  0x20   :  { %1764 = vmatprep.subr.bf16.mxu1 %v1763_v30  ;;  %v139_v5 = vld [vmem:[%s3339_s1 + $0x328] sm:$0xff]  ;;  %v156_v8 = vld [vmem:[%s3339_s1 + $0x3b0] sm:$0xff]  ;;  %v157_v9 = vld [vmem:[%s3339_s1 + $0x3b8] sm:$0xff]  ;;  %v1777_v10 = vpack.c.bf16 %v107_v2, %v106_v1  ;;  %v1779_v12 = vpack.c.bf16 %v125_v7, %v124_v6 }
  0x21   :  { %1734 = vmatpush3.bf16.msra.mxu0 %v1733_v36  ;;  %v1809_v11 = vpack.c.bf16 %v139_v5, %v138_v3  ;;  %v108_v13 = vld [vmem:[%s3339_s1 + $0x230] sm:$0xff]  ;;  %v109_v14 = vld [vmem:[%s3339_s1 + $0x238] sm:$0xff]  ;;  %v1811_v16 = vpack.c.bf16 %v157_v9, %v156_v8  ;;  %v126_v18 = vld [vmem:[%s3339_s1 + $0x2c0] sm:$0xff] }
  0x22   :  { %1768 = vmatprep.subr.bf16.mxu0 %v1767_v38  ;;  %v140_v15 = vld [vmem:[%s3339_s1 + $0x330] sm:$0xff]  ;;  %v141_v17 = vld [vmem:[%s3339_s1 + $0x338] sm:$0xff]  ;;  %v127_v19 = vld [vmem:[%s3339_s1 + $0x2c8] sm:$0xff]  ;;  %v1781_v22 = vpack.c.bf16 %v109_v14, %v108_v13 }
  0x23   :  { %1766 = vmatpush3.bf16.msra.mxu1 %v1765_v37  ;;  %v158_v20 = vld [vmem:[%s3339_s1 + $0x3c0] sm:$0xff]  ;;  %v159_v21 = vld [vmem:[%s3339_s1 + $0x3c8] sm:$0xff]  ;;  %v1813_v25 = vpack.c.bf16 %v141_v17, %v140_v15  ;;  %v1783_v26 = vpack.c.bf16 %v127_v19, %v126_v18  ;;  %v21_v29 = vld [vmem:[%s3340_s0 + $0x38] sm:$0xff] }
  0x24   :  { %1800 = vmatprep.subr.bf16.mxu1 %v1799_v42  ;;  %494 = vmatmul.mubr.f32.vlgmr.msra.gmra.mrb[0].mxu0 %v14_v48  ;;  %v110_v23 = vld [vmem:[%s3339_s1 + $0x240] sm:$0xff]  ;;  %v19_v24 = vld [vmem:[%s3340_s0 + $0x28] sm:$0xff]  ;;  %v1815_v30 = vpack.c.bf16 %v159_v21, %v158_v20  ;;  %v128_v32 = vld [vmem:[%s3339_s1 + $0x2d0] sm:$0xff] }
  0x25   :  { %1770 = vmatpush3.bf16.msra.mxu0 %v1769_v49  ;;  %v111_v27 = vld [vmem:[%s3339_s1 + $0x248] sm:$0xff]  ;;  %v142_v28 = vld [vmem:[%s3339_s1 + $0x340] sm:$0xff]  ;;  %v129_v33 = vld [vmem:[%s3339_s1 + $0x2d8] sm:$0xff]  ;;  %633 = vmatprep.mubr.f32.mxu0 %v19_v24 }
  0x26   :  { %564 = vmatmul.mubr.f32.vlgmr.msra.gmra.mrb[0].mxu1 %v16_v50  ;;  %1772 = vmatprep.subr.bf16.mxu0 %v1771_v52  ;;  %v143_v31 = vld [vmem:[%s3339_s1 + $0x348] sm:$0xff]  ;;  %v160_v34 = vld [vmem:[%s3339_s1 + $0x3d0] sm:$0xff]  ;;  %v161_v35 = vld [vmem:[%s3339_s1 + $0x3d8] sm:$0xff]  ;;  %v1785_v36 = vpack.c.bf16 %v111_v27, %v110_v23  ;;  %v1787_v38 = vpack.c.bf16 %v129_v33, %v128_v32 }
  0x27   :  { %1802 = vmatpush3.bf16.msra.mxu1 %v1801_v51  ;;  %703 = vmatprep.mubr.f32.mxu1 %v21_v29  ;;  %v1817_v37 = vpack.c.bf16 %v143_v31, %v142_v28  ;;  %v112_v39 = vld [vmem:[%s3339_s1 + $0x250] sm:$0xff]  ;;  %v113_v40 = vld [vmem:[%s3339_s1 + $0x258] sm:$0xff]  ;;  %v1819_v42 = vpack.c.bf16 %v161_v35, %v160_v34  ;;  %v130_v44 = vld [vmem:[%s3339_s1 + $0x2e0] sm:$0xff] }
  0x28   :  { %1804 = vmatprep.subr.bf16.mxu1 %v1803_v56  ;;  %v144_v41 = vld [vmem:[%s3339_s1 + $0x350] sm:$0xff]  ;;  %v145_v43 = vld [vmem:[%s3339_s1 + $0x358] sm:$0xff]  ;;  %v131_v45 = vld [vmem:[%s3339_s1 + $0x2e8] sm:$0xff]  ;;  %v1789_v48 = vpack.c.bf16 %v113_v40, %v112_v39 }
  0x29   :  { %1774 = vmatpush3.bf16.msra.mxu0 %v1773_v62  ;;  %v162_v46 = vld [vmem:[%s3339_s1 + $0x3e0] sm:$0xff]  ;;  %v163_v47 = vld [vmem:[%s3339_s1 + $0x3e8] sm:$0xff]  ;;  %v1821_v49 = vpack.c.bf16 %v145_v43, %v144_v41  ;;  %v1791_v50 = vpack.c.bf16 %v131_v45, %v130_v44  ;;  %v132_v56 = vld [vmem:[%s3339_s1 + $0x2f0] sm:$0xff] }
  0x2a   :  { %1776 = vmatprep.subr.bf16.mxu0 %v1775_v0  ;;  %v114_v51 = vld [vmem:[%s3339_s1 + $0x260] sm:$0xff]  ;;  %v115_v52 = vld [vmem:[%s3339_s1 + $0x268] sm:$0xff]  ;;  %v1823_v54 = vpack.c.bf16 %v163_v47, %v162_v46  ;;  %v133_v57 = vld [vmem:[%s3339_s1 + $0x2f8] sm:$0xff] }
  0x2b   :  { %1806 = vmatpush3.bf16.msra.mxu1 %v1805_v63  ;;  %v146_v53 = vld [vmem:[%s3339_s1 + $0x360] sm:$0xff]  ;;  %v147_v55 = vld [vmem:[%s3339_s1 + $0x368] sm:$0xff]  ;;  %v164_v58 = vld [vmem:[%s3339_s1 + $0x3f0] sm:$0xff]  ;;  %v1793_v60 = vpack.c.bf16 %v115_v52, %v114_v51  ;;  %v1795_v62 = vpack.c.bf16 %v133_v57, %v132_v56 }
  0x2c   :  { %1808 = vmatprep.subr.bf16.mxu1 %v1807_v4  ;;  %v165_v59 = vld [vmem:[%s3339_s1 + $0x3f8] sm:$0xff]  ;;  %v1825_v61 = vpack.c.bf16 %v147_v55, %v146_v53  ;;  %v116_v63 = vld [vmem:[%s3339_s1 + $0x270] sm:$0xff]  ;;  %v182_v4 = vld [vmem:[%s3339_s1 + $0x480] sm:$0xff] }
  0x2d   :  { %1778 = vmatpush3.bf16.msra.mxu0 %v1777_v10  ;;  %v117_v0 = vld [vmem:[%s3339_s1 + $0x278] sm:$0xff]  ;;  %v148_v1 = vld [vmem:[%s3339_s1 + $0x370] sm:$0xff]  ;;  %v1827_v2 = vpack.c.bf16 %v165_v59, %v164_v58  ;;  %v183_v5 = vld [vmem:[%s3339_s1 + $0x488] sm:$0xff] }
  0x2e   :  { %1780 = vmatprep.subr.bf16.mxu0 %v1779_v12  ;;  %v149_v3 = vld [vmem:[%s3339_s1 + $0x378] sm:$0xff]  ;;  %v214_v6 = vld [vmem:[%s3339_s1 + $0x580] sm:$0xff]  ;;  %v215_v7 = vld [vmem:[%s3339_s1 + $0x588] sm:$0xff]  ;;  %v1797_v8 = vpack.c.bf16 %v117_v0, %v116_v63  ;;  %v1831_v10 = vpack.c.bf16 %v183_v5, %v182_v4 }
  0x2f   :  { %1810 = vmatpush3.bf16.msra.mxu1 %v1809_v11  ;;  %v1829_v9 = vpack.c.bf16 %v149_v3, %v148_v1  ;;  %v166_v11 = vld [vmem:[%s3339_s1 + $0x400] sm:$0xff]  ;;  %v167_v12 = vld [vmem:[%s3339_s1 + $0x408] sm:$0xff]  ;;  %v1863_v14 = vpack.c.bf16 %v215_v7, %v214_v6  ;;  %v185_v17 = vld [vmem:[%s3339_s1 + $0x498] sm:$0xff] }
  0x30   :  { %1812 = vmatprep.subr.bf16.mxu1 %v1811_v16  ;;  %v198_v13 = vld [vmem:[%s3339_s1 + $0x500] sm:$0xff]  ;;  %v199_v15 = vld [vmem:[%s3339_s1 + $0x508] sm:$0xff]  ;;  %v184_v16 = vld [vmem:[%s3339_s1 + $0x490] sm:$0xff]  ;;  %v1833_v21 = vpack.c.bf16 %v167_v12, %v166_v11 }
  0x31   :  { %1782 = vmatpush3.bf16.msra.mxu0 %v1781_v22  ;;  %v216_v18 = vld [vmem:[%s3339_s1 + $0x590] sm:$0xff]  ;;  %v217_v19 = vld [vmem:[%s3339_s1 + $0x598] sm:$0xff]  ;;  %v18_v20 = vld [vmem:[%s3340_s0 + $0x20] sm:$0xff]  ;;  %v1865_v23 = vpack.c.bf16 %v199_v15, %v198_v13  ;;  %v1835_v24 = vpack.c.bf16 %v185_v17, %v184_v16 }
  0x32   :  { %1784 = vmatprep.subr.bf16.mxu0 %v1783_v26  ;;  %v20_v22 = vld [vmem:[%s3340_s0 + $0x30] sm:$0xff]  ;;  %v169_v26 = vld [vmem:[%s3339_s1 + $0x418] sm:$0xff]  ;;  %v1867_v28 = vpack.c.bf16 %v217_v19, %v216_v18  ;;  %v187_v31 = vld [vmem:[%s3339_s1 + $0x4a8] sm:$0xff] }
  0x33   :  { %1814 = vmatpush3.bf16.msra.mxu1 %v1813_v25  ;;  %v168_v25 = vld [vmem:[%s3339_s1 + $0x410] sm:$0xff]  ;;  %v201_v29 = vld [vmem:[%s3339_s1 + $0x518] sm:$0xff]  ;;  %v218_v32 = vld [vmem:[%s3339_s1 + $0x5a0] sm:$0xff] }
  0x34   :  { %1816 = vmatprep.subr.bf16.mxu1 %v1815_v30  ;;  %v200_v27 = vld [vmem:[%s3339_s1 + $0x510] sm:$0xff]  ;;  %v186_v30 = vld [vmem:[%s3339_s1 + $0x4a0] sm:$0xff]  ;;  %v219_v33 = vld [vmem:[%s3339_s1 + $0x5a8] sm:$0xff]  ;;  %v1837_v35 = vpack.c.bf16 %v169_v26, %v168_v25 }
  0x35   :  { %1786 = vmatpush3.bf16.msra.mxu0 %v1785_v36  ;;  %v23_v34 = vld [vmem:[%s3340_s0 + $0x48] sm:$0xff]  ;;  %v25_v36 = vld [vmem:[%s3340_s0 + $0x58] sm:$0xff]  ;;  %v170_v39 = vld [vmem:[%s3339_s1 + $0x420] sm:$0xff] }
  0x36   :  { %1788 = vmatprep.subr.bf16.mxu0 %v1787_v38  ;;  %v1839_v38 = vpack.c.bf16 %v187_v31, %v186_v30  ;;  %v171_v40 = vld [vmem:[%s3339_s1 + $0x428] sm:$0xff]  ;;  %v202_v41 = vld [vmem:[%s3339_s1 + $0x520] sm:$0xff]  ;;  %v188_v44 = vld [vmem:[%s3339_s1 + $0x4b0] sm:$0xff] }
  0x37   :  { %1818 = vmatpush3.bf16.msra.mxu1 %v1817_v37  ;;  %v1869_v37 = vpack.c.bf16 %v201_v29, %v200_v27  ;;  %v203_v43 = vld [vmem:[%s3339_s1 + $0x528] sm:$0xff]  ;;  %v189_v45 = vld [vmem:[%s3339_s1 + $0x4b8] sm:$0xff]  ;;  %v220_v46 = vld [vmem:[%s3339_s1 + $0x5b0] sm:$0xff] }
  0x38   :  { %1820 = vmatprep.subr.bf16.mxu1 %v1819_v42  ;;  %v1871_v42 = vpack.c.bf16 %v219_v33, %v218_v32  ;;  %v221_v47 = vld [vmem:[%s3339_s1 + $0x5b8] sm:$0xff]  ;;  %v172_v51 = vld [vmem:[%s3339_s1 + $0x430] sm:$0xff]  ;;  %v190_v56 = vld [vmem:[%s3339_s1 + $0x4c0] sm:$0xff] }
  0x39   :  { %1790 = vmatpush3.bf16.msra.mxu0 %v1789_v48  ;;  %v1841_v48 = vpack.c.bf16 %v171_v40, %v170_v39  ;;  %v173_v52 = vld [vmem:[%s3339_s1 + $0x438] sm:$0xff]  ;;  %v204_v53 = vld [vmem:[%s3339_s1 + $0x530] sm:$0xff]  ;;  %v191_v57 = vld [vmem:[%s3339_s1 + $0x4c8] sm:$0xff] }
  0x3a   :  { %1792 = vmatprep.subr.bf16.mxu0 %v1791_v50  ;;  %v1843_v50 = vpack.c.bf16 %v189_v45, %v188_v44  ;;  %v205_v55 = vld [vmem:[%s3339_s1 + $0x538] sm:$0xff]  ;;  %v222_v58 = vld [vmem:[%s3339_s1 + $0x5c0] sm:$0xff]  ;;  %v223_v59 = vld [vmem:[%s3339_s1 + $0x5c8] sm:$0xff] }
  0x3b   :  { %1822 = vmatpush3.bf16.msra.mxu1 %v1821_v49  ;;  %v1873_v49 = vpack.c.bf16 %v203_v43, %v202_v41  ;;  %v174_v63 = vld [vmem:[%s3339_s1 + $0x440] sm:$0xff]  ;;  %v175_v0 = vld [vmem:[%s3339_s1 + $0x448] sm:$0xff]  ;;  %v192_v4 = vld [vmem:[%s3339_s1 + $0x4d0] sm:$0xff] }
  0x3c   :  { %1824 = vmatprep.subr.bf16.mxu1 %v1823_v54  ;;  %v1875_v54 = vpack.c.bf16 %v221_v47, %v220_v46  ;;  %v206_v1 = vld [vmem:[%s3339_s1 + $0x540] sm:$0xff]  ;;  %v207_v3 = vld [vmem:[%s3339_s1 + $0x548] sm:$0xff]  ;;  %v193_v5 = vld [vmem:[%s3339_s1 + $0x4d8] sm:$0xff] }
  0x3d   :  { %1794 = vmatpush3.bf16.msra.mxu0 %v1793_v60  ;;  %v1845_v60 = vpack.c.bf16 %v173_v52, %v172_v51  ;;  %v224_v6 = vld [vmem:[%s3339_s1 + $0x5d0] sm:$0xff]  ;;  %v225_v7 = vld [vmem:[%s3339_s1 + $0x5d8] sm:$0xff]  ;;  %v194_v16 = vld [vmem:[%s3339_s1 + $0x4e0] sm:$0xff] }
  0x3e   :  { %1796 = vmatprep.subr.bf16.mxu0 %v1795_v62  ;;  %v1847_v62 = vpack.c.bf16 %v191_v57, %v190_v56  ;;  %v176_v11 = vld [vmem:[%s3339_s1 + $0x450] sm:$0xff]  ;;  %v177_v12 = vld [vmem:[%s3339_s1 + $0x458] sm:$0xff]  ;;  %v195_v17 = vld [vmem:[%s3339_s1 + $0x4e8] sm:$0xff] }
  0x3f   :  { %1826 = vmatpush3.bf16.msra.mxu1 %v1825_v61  ;;  %v1877_v61 = vpack.c.bf16 %v205_v55, %v204_v53  ;;  %v208_v13 = vld [vmem:[%s3339_s1 + $0x550] sm:$0xff]  ;;  %v209_v15 = vld [vmem:[%s3339_s1 + $0x558] sm:$0xff]  ;;  %v226_v18 = vld [vmem:[%s3339_s1 + $0x5e0] sm:$0xff] }
  0x40   :  { %1828 = vmatprep.subr.bf16.mxu1 %v1827_v2  ;;  %v1879_v2 = vpack.c.bf16 %v223_v59, %v222_v58  ;;  %v227_v19 = vld [vmem:[%s3339_s1 + $0x5e8] sm:$0xff]  ;;  %v210_v25 = vld [vmem:[%s3339_s1 + $0x560] sm:$0xff]  ;;  %v197_v29 = vld [vmem:[%s3339_s1 + $0x4f8] sm:$0xff] }
  0x41   :  { %1798 = vmatpush3.bf16.msra.mxu0 %v1797_v8  ;;  %v1849_v8 = vpack.c.bf16 %v175_v0, %v174_v63  ;;  %v1887_v26 = vpack.c.bf16 %v227_v19, %v226_v18  ;;  %v211_v27 = vld [vmem:[%s3339_s1 + $0x568] sm:$0xff]  ;;  %v228_v30 = vld [vmem:[%s3339_s1 + $0x5f0] sm:$0xff]  ;;  %v229_v31 = vld [vmem:[%s3339_s1 + $0x5f8] sm:$0xff] }
  0x42   :  { %1832 = vmatprep.subr.bf16.mxu0 %v1831_v10  ;;  %v1851_v10 = vpack.c.bf16 %v193_v5, %v192_v4  ;;  %v1889_v33 = vpack.c.bf16 %v211_v27, %v210_v25  ;;  %v213_v39 = vld [vmem:[%s3339_s1 + $0x578] sm:$0xff]  ;;  %v246_v40 = vld [vmem:[%s3339_s1 + $0x680] sm:$0xff]  ;;  %v247_v41 = vld [vmem:[%s3339_s1 + $0x688] sm:$0xff] }
  0x43   :  { %1830 = vmatpush3.bf16.msra.mxu1 %v1829_v9  ;;  %v1881_v9 = vpack.c.bf16 %v207_v3, %v206_v1  ;;  %v279_v43 = vld [vmem:[%s3339_s1 + $0x788] sm:$0xff]  ;;  %v1895_v46 = vpack.c.bf16 %v247_v41, %v246_v40  ;;  %v230_v47 = vld [vmem:[%s3339_s1 + $0x600] sm:$0xff]  ;;  %v248_v52 = vld [vmem:[%s3339_s1 + $0x690] sm:$0xff] }
  0x44   :  { %1864 = vmatprep.subr.bf16.mxu1 %v1863_v14  ;;  %634 = vmatmul.mubr.f32.vlgmr.msra.gmra.mrb[2].mxu0 %v18_v20  ;;  %v1883_v14 = vpack.c.bf16 %v225_v7, %v224_v6  ;;  %v1853_v20 = vpack.c.bf16 %v177_v12, %v176_v11  ;;  %v263_v51 = vld [vmem:[%s3339_s1 + $0x708] sm:$0xff]  ;;  %v249_v53 = vld [vmem:[%s3339_s1 + $0x698] sm:$0xff]  ;;  %v22_v56 = vld [vmem:[%s3340_s0 + $0x40] sm:$0xff] }
  0x45   :  { %1834 = vmatpush3.bf16.msra.mxu0 %v1833_v21  ;;  %773 = vmatprep.mubr.f32.mxu0 %v23_v34  ;;  %v1885_v21 = vpack.c.bf16 %v209_v15, %v208_v13  ;;  %v281_v55 = vld [vmem:[%s3339_s1 + $0x798] sm:$0xff]  ;;  %v24_v58 = vld [vmem:[%s3340_s0 + $0x50] sm:$0xff]  ;;  %v251_v3 = vld [vmem:[%s3339_s1 + $0x6a8] sm:$0xff] }
  0x46   :  { %704 = vmatmul.mubr.f32.vlgmr.msra.gmra.mrb[2].mxu1 %v20_v22  ;;  %1836 = vmatprep.subr.bf16.mxu0 %v1835_v24  ;;  %v1855_v22 = vpack.c.bf16 %v195_v17, %v194_v16  ;;  %v179_v24 = vld [vmem:[%s3339_s1 + $0x468] sm:$0xff]  ;;  %v264_v63 = vld [vmem:[%s3339_s1 + $0x710] sm:$0xff]  ;;  %v265_v1 = vld [vmem:[%s3339_s1 + $0x718] sm:$0xff] }
  0x47   :  { %1866 = vmatpush3.bf16.msra.mxu1 %v1865_v23  ;;  %843 = vmatprep.mubr.f32.mxu1 %v25_v36  ;;  %v178_v23 = vld [vmem:[%s3339_s1 + $0x460] sm:$0xff]  ;;  %v181_v36 = vld [vmem:[%s3339_s1 + $0x478] sm:$0xff]  ;;  %v283_v5 = vld [vmem:[%s3339_s1 + $0x7a8] sm:$0xff] }
  0x48   :  { %1868 = vmatprep.subr.bf16.mxu1 %v1867_v28  ;;  %v196_v28 = vld [vmem:[%s3339_s1 + $0x4f0] sm:$0xff]  ;;  %v1857_v32 = vpack.c.bf16 %v179_v24, %v178_v23  ;;  %v282_v4 = vld [vmem:[%s3339_s1 + $0x7a0] sm:$0xff]  ;;  %v27_v6 = vld [vmem:[%s3340_s0 + $0x68] sm:$0xff] }
  0x49   :  { %1838 = vmatpush3.bf16.msra.mxu0 %v1837_v35  ;;  %v1859_v34 = vpack.c.bf16 %v197_v29, %v196_v28  ;;  %v180_v35 = vld [vmem:[%s3339_s1 + $0x470] sm:$0xff]  ;;  %v234_v11 = vld [vmem:[%s3339_s1 + $0x620] sm:$0xff]  ;;  %v235_v12 = vld [vmem:[%s3339_s1 + $0x628] sm:$0xff] }
  0x4a   :  { %1840 = vmatprep.subr.bf16.mxu0 %v1839_v38  ;;  %v1891_v38 = vpack.c.bf16 %v229_v31, %v228_v30  ;;  %v1861_v44 = vpack.c.bf16 %v181_v36, %v180_v35  ;;  %v266_v13 = vld [vmem:[%s3339_s1 + $0x720] sm:$0xff]  ;;  %v267_v15 = vld [vmem:[%s3339_s1 + $0x728] sm:$0xff]  ;;  %v252_v16 = vld [vmem:[%s3339_s1 + $0x6b0] sm:$0xff] }
  0x4b   :  { %1870 = vmatpush3.bf16.msra.mxu1 %v1869_v37  ;;  %v212_v37 = vld [vmem:[%s3339_s1 + $0x570] sm:$0xff]  ;;  %v253_v17 = vld [vmem:[%s3339_s1 + $0x6b8] sm:$0xff]  ;;  %v254_v28 = vld [vmem:[%s3339_s1 + $0x6c0] sm:$0xff] }
  0x4c   :  { %1872 = vmatprep.subr.bf16.mxu1 %v1871_v42  ;;  %v278_v42 = vld [vmem:[%s3339_s1 + $0x780] sm:$0xff]  ;;  %v1893_v45 = vpack.c.bf16 %v213_v39, %v212_v37  ;;  %v284_v18 = vld [vmem:[%s3339_s1 + $0x7b0] sm:$0xff]  ;;  %v285_v19 = vld [vmem:[%s3339_s1 + $0x7b8] sm:$0xff] }
  0x4d   :  { %1842 = vmatpush3.bf16.msra.mxu0 %v1841_v48  ;;  %v231_v48 = vld [vmem:[%s3339_s1 + $0x608] sm:$0xff]  ;;  %v236_v23 = vld [vmem:[%s3339_s1 + $0x630] sm:$0xff]  ;;  %v237_v24 = vld [vmem:[%s3339_s1 + $0x638] sm:$0xff] }
  0x4e   :  { %1844 = vmatprep.subr.bf16.mxu0 %v1843_v50  ;;  %v1927_v50 = vpack.c.bf16 %v279_v43, %v278_v42  ;;  %v1897_v57 = vpack.c.bf16 %v231_v48, %v230_v47  ;;  %v268_v25 = vld [vmem:[%s3339_s1 + $0x730] sm:$0xff]  ;;  %v269_v27 = vld [vmem:[%s3339_s1 + $0x738] sm:$0xff]  ;;  %v255_v29 = vld [vmem:[%s3339_s1 + $0x6c8] sm:$0xff] }
  0x4f   :  { %1874 = vmatpush3.bf16.msra.mxu1 %v1873_v49  ;;  %v262_v49 = vld [vmem:[%s3339_s1 + $0x700] sm:$0xff]  ;;  %v287_v31 = vld [vmem:[%s3339_s1 + $0x7c8] sm:$0xff]  ;;  %v256_v40 = vld [vmem:[%s3339_s1 + $0x6d0] sm:$0xff] }
  0x50   :  { %1876 = vmatprep.subr.bf16.mxu1 %v1875_v54  ;;  %v280_v54 = vld [vmem:[%s3339_s1 + $0x790] sm:$0xff]  ;;  %v1929_v59 = vpack.c.bf16 %v263_v51, %v262_v49  ;;  %v286_v30 = vld [vmem:[%s3339_s1 + $0x7c0] sm:$0xff]  ;;  %v239_v36 = vld [vmem:[%s3339_s1 + $0x648] sm:$0xff] }
  0x51   :  { %1846 = vmatpush3.bf16.msra.mxu0 %v1845_v60  ;;  %v1899_v60 = vpack.c.bf16 %v249_v53, %v248_v52  ;;  %v1931_v0 = vpack.c.bf16 %v281_v55, %v280_v54  ;;  %v238_v35 = vld [vmem:[%s3339_s1 + $0x640] sm:$0xff]  ;;  %v271_v39 = vld [vmem:[%s3339_s1 + $0x748] sm:$0xff]  ;;  %v257_v41 = vld [vmem:[%s3339_s1 + $0x6d8] sm:$0xff] }
  0x52   :  { %1848 = vmatprep.subr.bf16.mxu0 %v1847_v62  ;;  %v233_v62 = vld [vmem:[%s3339_s1 + $0x618] sm:$0xff]  ;;  %v270_v37 = vld [vmem:[%s3339_s1 + $0x740] sm:$0xff]  ;;  %v288_v42 = vld [vmem:[%s3339_s1 + $0x7d0] sm:$0xff] }
  0x53   :  { %1878 = vmatpush3.bf16.msra.mxu1 %v1877_v61  ;;  %v232_v61 = vld [vmem:[%s3339_s1 + $0x610] sm:$0xff]  ;;  %v289_v43 = vld [vmem:[%s3339_s1 + $0x7d8] sm:$0xff]  ;;  %v258_v52 = vld [vmem:[%s3339_s1 + $0x6e0] sm:$0xff] }
  0x54   :  { %1880 = vmatprep.subr.bf16.mxu1 %v1879_v2  ;;  %v250_v2 = vld [vmem:[%s3339_s1 + $0x6a0] sm:$0xff]  ;;  %v1901_v7 = vpack.c.bf16 %v233_v62, %v232_v61  ;;  %v240_v47 = vld [vmem:[%s3339_s1 + $0x650] sm:$0xff]  ;;  %v241_v48 = vld [vmem:[%s3339_s1 + $0x658] sm:$0xff] }
  0x55   :  { %1850 = vmatpush3.bf16.msra.mxu0 %v1849_v8  ;;  %v29_v8 = vld [vmem:[%s3340_s0 + $0x78] sm:$0xff]  ;;  %v272_v49 = vld [vmem:[%s3339_s1 + $0x750] sm:$0xff]  ;;  %v259_v53 = vld [vmem:[%s3339_s1 + $0x6e8] sm:$0xff] }
  0x56   :  { %1852 = vmatprep.subr.bf16.mxu0 %v1851_v10  ;;  %v1903_v10 = vpack.c.bf16 %v251_v3, %v250_v2  ;;  %v273_v51 = vld [vmem:[%s3339_s1 + $0x758] sm:$0xff]  ;;  %v290_v54 = vld [vmem:[%s3339_s1 + $0x7e0] sm:$0xff]  ;;  %v291_v55 = vld [vmem:[%s3339_s1 + $0x7e8] sm:$0xff] }
  0x57   :  { %1882 = vmatpush3.bf16.msra.mxu1 %v1881_v9  ;;  %v1933_v9 = vpack.c.bf16 %v265_v1, %v264_v63  ;;  %v274_v61 = vld [vmem:[%s3339_s1 + $0x760] sm:$0xff]  ;;  %v1951_v62 = vpack.c.bf16 %v291_v55, %v290_v54  ;;  %v275_v63 = vld [vmem:[%s3339_s1 + $0x768] sm:$0xff]  ;;  %v261_v1 = vld [vmem:[%s3339_s1 + $0x6f8] sm:$0xff] }
  0x58   :  { %1884 = vmatprep.subr.bf16.mxu1 %v1883_v14  ;;  %v1935_v14 = vpack.c.bf16 %v283_v5, %v282_v4  ;;  %v292_v2 = vld [vmem:[%s3339_s1 + $0x7f0] sm:$0xff]  ;;  %v293_v3 = vld [vmem:[%s3339_s1 + $0x7f8] sm:$0xff]  ;;  %v1953_v5 = vpack.c.bf16 %v275_v63, %v274_v61 }
  0x59   :  { %1854 = vmatpush3.bf16.msra.mxu0 %v1853_v20  ;;  %v1905_v20 = vpack.c.bf16 %v235_v12, %v234_v11  ;;  %v277_v11 = vld [vmem:[%s3339_s1 + $0x778] sm:$0xff]  ;;  %v310_v12 = vld [vmem:[%s3339_s1 + $0x880] sm:$0xff]  ;;  %v348_v54 = vld [vmem:[%s3339_s1 + $0x9b0] sm:$0xff] }
  0x5a   :  { %1856 = vmatprep.subr.bf16.mxu0 %v1855_v22  ;;  %v1907_v22 = vpack.c.bf16 %v253_v17, %v252_v16  ;;  %v349_v55 = vld [vmem:[%s3339_s1 + $0x9b8] sm:$0xff]  ;;  %v332_v61 = vld [vmem:[%s3339_s1 + $0x930] sm:$0xff] }
  0x5b   :  { %1886 = vmatpush3.bf16.msra.mxu1 %v1885_v21  ;;  %v1937_v21 = vpack.c.bf16 %v267_v15, %v266_v13  ;;  %v311_v13 = vld [vmem:[%s3339_s1 + $0x888] sm:$0xff]  ;;  %v333_v63 = vld [vmem:[%s3339_s1 + $0x938] sm:$0xff] }
  0x5c   :  { %1888 = vmatprep.subr.bf16.mxu1 %v1887_v26  ;;  %v1939_v26 = vpack.c.bf16 %v285_v19, %v284_v18  ;;  %v343_v15 = vld [vmem:[%s3339_s1 + $0x988] sm:$0xff]  ;;  %v1959_v18 = vpack.c.bf16 %v311_v13, %v310_v12  ;;  %v294_v19 = vld [vmem:[%s3339_s1 + $0x800] sm:$0xff]  ;;  %v320_v12 = vld [vmem:[%s3339_s1 + $0x8d0] sm:$0xff] }
  0x5d   :  { %1858 = vmatpush3.bf16.msra.mxu0 %v1857_v32  ;;  %v1909_v32 = vpack.c.bf16 %v237_v24, %v236_v23  ;;  %v327_v23 = vld [vmem:[%s3339_s1 + $0x908] sm:$0xff]  ;;  %v312_v24 = vld [vmem:[%s3339_s1 + $0x890] sm:$0xff]  ;;  %v321_v13 = vld [vmem:[%s3339_s1 + $0x8d8] sm:$0xff] }
  0x5e   :  { %1860 = vmatprep.subr.bf16.mxu0 %v1859_v34  ;;  %v1911_v34 = vpack.c.bf16 %v255_v29, %v254_v28  ;;  %v26_v28 = vld [vmem:[%s3340_s0 + $0x60] sm:$0xff] }
  0x5f   :  { %1890 = vmatpush3.bf16.msra.mxu1 %v1889_v33  ;;  %v1941_v33 = vpack.c.bf16 %v269_v27, %v268_v25  ;;  %v313_v25 = vld [vmem:[%s3339_s1 + $0x898] sm:$0xff] }
  0x60   :  { %1892 = vmatprep.subr.bf16.mxu1 %v1891_v38  ;;  %v1943_v38 = vpack.c.bf16 %v287_v31, %v286_v30  ;;  %v345_v27 = vld [vmem:[%s3339_s1 + $0x998] sm:$0xff]  ;;  %v28_v30 = vld [vmem:[%s3340_s0 + $0x70] sm:$0xff] }
  0x61   :  { %1862 = vmatpush3.bf16.msra.mxu0 %v1861_v44  ;;  %v1913_v44 = vpack.c.bf16 %v239_v36, %v238_v35  ;;  %v328_v35 = vld [vmem:[%s3339_s1 + $0x910] sm:$0xff] }
  0x62   :  { %1896 = vmatprep.subr.bf16.mxu0 %v1895_v46  ;;  %v1915_v46 = vpack.c.bf16 %v257_v41, %v256_v40  ;;  %v346_v40 = vld [vmem:[%s3339_s1 + $0x9a0] sm:$0xff]  ;;  %v347_v41 = vld [vmem:[%s3339_s1 + $0x9a8] sm:$0xff] }
  0x63   :  { %1894 = vmatpush3.bf16.msra.mxu1 %v1893_v45  ;;  %v1945_v45 = vpack.c.bf16 %v271_v39, %v270_v37  ;;  %v329_v37 = vld [vmem:[%s3339_s1 + $0x918] sm:$0xff]  ;;  %v315_v39 = vld [vmem:[%s3339_s1 + $0x8a8] sm:$0xff] }
  0x64   :  { %1928 = vmatprep.subr.bf16.mxu1 %v1927_v50  ;;  %774 = vmatmul.mubr.f32.vlgmr.msra.gmra.mrb[4].mxu0 %v22_v56  ;;  %v1947_v50 = vpack.c.bf16 %v289_v43, %v288_v42  ;;  %v1917_v56 = vpack.c.bf16 %v241_v48, %v240_v47  ;;  %v31_v42 = vld [vmem:[%s3340_s0 + $0x88] sm:$0xff]  ;;  %v298_v47 = vld [vmem:[%s3339_s1 + $0x820] sm:$0xff] }
  0x65   :  { %1898 = vmatpush3.bf16.msra.mxu0 %v1897_v57  ;;  %913 = vmatprep.mubr.f32.mxu0 %v27_v6  ;;  %v1949_v57 = vpack.c.bf16 %v273_v51, %v272_v49  ;;  %v299_v48 = vld [vmem:[%s3339_s1 + $0x828] sm:$0xff]  ;;  %v330_v49 = vld [vmem:[%s3339_s1 + $0x920] sm:$0xff] }
  0x66   :  { %844 = vmatmul.mubr.f32.vlgmr.msra.gmra.mrb[4].mxu1 %v24_v58  ;;  %1900 = vmatprep.subr.bf16.mxu0 %v1899_v60  ;;  %v1919_v58 = vpack.c.bf16 %v259_v53, %v258_v52  ;;  %v243_v60 = vld [vmem:[%s3339_s1 + $0x668] sm:$0xff]  ;;  %v316_v52 = vld [vmem:[%s3339_s1 + $0x8b0] sm:$0xff]  ;;  %v317_v53 = vld [vmem:[%s3339_s1 + $0x8b8] sm:$0xff] }
  0x67   :  { %1930 = vmatpush3.bf16.msra.mxu1 %v1929_v59  ;;  %983 = vmatprep.mubr.f32.mxu1 %v29_v8  ;;  %v242_v59 = vld [vmem:[%s3339_s1 + $0x660] sm:$0xff]  ;;  %v245_v8 = vld [vmem:[%s3339_s1 + $0x678] sm:$0xff]  ;;  %v331_v51 = vld [vmem:[%s3339_s1 + $0x928] sm:$0xff] }
  0x68   :  { %1932 = vmatprep.subr.bf16.mxu1 %v1931_v0  ;;  %v260_v0 = vld [vmem:[%s3339_s1 + $0x6f0] sm:$0xff]  ;;  %v1921_v4 = vpack.c.bf16 %v243_v60, %v242_v59  ;;  %v301_v60 = vld [vmem:[%s3339_s1 + $0x838] sm:$0xff] }
  0x69   :  { %1902 = vmatpush3.bf16.msra.mxu0 %v1901_v7  ;;  %v1923_v6 = vpack.c.bf16 %v261_v1, %v260_v0  ;;  %v244_v7 = vld [vmem:[%s3339_s1 + $0x670] sm:$0xff]  ;;  %v318_v0 = vld [vmem:[%s3339_s1 + $0x8c0] sm:$0xff]  ;;  %v319_v1 = vld [vmem:[%s3339_s1 + $0x8c8] sm:$0xff] }
  0x6a   :  { %1904 = vmatprep.subr.bf16.mxu0 %v1903_v10  ;;  %v1955_v10 = vpack.c.bf16 %v293_v3, %v292_v2  ;;  %v1925_v16 = vpack.c.bf16 %v245_v8, %v244_v7  ;;  %v300_v59 = vld [vmem:[%s3339_s1 + $0x830] sm:$0xff]  ;;  %v350_v2 = vld [vmem:[%s3339_s1 + $0x9c0] sm:$0xff]  ;;  %v351_v3 = vld [vmem:[%s3339_s1 + $0x9c8] sm:$0xff] }
  0x6b   :  { %1934 = vmatpush3.bf16.msra.mxu1 %v1933_v9  ;;  %v276_v9 = vld [vmem:[%s3339_s1 + $0x770] sm:$0xff]  ;;  %v302_v7 = vld [vmem:[%s3339_s1 + $0x840] sm:$0xff]  ;;  %v303_v8 = vld [vmem:[%s3339_s1 + $0x848] sm:$0xff] }
  0x6c   :  { %1936 = vmatprep.subr.bf16.mxu1 %v1935_v14  ;;  %v342_v14 = vld [vmem:[%s3339_s1 + $0x980] sm:$0xff]  ;;  %v1957_v17 = vpack.c.bf16 %v277_v11, %v276_v9  ;;  %v335_v11 = vld [vmem:[%s3339_s1 + $0x948] sm:$0xff] }
  0x6d   :  { %1906 = vmatpush3.bf16.msra.mxu0 %v1905_v20  ;;  %v295_v20 = vld [vmem:[%s3339_s1 + $0x808] sm:$0xff]  ;;  %v334_v9 = vld [vmem:[%s3339_s1 + $0x940] sm:$0xff] }
  0x6e   :  { %1908 = vmatprep.subr.bf16.mxu0 %v1907_v22  ;;  %v1991_v22 = vpack.c.bf16 %v343_v15, %v342_v14  ;;  %v1961_v29 = vpack.c.bf16 %v295_v20, %v294_v19  ;;  %v352_v14 = vld [vmem:[%s3339_s1 + $0x9d0] sm:$0xff]  ;;  %v353_v15 = vld [vmem:[%s3339_s1 + $0x9d8] sm:$0xff] }
  0x6f   :  { %1938 = vmatpush3.bf16.msra.mxu1 %v1937_v21  ;;  %v326_v21 = vld [vmem:[%s3339_s1 + $0x900] sm:$0xff]  ;;  %v304_v19 = vld [vmem:[%s3339_s1 + $0x850] sm:$0xff]  ;;  %v305_v20 = vld [vmem:[%s3339_s1 + $0x858] sm:$0xff] }
  0x70   :  { %1940 = vmatprep.subr.bf16.mxu1 %v1939_v26  ;;  %v344_v26 = vld [vmem:[%s3339_s1 + $0x990] sm:$0xff]  ;;  %v1993_v31 = vpack.c.bf16 %v327_v23, %v326_v21  ;;  %v337_v23 = vld [vmem:[%s3339_s1 + $0x958] sm:$0xff] }
  0x71   :  { %1910 = vmatpush3.bf16.msra.mxu0 %v1909_v32  ;;  %v1963_v32 = vpack.c.bf16 %v313_v25, %v312_v24  ;;  %v1995_v36 = vpack.c.bf16 %v345_v27, %v344_v26  ;;  %v336_v21 = vld [vmem:[%s3339_s1 + $0x950] sm:$0xff]  ;;  %v322_v24 = vld [vmem:[%s3339_s1 + $0x8e0] sm:$0xff]  ;;  %v323_v25 = vld [vmem:[%s3339_s1 + $0x8e8] sm:$0xff] }
  0x72   :  { %1912 = vmatprep.subr.bf16.mxu0 %v1911_v34  ;;  %v297_v34 = vld [vmem:[%s3339_s1 + $0x818] sm:$0xff]  ;;  %v354_v26 = vld [vmem:[%s3339_s1 + $0x9e0] sm:$0xff]  ;;  %v355_v27 = vld [vmem:[%s3339_s1 + $0x9e8] sm:$0xff] }
  0x73   :  { %1942 = vmatpush3.bf16.msra.mxu1 %v1941_v33  ;;  %v296_v33 = vld [vmem:[%s3339_s1 + $0x810] sm:$0xff] }
  0x74   :  { %1944 = vmatprep.subr.bf16.mxu1 %v1943_v38  ;;  %v314_v38 = vld [vmem:[%s3339_s1 + $0x8a0] sm:$0xff]  ;;  %v1965_v43 = vpack.c.bf16 %v297_v34, %v296_v33  ;;  %v2015_v34 = vpack.c.bf16 %v355_v27, %v354_v26  ;;  %v412_v26 = vld [vmem:[%s3339_s1 + $0xbb0] sm:$0xff]  ;;  %v413_v27 = vld [vmem:[%s3339_s1 + $0xbb8] sm:$0xff] }
  0x75   :  { %1914 = vmatpush3.bf16.msra.mxu0 %v1913_v44  ;;  %v33_v44 = vld [vmem:[%s3340_s0 + $0x98] sm:$0xff]  ;;  %v338_v33 = vld [vmem:[%s3339_s1 + $0x960] sm:$0xff] }
  0x76   :  { %1916 = vmatprep.subr.bf16.mxu0 %v1915_v46  ;;  %v1967_v46 = vpack.c.bf16 %v315_v39, %v314_v38  ;;  %v356_v38 = vld [vmem:[%s3339_s1 + $0x9f0] sm:$0xff]  ;;  %v357_v39 = vld [vmem:[%s3339_s1 + $0x9f8] sm:$0xff] }
  0x77   :  { %1946 = vmatpush3.bf16.msra.mxu1 %v1945_v45  ;;  %v1997_v45 = vpack.c.bf16 %v329_v37, %v328_v35  ;;  %v339_v35 = vld [vmem:[%s3339_s1 + $0x968] sm:$0xff]  ;;  %v325_v37 = vld [vmem:[%s3339_s1 + $0x8f8] sm:$0xff] }
  0x78   :  { %1948 = vmatprep.subr.bf16.mxu1 %v1947_v50  ;;  %v1999_v50 = vpack.c.bf16 %v347_v41, %v346_v40  ;;  %v2017_v41 = vpack.c.bf16 %v339_v35, %v338_v33  ;;  %v396_v33 = vld [vmem:[%s3339_s1 + $0xb30] sm:$0xff]  ;;  %v397_v35 = vld [vmem:[%s3339_s1 + $0xb38] sm:$0xff] }
  0x79   :  { %1918 = vmatpush3.bf16.msra.mxu0 %v1917_v56  ;;  %v1969_v56 = vpack.c.bf16 %v299_v48, %v298_v47  ;;  %v341_v47 = vld [vmem:[%s3339_s1 + $0x978] sm:$0xff]  ;;  %v374_v48 = vld [vmem:[%s3339_s1 + $0xa80] sm:$0xff] }
  0x7a   :  { %1920 = vmatprep.subr.bf16.mxu0 %v1919_v58  ;;  %v1971_v58 = vpack.c.bf16 %v317_v53, %v316_v52 }
  0x7b   :  { %1950 = vmatpush3.bf16.msra.mxu1 %v1949_v57  ;;  %v2001_v57 = vpack.c.bf16 %v331_v51, %v330_v49  ;;  %v375_v49 = vld [vmem:[%s3339_s1 + $0xa88] sm:$0xff] }
  0x7c   :  { %1952 = vmatprep.subr.bf16.mxu1 %v1951_v62  ;;  %v2003_v62 = vpack.c.bf16 %v349_v55, %v348_v54  ;;  %v407_v51 = vld [vmem:[%s3339_s1 + $0xb88] sm:$0xff]  ;;  %v2023_v54 = vpack.c.bf16 %v375_v49, %v374_v48  ;;  %v358_v55 = vld [vmem:[%s3339_s1 + $0xa00] sm:$0xff]  ;;  %v384_v48 = vld [vmem:[%s3339_s1 + $0xad0] sm:$0xff] }
  0x7d   :  { %1922 = vmatpush3.bf16.msra.mxu0 %v1921_v4  ;;  %v1973_v4 = vpack.c.bf16 %v301_v60, %v300_v59  ;;  %v391_v59 = vld [vmem:[%s3339_s1 + $0xb08] sm:$0xff]  ;;  %v376_v60 = vld [vmem:[%s3339_s1 + $0xa90] sm:$0xff]  ;;  %v385_v49 = vld [vmem:[%s3339_s1 + $0xad8] sm:$0xff] }
  0x7e   :  { %1924 = vmatprep.subr.bf16.mxu0 %v1923_v6  ;;  %v1975_v6 = vpack.c.bf16 %v319_v1, %v318_v0  ;;  %v30_v0 = vld [vmem:[%s3340_s0 + $0x80] sm:$0xff] }
  0x7f   :  { %1954 = vmatpush3.bf16.msra.mxu1 %v1953_v5  ;;  %v2005_v5 = vpack.c.bf16 %v333_v63, %v332_v61  ;;  %v377_v61 = vld [vmem:[%s3339_s1 + $0xa98] sm:$0xff] }
  0x80   :  { %1956 = vmatprep.subr.bf16.mxu1 %v1955_v10  ;;  %v2007_v10 = vpack.c.bf16 %v351_v3, %v350_v2  ;;  %v409_v63 = vld [vmem:[%s3339_s1 + $0xb98] sm:$0xff]  ;;  %v32_v2 = vld [vmem:[%s3340_s0 + $0x90] sm:$0xff] }
  0x81   :  { %1926 = vmatpush3.bf16.msra.mxu0 %v1925_v16  ;;  %v1977_v16 = vpack.c.bf16 %v303_v8, %v302_v7  ;;  %v392_v7 = vld [vmem:[%s3339_s1 + $0xb10] sm:$0xff] }
  0x82   :  { %1960 = vmatprep.subr.bf16.mxu0 %v1959_v18  ;;  %v1979_v18 = vpack.c.bf16 %v321_v13, %v320_v12  ;;  %v410_v12 = vld [vmem:[%s3339_s1 + $0xba0] sm:$0xff]  ;;  %v411_v13 = vld [vmem:[%s3339_s1 + $0xba8] sm:$0xff] }
  0x83   :  { %1958 = vmatpush3.bf16.msra.mxu1 %v1957_v17  ;;  %v2009_v17 = vpack.c.bf16 %v335_v11, %v334_v9  ;;  %v393_v9 = vld [vmem:[%s3339_s1 + $0xb18] sm:$0xff]  ;;  %v379_v11 = vld [vmem:[%s3339_s1 + $0xaa8] sm:$0xff] }
  0x84   :  { %1992 = vmatprep.subr.bf16.mxu1 %v1991_v22  ;;  %914 = vmatmul.mubr.f32.vlgmr.msra.gmra.mrb[6].mxu0 %v26_v28  ;;  %v2011_v22 = vpack.c.bf16 %v353_v15, %v352_v14  ;;  %v1981_v28 = vpack.c.bf16 %v305_v20, %v304_v19  ;;  %v35_v14 = vld [vmem:[%s3340_s0 + $0xa8] sm:$0xff]  ;;  %v362_v19 = vld [vmem:[%s3339_s1 + $0xa20] sm:$0xff] }
  0x85   :  { %1962 = vmatpush3.bf16.msra.mxu0 %v1961_v29  ;;  %1053 = vmatprep.mubr.f32.mxu0 %v31_v42  ;;  %v2013_v29 = vpack.c.bf16 %v337_v23, %v336_v21  ;;  %v363_v20 = vld [vmem:[%s3339_s1 + $0xa28] sm:$0xff]  ;;  %v394_v21 = vld [vmem:[%s3339_s1 + $0xb20] sm:$0xff] }
  0x86   :  { %984 = vmatmul.mubr.f32.vlgmr.msra.gmra.mrb[6].mxu1 %v28_v30  ;;  %1964 = vmatprep.subr.bf16.mxu0 %v1963_v32  ;;  %v1983_v30 = vpack.c.bf16 %v323_v25, %v322_v24  ;;  %v307_v32 = vld [vmem:[%s3339_s1 + $0x868] sm:$0xff]  ;;  %v380_v24 = vld [vmem:[%s3339_s1 + $0xab0] sm:$0xff]  ;;  %v381_v25 = vld [vmem:[%s3339_s1 + $0xab8] sm:$0xff] }
  0x87   :  { %1994 = vmatpush3.bf16.msra.mxu1 %v1993_v31  ;;  %1123 = vmatprep.mubr.f32.mxu1 %v33_v44  ;;  %v306_v31 = vld [vmem:[%s3339_s1 + $0x860] sm:$0xff]  ;;  %v309_v44 = vld [vmem:[%s3339_s1 + $0x878] sm:$0xff]  ;;  %v395_v23 = vld [vmem:[%s3339_s1 + $0xb28] sm:$0xff] }
  0x88   :  { %1996 = vmatprep.subr.bf16.mxu1 %v1995_v36  ;;  %v324_v36 = vld [vmem:[%s3339_s1 + $0x8f0] sm:$0xff]  ;;  %v1985_v40 = vpack.c.bf16 %v307_v32, %v306_v31  ;;  %v365_v32 = vld [vmem:[%s3339_s1 + $0xa38] sm:$0xff] }
  0x89   :  { %1966 = vmatpush3.bf16.msra.mxu0 %v1965_v43  ;;  %v1987_v42 = vpack.c.bf16 %v325_v37, %v324_v36  ;;  %v308_v43 = vld [vmem:[%s3339_s1 + $0x870] sm:$0xff]  ;;  %v382_v36 = vld [vmem:[%s3339_s1 + $0xac0] sm:$0xff]  ;;  %v383_v37 = vld [vmem:[%s3339_s1 + $0xac8] sm:$0xff] }
  0x8a   :  { %1968 = vmatprep.subr.bf16.mxu0 %v1967_v46  ;;  %v2019_v46 = vpack.c.bf16 %v357_v39, %v356_v38  ;;  %v1989_v52 = vpack.c.bf16 %v309_v44, %v308_v43  ;;  %v364_v31 = vld [vmem:[%s3339_s1 + $0xa30] sm:$0xff]  ;;  %v414_v38 = vld [vmem:[%s3339_s1 + $0xbc0] sm:$0xff]  ;;  %v415_v39 = vld [vmem:[%s3339_s1 + $0xbc8] sm:$0xff] }
  0x8b   :  { %1998 = vmatpush3.bf16.msra.mxu1 %v1997_v45  ;;  %v340_v45 = vld [vmem:[%s3339_s1 + $0x970] sm:$0xff]  ;;  %v366_v43 = vld [vmem:[%s3339_s1 + $0xa40] sm:$0xff]  ;;  %v367_v44 = vld [vmem:[%s3339_s1 + $0xa48] sm:$0xff] }
  0x8c   :  { %2000 = vmatprep.subr.bf16.mxu1 %v1999_v50  ;;  %v406_v50 = vld [vmem:[%s3339_s1 + $0xb80] sm:$0xff]  ;;  %v2021_v53 = vpack.c.bf16 %v341_v47, %v340_v45  ;;  %v399_v47 = vld [vmem:[%s3339_s1 + $0xb48] sm:$0xff] }
  0x8d   :  { %1970 = vmatpush3.bf16.msra.mxu0 %v1969_v56  ;;  %v359_v56 = vld [vmem:[%s3339_s1 + $0xa08] sm:$0xff]  ;;  %v398_v45 = vld [vmem:[%s3339_s1 + $0xb40] sm:$0xff] }
  0x8e   :  { %1972 = vmatprep.subr.bf16.mxu0 %v1971_v58  ;;  %v2055_v58 = vpack.c.bf16 %v407_v51, %v406_v50  ;;  %v2025_v1 = vpack.c.bf16 %v359_v56, %v358_v55  ;;  %v416_v50 = vld [vmem:[%s3339_s1 + $0xbd0] sm:$0xff]  ;;  %v417_v51 = vld [vmem:[%s3339_s1 + $0xbd8] sm:$0xff] }
  0x8f   :  { %2002 = vmatpush3.bf16.msra.mxu1 %v2001_v57  ;;  %v390_v57 = vld [vmem:[%s3339_s1 + $0xb00] sm:$0xff]  ;;  %v368_v55 = vld [vmem:[%s3339_s1 + $0xa50] sm:$0xff]  ;;  %v369_v56 = vld [vmem:[%s3339_s1 + $0xa58] sm:$0xff] }
  0x90   :  { %2004 = vmatprep.subr.bf16.mxu1 %v2003_v62  ;;  %v408_v62 = vld [vmem:[%s3339_s1 + $0xb90] sm:$0xff]  ;;  %v2057_v3 = vpack.c.bf16 %v391_v59, %v390_v57  ;;  %v401_v59 = vld [vmem:[%s3339_s1 + $0xb58] sm:$0xff] }
  0x91   :  { %1974 = vmatpush3.bf16.msra.mxu0 %v1973_v4  ;;  %v2027_v4 = vpack.c.bf16 %v377_v61, %v376_v60  ;;  %v2059_v8 = vpack.c.bf16 %v409_v63, %v408_v62  ;;  %v400_v57 = vld [vmem:[%s3339_s1 + $0xb50] sm:$0xff]  ;;  %v386_v60 = vld [vmem:[%s3339_s1 + $0xae0] sm:$0xff]  ;;  %v387_v61 = vld [vmem:[%s3339_s1 + $0xae8] sm:$0xff] }
  0x92   :  { %1976 = vmatprep.subr.bf16.mxu0 %v1975_v6  ;;  %v361_v6 = vld [vmem:[%s3339_s1 + $0xa18] sm:$0xff]  ;;  %v418_v62 = vld [vmem:[%s3339_s1 + $0xbe0] sm:$0xff]  ;;  %v419_v63 = vld [vmem:[%s3339_s1 + $0xbe8] sm:$0xff] }
  0x93   :  { %2006 = vmatpush3.bf16.msra.mxu1 %v2005_v5  ;;  %v360_v5 = vld [vmem:[%s3339_s1 + $0xa10] sm:$0xff] }
  0x94   :  { %2008 = vmatprep.subr.bf16.mxu1 %v2007_v10  ;;  %v378_v10 = vld [vmem:[%s3339_s1 + $0xaa0] sm:$0xff]  ;;  %v2029_v15 = vpack.c.bf16 %v361_v6, %v360_v5  ;;  %v2079_v6 = vpack.c.bf16 %v419_v63, %v418_v62 }
  0x95   :  { %1978 = vmatpush3.bf16.msra.mxu0 %v1977_v16  ;;  %v37_v16 = vld [vmem:[%s3340_s0 + $0xb8] sm:$0xff]  ;;  %v402_v5 = vld [vmem:[%s3339_s1 + $0xb60] sm:$0xff] }
  0x96   :  { %1980 = vmatprep.subr.bf16.mxu0 %v1979_v18  ;;  %v2031_v18 = vpack.c.bf16 %v379_v11, %v378_v10  ;;  %v420_v10 = vld [vmem:[%s3339_s1 + $0xbf0] sm:$0xff]  ;;  %v421_v11 = vld [vmem:[%s3339_s1 + $0xbf8] sm:$0xff] }
  0x97   :  { %2010 = vmatpush3.bf16.msra.mxu1 %v2009_v17  ;;  %v2061_v17 = vpack.c.bf16 %v393_v9, %v392_v7  ;;  %v403_v7 = vld [vmem:[%s3339_s1 + $0xb68] sm:$0xff]  ;;  %v389_v9 = vld [vmem:[%s3339_s1 + $0xaf8] sm:$0xff] }
  0x98   :  { %2012 = vmatprep.subr.bf16.mxu1 %v2011_v22  ;;  %v2063_v22 = vpack.c.bf16 %v411_v13, %v410_v12  ;;  %v2081_v13 = vpack.c.bf16 %v403_v7, %v402_v5 }
  0x99   :  { %1982 = vmatpush3.bf16.msra.mxu0 %v1981_v28  ;;  %v2033_v28 = vpack.c.bf16 %v363_v20, %v362_v19  ;;  %v405_v19 = vld [vmem:[%s3339_s1 + $0xb78] sm:$0xff] }
  0x9a   :  { %1984 = vmatprep.subr.bf16.mxu0 %v1983_v30  ;;  %v2035_v30 = vpack.c.bf16 %v381_v25, %v380_v24  ;;  %v1281_v25 = vld [vmem:[%s3341_s2] ss:$0 sm:$0xff] }
  0x9b   :  { %2014 = vmatpush3.bf16.msra.mxu1 %v2013_v29  ;;  %v2065_v29 = vpack.c.bf16 %v395_v23, %v394_v21  ;;  %v36_v23 = vld [vmem:[%s3340_s0 + $0xb0] sm:$0xff] }
  0x9c   :  { %2016 = vmatprep.subr.bf16.mxu1 %v2015_v34  ;;  %v2067_v34 = vpack.c.bf16 %v413_v27, %v412_v26 }
  0x9d   :  { %1986 = vmatpush3.bf16.msra.mxu0 %v1985_v40  ;;  %v2037_v40 = vpack.c.bf16 %v365_v32, %v364_v31 }
  0x9e   :  { %1988 = vmatprep.subr.bf16.mxu0 %v1987_v42  ;;  %v2039_v42 = vpack.c.bf16 %v383_v37, %v382_v36 }
  0x9f   :  { %2018 = vmatpush3.bf16.msra.mxu1 %v2017_v41  ;;  %v2069_v41 = vpack.c.bf16 %v397_v35, %v396_v33 }
  0xa0   :  { %2020 = vmatprep.subr.bf16.mxu1 %v2019_v46  ;;  %v2071_v46 = vpack.c.bf16 %v415_v39, %v414_v38 }
  0xa1   :  { %1990 = vmatpush3.bf16.msra.mxu0 %v1989_v52  ;;  %v2041_v52 = vpack.c.bf16 %v367_v44, %v366_v43 }
  0xa2   :  { %2024 = vmatprep.subr.bf16.mxu0 %v2023_v54  ;;  %v2043_v54 = vpack.c.bf16 %v385_v49, %v384_v48 }
  0xa3   :  { %2022 = vmatpush3.bf16.msra.mxu1 %v2021_v53  ;;  %v2073_v53 = vpack.c.bf16 %v399_v47, %v398_v45 }
  0xa4   :  { %2056 = vmatprep.subr.bf16.mxu1 %v2055_v58  ;;  %1054 = vmatmul.mubr.f32.vlgmr.msra.gmra.mrb[8].mxu0 %v30_v0  ;;  %v2075_v58 = vpack.c.bf16 %v417_v51, %v416_v50  ;;  %v2045_v0 = vpack.c.bf16 %v369_v56, %v368_v55 }
  0xa5   :  { %2026 = vmatpush3.bf16.msra.mxu0 %v2025_v1  ;;  %1193 = vmatprep.mubr.f32.mxu0 %v35_v14  ;;  %v2077_v1 = vpack.c.bf16 %v401_v59, %v400_v57 }
  0xa6   :  { %1124 = vmatmul.mubr.f32.vlgmr.msra.gmra.mrb[8].mxu1 %v32_v2  ;;  %2028 = vmatprep.subr.bf16.mxu0 %v2027_v4  ;;  %v2047_v2 = vpack.c.bf16 %v387_v61, %v386_v60  ;;  %v371_v4 = vld [vmem:[%s3339_s1 + $0xa68] sm:$0xff] }
  0xa7   :  { %2058 = vmatpush3.bf16.msra.mxu1 %v2057_v3  ;;  %1263 = vmatprep.mubr.f32.mxu1 %v37_v16  ;;  %v370_v3 = vld [vmem:[%s3339_s1 + $0xa60] sm:$0xff]  ;;  %v373_v16 = vld [vmem:[%s3339_s1 + $0xa78] sm:$0xff] }
  0xa8   :  { %2060 = vmatprep.subr.bf16.mxu1 %v2059_v8  ;;  %v388_v8 = vld [vmem:[%s3339_s1 + $0xaf0] sm:$0xff]  ;;  %v2049_v12 = vpack.c.bf16 %v371_v4, %v370_v3 }
  0xa9   :  { %2030 = vmatpush3.bf16.msra.mxu0 %v2029_v15  ;;  %v2051_v14 = vpack.c.bf16 %v389_v9, %v388_v8  ;;  %v372_v15 = vld [vmem:[%s3339_s1 + $0xa70] sm:$0xff] }
  0xaa   :  { %2032 = vmatprep.subr.bf16.mxu0 %v2031_v18  ;;  %v404_v18 = vld [vmem:[%s3339_s1 + $0xb70] sm:$0xff]  ;;  %v2053_v20 = vpack.c.bf16 %v373_v16, %v372_v15 }
  0xab   :  { %2062 = vmatpush3.bf16.msra.mxu1 %v2061_v17  ;;  %v2083_v17 = vpack.c.bf16 %v421_v11, %v420_v10  ;;  %v2085_v21 = vpack.c.bf16 %v405_v19, %v404_v18 }
  0xac   :  { %2064 = vmatprep.subr.bf16.mxu1 %v2063_v22  ;;  %v34_v22 = vld [vmem:[%s3340_s0 + $0xa0] sm:$0xff] }
  0xad   :  { %2034 = vmatpush3.bf16.msra.mxu0 %v2033_v28 }
  0xae   :  { %2036 = vmatprep.subr.bf16.mxu0 %v2035_v30 }
  0xaf   :  { %2066 = vmatpush3.bf16.msra.mxu1 %v2065_v29 }
  0xb0   :  { %2068 = vmatprep.subr.bf16.mxu1 %v2067_v34 }
  0xb1   :  { %2038 = vmatpush3.bf16.msra.mxu0 %v2037_v40 }
  0xb2   :  { %2040 = vmatprep.subr.bf16.mxu0 %v2039_v42 }
  0xb3   :  { %2070 = vmatpush3.bf16.msra.mxu1 %v2069_v41 }
  0xb4   :  { %2072 = vmatprep.subr.bf16.mxu1 %v2071_v46 }
  0xb5   :  { %2042 = vmatpush3.bf16.msra.mxu0 %v2041_v52 }
  0xb6   :  { %2044 = vmatprep.subr.bf16.mxu0 %v2043_v54 }
  0xb7   :  { %2074 = vmatpush3.bf16.msra.mxu1 %v2073_v53 }
  0xb8   :  { %2076 = vmatprep.subr.bf16.mxu1 %v2075_v58 }
  0xb9   :  { %2046 = vmatpush3.bf16.msra.mxu0 %v2045_v0 }
  0xba   :  { %2048 = vmatprep.subr.bf16.mxu0 %v2047_v2 }
  0xbb   :  { %2078 = vmatpush3.bf16.msra.mxu1 %v2077_v1 }
  0xbc   :  { %2080 = vmatprep.subr.bf16.mxu1 %v2079_v6 }
  0xbd   :  { %2050 = vmatpush3.bf16.msra.mxu0 %v2049_v12 }
  0xbe   :  { %2052 = vmatprep.subr.bf16.mxu0 %v2051_v14 }
  0xbf   :  { %2082 = vmatpush3.bf16.msra.mxu1 %v2081_v13 }
  0xc0   :  { %2084 = vmatprep.subr.bf16.mxu1 %v2083_v17 }
  0xc1   :  { %2054 = vmatpush3.bf16.msra.mxu0 %v2053_v20 }
  0xc3   :  { %2086 = vmatpush3.bf16.msra.mxu1 %v2085_v21 }
  0xc4   :  { %1194 = vmatmul.mubr.f32.vlgmr.msra.gmra.mrb[10].mxu0 %v34_v22 }
  0xc6   :  { %1264 = vmatmul.mubr.f32.vlgmr.msra.gmra.mrb[10].mxu1 %v36_v23 }
  0xf7   :  { %v1315_v24 = vpop.f32.mrb[0].mxu0 }
  0xf8   :  { %v1316_v26 = vpop.f32.mrb[1].mxu0 }
  0xf9   :  { %v1350_v27 = vpop.f32.mrb[0].mxu1  ;;  %v1317_v28 = vadd.f32 %v1316_v26, %v1315_v24 }
  0xfa   :  { %v1351_v29 = vpop.f32.mrb[1].mxu1 }
  0xfb   :  { %v1352_v30 = vadd.f32 %v1351_v29, %v1350_v27  ;;  %v496_v31 = vadd.f32 %v1317_v28, %v1281_v25 }
  0xfd   :  { %v566_v32 = vadd.f32 %v1352_v30, %v496_v31 }
 0x117   :  { %v1385_v33 = vpop.f32.mrb[2].mxu0 }
 0x118   :  { %v1386_v34 = vpop.f32.mrb[3].mxu0 }
 0x119   :  { %v1420_v35 = vpop.f32.mrb[2].mxu1  ;;  %v1387_v36 = vadd.f32 %v1386_v34, %v1385_v33 }
 0x11a   :  { %v1421_v37 = vpop.f32.mrb[3].mxu1 }
 0x11b   :  { %v1422_v38 = vadd.f32 %v1421_v37, %v1420_v35  ;;  %v636_v39 = vadd.f32 %v1387_v36, %v566_v32 }
 0x11d   :  { %v706_v40 = vadd.f32 %v1422_v38, %v636_v39 }
 0x137   :  { %v1455_v41 = vpop.f32.mrb[4].mxu0 }
 0x138   :  { %v1456_v42 = vpop.f32.mrb[5].mxu0 }
 0x139   :  { %v1490_v43 = vpop.f32.mrb[4].mxu1  ;;  %v1457_v44 = vadd.f32 %v1456_v42, %v1455_v41 }
 0x13a   :  { %v1491_v45 = vpop.f32.mrb[5].mxu1 }
 0x13b   :  { %v1492_v46 = vadd.f32 %v1491_v45, %v1490_v43  ;;  %v776_v47 = vadd.f32 %v1457_v44, %v706_v40 }
 0x13d   :  { %v846_v48 = vadd.f32 %v1492_v46, %v776_v47 }
 0x157   :  { %v1525_v49 = vpop.f32.mrb[6].mxu0 }
 0x158   :  { %v1526_v50 = vpop.f32.mrb[7].mxu0 }
 0x159   :  { %v1560_v51 = vpop.f32.mrb[6].mxu1  ;;  %v1527_v52 = vadd.f32 %v1526_v50, %v1525_v49 }
 0x15a   :  { %v1561_v53 = vpop.f32.mrb[7].mxu1 }
 0x15b   :  { %v1562_v54 = vadd.f32 %v1561_v53, %v1560_v51  ;;  %v916_v55 = vadd.f32 %v1527_v52, %v846_v48 }
 0x15d   :  { %v986_v56 = vadd.f32 %v1562_v54, %v916_v55 }
 0x177   :  { %v1595_v57 = vpop.f32.mrb[8].mxu0 }
 0x178   :  { %v1596_v58 = vpop.f32.mrb[9].mxu0 }
 0x179   :  { %v1630_v59 = vpop.f32.mrb[8].mxu1  ;;  %v1597_v60 = vadd.f32 %v1596_v58, %v1595_v57 }
 0x17a   :  { %v1631_v61 = vpop.f32.mrb[9].mxu1 }
 0x17b   :  { %v1632_v62 = vadd.f32 %v1631_v61, %v1630_v59  ;;  %v1056_v63 = vadd.f32 %v1597_v60, %v986_v56 }
 0x17d   :  { %v1126_v0 = vadd.f32 %v1632_v62, %v1056_v63 }
 0x197   :  { %v1665_v1 = vpop.f32.mrb[10].mxu0 }
 0x198   :  { %v1666_v2 = vpop.f32.mrb[11].mxu0 }
 0x199   :  { %v1700_v3 = vpop.f32.mrb[10].mxu1  ;;  %v1667_v4 = vadd.f32 %v1666_v2, %v1665_v1 }
 0x19a   :  { %v1701_v5 = vpop.f32.mrb[11].mxu1 }
 0x19b   :  { %v1702_v6 = vadd.f32 %v1701_v5, %v1700_v3  ;;  %v1196_v7 = vadd.f32 %v1667_v4, %v1126_v0 }
 0x19d   :  { %v1266_v8 = vadd.f32 %v1702_v6, %v1196_v7 }
 0x19f   :  { %v1270_v9 = vmul.f32 1.442695, %v1266_v8  ;;  %vm1269_vm0 = vcmp.gt.f32.partialorder %v1266_v8, 0.0 }
 0x1a1   :  { %2087 = vpow2.f32 %v1270_v9 }
 0x1ab   :  { %v2088_v10 = vpop.eup %2087 }
 0x1ac   :  { %v1282_v11 = vadd.f32 -1.0, %v2088_v10 }
 0x1ae   :  { %v1273_v12 = vmul.f32 1.6732632, %v1282_v11 }
 0x1b0   :  { %v1274_v13 = vsel %vm1269_vm0, %v1266_v8, %v1273_v12 }
 0x1b1   :  { %v1275_v14 = vmul.f32 1.050701, %v1274_v13 }
 0x1b3   :  { %1276 = vst [vmem:[%s3342_s3] sm:$0xff] %v1275_v14 }

// kernel: bigru_nacgt_forward.27
= control target key start
LH: loop header
LB: loop body
LE: loop exit
PB: predicated region body
PF: predicated region fallthrough
CT: control target
= control target key end

     0   :  { %v204_v0 = vmov 0.0|0.0   ;;  %vm205_vm0 = vmmov 0   ;;  %v206_v4 = vmov 0.0   ;;  %vm115_vm2 = vcmask 15360   ;;  %s284_s1 = inlined_call_operand.vmem [shape: f32[128,2], index: 1, kind: input, shape index: {}]   ;;  %s285_s0 = inlined_call_operand.vmem [shape: f32[8,128], index: 0, kind: input, shape index: {}]   ;;  %s286_s2 = inlined_call_operand.vmem [shape: f32[1,2], index: 2, kind: input, shape index: {}]   ;;  %s287_s3 = inlined_call_operand.vmem [shape: f32[8,2], index: 3, kind: output, shape index: {}]  }
   0x1   :  { %175 = vmatprep.subr.bf16.mxu0 %v204_v0  ;;  %v15_v1 = vld [vmem:[%s284_s1] sm:$0xff]  ;;  %v16_v2 = vld [vmem:[%s284_s1 + $0x8] sm:$0xff]  ;;  %v17_v3 = vld [vmem:[%s284_s1 + $0x10] sm:$0xff]  ;;  %172 = vmatprep.mubr.msk.f32.mxu0 %vm205_vm0, %v206_v4 }
   0x2   :  { %v176_v5 = vpack.c.bf16 %v16_v2, %v15_v1  ;;  %v18_v6 = vld [vmem:[%s284_s1 + $0x18] sm:$0xff]  ;;  %v19_v8 = vld [vmem:[%s284_s1 + $0x20] sm:$0xff]  ;;  %v20_v9 = vld [vmem:[%s284_s1 + $0x28] sm:$0xff] }
   0x3   :  { %v179_v7 = vpack.c.bf16 %v18_v6, %v17_v3  ;;  %v182_v10 = vpack.c.bf16 %v20_v9, %v19_v8  ;;  %v21_v11 = vld [vmem:[%s284_s1 + $0x30] sm:$0xff]  ;;  %v22_v12 = vld [vmem:[%s284_s1 + $0x38] sm:$0xff]  ;;  %v23_v14 = vld [vmem:[%s284_s1 + $0x40] sm:$0xff] }
   0x4   :  { %177 = vmatpush3.bf16.msra.mxu0 %v176_v5  ;;  %v185_v13 = vpack.c.bf16 %v22_v12, %v21_v11  ;;  %v24_v15 = vld [vmem:[%s284_s1 + $0x48] sm:$0xff]  ;;  %v25_v17 = vld [vmem:[%s284_s1 + $0x50] sm:$0xff]  ;;  %v26_v18 = vld [vmem:[%s284_s1 + $0x58] sm:$0xff] }
   0x5   :  { %178 = vmatprep.subr.bf16.mxu0 %v204_v0  ;;  %v188_v16 = vpack.c.bf16 %v24_v15, %v23_v14  ;;  %v191_v19 = vpack.c.bf16 %v26_v18, %v25_v17  ;;  %v27_v20 = vld [vmem:[%s284_s1 + $0x60] sm:$0xff]  ;;  %v28_v21 = vld [vmem:[%s284_s1 + $0x68] sm:$0xff]  ;;  %v29_v23 = vld [vmem:[%s284_s1 + $0x70] sm:$0xff] }
   0x6   :  { %v194_v22 = vpack.c.bf16 %v28_v21, %v27_v20  ;;  %v30_v24 = vld [vmem:[%s284_s1 + $0x78] sm:$0xff]  ;;  %v14_v26 = vld [vmem:[%s285_s0] sm:$0xff] }
   0x7   :  { %v197_v25 = vpack.c.bf16 %v30_v24, %v29_v23  ;;  %v121_v27 = vld [vmem:[%s286_s2] ss:$0 sm:$0xff] }
   0x8   :  { %180 = vmatpush3.bf16.msra.mxu0 %v179_v7 }
   0x9   :  { %181 = vmatprep.subr.bf16.mxu0 %v204_v0 }
   0xc   :  { %183 = vmatpush3.bf16.msra.mxu0 %v182_v10 }
   0xd   :  { %184 = vmatprep.subr.bf16.mxu0 %v204_v0 }
  0x10   :  { %186 = vmatpush3.bf16.msra.mxu0 %v185_v13 }
  0x11   :  { %187 = vmatprep.subr.bf16.mxu0 %v204_v0 }
  0x14   :  { %189 = vmatpush3.bf16.msra.mxu0 %v188_v16 }
  0x15   :  { %190 = vmatprep.subr.bf16.mxu0 %v204_v0 }
  0x18   :  { %192 = vmatpush3.bf16.msra.mxu0 %v191_v19 }
  0x19   :  { %193 = vmatprep.subr.bf16.mxu0 %v204_v0 }
  0x1c   :  { %195 = vmatpush3.bf16.msra.mxu0 %v194_v22 }
  0x1d   :  { %196 = vmatprep.subr.bf16.mxu0 %v204_v0 }
  0x20   :  { %198 = vmatpush3.bf16.msra.mxu0 %v197_v25 }
  0x23   :  { %173 = vmatmul.mubr.f32.vlgmr.msra.gmra.mrb[0].mxu0 %v14_v26 }
  0xf6   :  { %v104_v28 = vpop.f32.mrb[0].mxu0 }
  0xf7   :  { %v105_v29 = vadd.f32 %v121_v27, %v104_v28  ;;  %v174_v30 = vpop.f32.mrb[1].mxu0 }
  0xf9   :  { %v109_v31 = vmul.f32 1.442695, %v105_v29  ;;  %vm108_vm1 = vcmp.gt.f32.partialorder %v105_v29, 0.0 }
  0xfb   :  { %202 = vpow2.f32 %v109_v31 }
 0x105   :  { %v203_v32 = vpop.eup %202 }
 0x106   :  { %v122_v33 = vadd.f32 -1.0, %v203_v32 }
 0x108   :  { %v112_v34 = vmul.f32 1.6732632, %v122_v33 }
 0x10a   :  { %v113_v35 = vsel %vm108_vm1, %v105_v29, %v112_v34 }
 0x10b   :  { %v114_v36 = vmul.f32 1.050701, %v113_v35 }
 0x10d   :  { %116 = vst.msk [vmem:[%s287_s3] sm:$0xff] %vm115_vm2, %v114_v36 }

</bundles_post_ra>
